<compile_context>
chip_gen: v7x
topology: tpu7x:2x2x1
jax: 0.10.0
libtpu: 0.0.40
codegen_flags: <defaults>
</compile_context>

<pallas_src>
import functools

import jax
import jax.numpy as jnp
from jax.experimental import pallas as pl
from jax.experimental.pallas import tpu as pltpu

LANE = 128


def _round_up(v, m):
    return ((v + m - 1) // m) * m


def _vmem_limit_bytes():
    """Generation-aware VMEM budget (leave 25% headroom for compiler scratch)."""
    cap = 64 * 1024 * 1024
    try:
        info = pltpu.get_tpu_info()
        cap = int(getattr(info, "vmem_capacity_bytes", cap)) or cap
    except Exception:
        pass
    return int(cap * 3 // 4)


# --------------------------------------------------------------------------
# stage 1: conv1 (9-tap MXU accumulate) + projection shortcut + BN1 partials
# --------------------------------------------------------------------------
def _make_stage1_kernel(Ho, Wo, Cinp, Coutp, stride, has_proj):
    M = Ho * Wo

    def taps(xpad):
        # 9 shifted 3x3 taps, each (M, Cinp) bf16 (already bf16 from HBM).
        for kh in range(3):
            for kw in range(3):
                yield xpad[:,
                           kh:kh + (Ho - 1) * stride + 1:stride,
                           kw:kw + (Wo - 1) * stride + 1:stride, :].reshape(M, Cinp)

    def stats(v):                      # (M, Cp) f32 -> (1, 2, Cp) partial
        return jnp.concatenate(
            [jnp.sum(v, axis=0, keepdims=True),
             jnp.sum(v * v, axis=0, keepdims=True)], axis=0).reshape(1, 2, Coutp)

    def kernel(*refs):
        if has_proj:
            (xpad_ref, w1_ref, ws_ref,
             y1_ref, sc_ref, st1_ref, sts_ref) = refs
        else:
            (xpad_ref, w1_ref, y1_ref, st1_ref) = refs

        xpad = xpad_ref[...]           # (1, H+2, W+2, Cinp) bf16

        # conv1: per-tap dot accumulation (no im2col materialization).
        acc1 = jnp.zeros((M, Coutp), jnp.float32)
        for t, patch in enumerate(taps(xpad)):
            acc1 += jnp.dot(patch, w1_ref[t * Cinp:(t + 1) * Cinp, :],
                            preferred_element_type=jnp.float32)
        y1_ref[...] = acc1.astype(jnp.bfloat16).reshape(1, Ho, Wo, Coutp)
        st1_ref[...] = stats(acc1)     # per-tile partial, single store

        if has_proj:
            xin = xpad[:,
                       1:1 + (Ho - 1) * stride + 1:stride,
                       1:1 + (Wo - 1) * stride + 1:stride, :].reshape(M, Cinp)
            sc = jnp.dot(xin, ws_ref[...], preferred_element_type=jnp.float32)
            sc_ref[...] = sc.astype(jnp.bfloat16).reshape(1, Ho, Wo, Coutp)
            sts_ref[...] = stats(sc)

    return kernel


# --------------------------------------------------------------------------
# stage 2: apply BN1 + ReLU, conv2 (9-tap MXU accumulate), BN2 partials
# --------------------------------------------------------------------------
def _make_stage2_kernel(Ho, Wo, Coutp, count, eps):
    M = Ho * Wo

    def kernel(y1_ref, st1_ref, g1_ref, b1_ref, w2_ref,
               y2_ref, st2_ref, pad_ref):
        inv = 1.0 / count
        mean1 = st1_ref[0:1, :] * inv
        var1 = jnp.maximum(st1_ref[1:2, :] * inv - mean1 * mean1, 0.0)
        scale1 = g1_ref[...] * jax.lax.rsqrt(var1 + eps)
        shift1 = b1_ref[...] - mean1 * scale1

        y1 = jnp.maximum(
            y1_ref[...].astype(jnp.float32).reshape(M, Coutp) * scale1 + shift1,
            0.0)

        # conv2 halo: zero ONLY the 1-wide border of the bf16 scratch — done
        # unconditionally every step so the "parallel" axis stays correct.
        zr = jnp.zeros((1, 1, Wo + 2, Coutp), jnp.bfloat16)
        zc = jnp.zeros((1, Ho + 2, 1, Coutp), jnp.bfloat16)
        pad_ref[:, 0:1, :, :] = zr
        pad_ref[:, Ho + 1:Ho + 2, :, :] = zr
        pad_ref[:, :, 0:1, :] = zc
        pad_ref[:, :, Wo + 1:Wo + 2, :] = zc
        pad_ref[:, 1:Ho + 1, 1:Wo + 1, :] = (
            y1.astype(jnp.bfloat16).reshape(1, Ho, Wo, Coutp))

        xp = pad_ref[...]              # (1, Ho+2, Wo+2, Coutp) bf16
        acc2 = jnp.zeros((M, Coutp), jnp.float32)
        t = 0
        for kh in range(3):
            for kw in range(3):
                patch = xp[:, kh:kh + Ho, kw:kw + Wo, :].reshape(M, Coutp)
                acc2 += jnp.dot(patch, w2_ref[t * Coutp:(t + 1) * Coutp, :],
                                preferred_element_type=jnp.float32)
                t += 1
        y2_ref[...] = acc2.astype(jnp.bfloat16).reshape(1, Ho, Wo, Coutp)
        st2_ref[...] = jnp.concatenate(
            [jnp.sum(acc2, axis=0, keepdims=True),
             jnp.sum(acc2 * acc2, axis=0, keepdims=True)],
            axis=0).reshape(1, 2, Coutp)

    return kernel


# --------------------------------------------------------------------------
# stage 3: BN2 (+ shortcut BN) + residual add + ReLU   (pure elementwise)
# --------------------------------------------------------------------------
def _make_stage3_kernel(Ho, Wo, Coutp, count, eps, has_proj):
    M = Ho * Wo

    def affine(st_ref, g_ref, b_ref):
        inv = 1.0 / count
        mean = st_ref[0:1, :] * inv
        var = jnp.maximum(st_ref[1:2, :] * inv - mean * mean, 0.0)
        scale = g_ref[...] * jax.lax.rsqrt(var + eps)
        shift = b_ref[...] - mean * scale
        return scale, shift

    def kernel(*refs):
        if has_proj:
            (y2_ref, sc_ref, st2_ref, g2_ref, b2_ref,
             sts_ref, gs_ref, bs_ref, o_ref) = refs
        else:
            (y2_ref, x_ref, st2_ref, g2_ref, b2_ref, o_ref) = refs

        scale2, shift2 = affine(st2_ref, g2_ref, b2_ref)
        y2 = y2_ref[...].astype(jnp.float32).reshape(M, Coutp) * scale2 + shift2

        if has_proj:
            scale_s, shift_s = affine(sts_ref, gs_ref, bs_ref)
            sc = (sc_ref[...].astype(jnp.float32).reshape(M, Coutp)
                  * scale_s + shift_s)
        else:
            # identity shortcut (stride==1, Cin==Cout): read the padded input
            # directly -> no HBM round trip through a dedicated sc buffer.
            sc = x_ref[:, 1:Ho + 1, 1:Wo + 1, :].astype(
                jnp.float32).reshape(M, Coutp)

        o_ref[...] = jnp.maximum(y2 + sc, 0.0).reshape(1, Ho, Wo, Coutp)

    return kernel


# --------------------------------------------------------------------------
# wrapper
# --------------------------------------------------------------------------
def resnet_block_2d_forward(x_nchw, params, stride=1, eps=1e-5):
    """ResnetBlock2D forward (PyTorch training-mode BN semantics)."""
    N, Cin, H, W = x_nchw.shape
    Cout = params["w1"].shape[-1]
    has_proj = (stride != 1) or (Cin != Cout)
    Ho = (H - 1) // stride + 1
    Wo = (W - 1) // stride + 1
    Cinp = _round_up(Cin, LANE)
    Coutp = _round_up(Cout, LANE)
    count = float(N * Ho * Wo)
    f32, bf16 = jnp.float32, jnp.bfloat16
    vmem = _vmem_limit_bytes()

    # layout glue: NCHW -> NHWC, lane-pad channels, spatial pad=1, cast bf16
    x = jnp.transpose(x_nchw, (0, 2, 3, 1))
    xpad = jnp.pad(x, ((0, 0), (1, 1), (1, 1), (0, Cinp - Cin))).astype(bf16)

    def fold_w(w, ci, cip):          # (3,3,ci,Cout) -> (9*cip, Coutp) bf16
        wp = jnp.pad(w, ((0, 0), (0, 0), (0, cip - ci), (0, Coutp - Cout)))
        return wp.reshape(9 * cip, Coutp).astype(bf16)

    def pad_vec(v):
        return jnp.pad(v.reshape(1, -1).astype(f32),
                       ((0, 0), (0, Coutp - Cout)))

    w1f = fold_w(params["w1"], Cin, Cinp)
    w2f = fold_w(params["w2"], Cout, Coutp)
    g1, b1 = pad_vec(params["g1"]), pad_vec(params["b1"])
    g2, b2 = pad_vec(params["g2"]), pad_vec(params["b2"])

    cp = pltpu.CompilerParams(
        dimension_semantics=("parallel",),     # no cross-step dependence left
        vmem_limit_bytes=vmem)

    def img_spec(Hb, Wb, C):
        return pl.BlockSpec((1, Hb, Wb, C), lambda n: (n, 0, 0, 0))

    def full2d(a, b):
        return pl.BlockSpec((a, b), lambda n: (0, 0))

    part_stats_spec = pl.BlockSpec((1, 2, Coutp), lambda n: (n, 0, 0))
    tot_stats_spec = full2d(2, Coutp)

    # ---------------- stage 1 ----------------
    k1 = _make_stage1_kernel(Ho, Wo, Cinp, Coutp, stride, has_proj)
    in1 = [xpad, w1f]
    in1_specs = [img_spec(H + 2, W + 2, Cinp), full2d(9 * Cinp, Coutp)]
    if has_proj:
        wsf = jnp.pad(params["ws"],
                      ((0, Cinp - Cin), (0, Coutp - Cout))).astype(bf16)
        in1.append(wsf)
        in1_specs.append(full2d(Cinp, Coutp))
        out1_shapes = [jax.ShapeDtypeStruct((N, Ho, Wo, Coutp), bf16),
                       jax.ShapeDtypeStruct((N, Ho, Wo, Coutp), bf16),
                       jax.ShapeDtypeStruct((N, 2, Coutp), f32),
                       jax.ShapeDtypeStruct((N, 2, Coutp), f32)]
        out1_specs = [img_spec(Ho, Wo, Coutp), img_spec(Ho, Wo, Coutp),
                      part_stats_spec, part_stats_spec]
    else:
        out1_shapes = [jax.ShapeDtypeStruct((N, Ho, Wo, Coutp), bf16),
                       jax.ShapeDtypeStruct((N, 2, Coutp), f32)]
        out1_specs = [img_spec(Ho, Wo, Coutp), part_stats_spec]

    flops1 = 2 * N * Ho * Wo * (9 * Cinp + (Cinp if has_proj else 0)) * Coutp
    bytes1 = (xpad.size * 2 + w1f.size * 2
              + N * Ho * Wo * Coutp * 2 * (2 if has_proj else 1)
              + N * 2 * Coutp * 4 * (2 if has_proj else 1)
              + (wsf.size * 2 if has_proj else 0))
    res1 = pl.pallas_call(
        k1, grid=(N,), in_specs=in1_specs, out_specs=out1_specs,
        out_shape=out1_shapes, compiler_params=cp,
        cost_estimate=pl.CostEstimate(flops=flops1, transcendentals=0,
                                      bytes_accessed=bytes1),
    )(*in1)
    if has_proj:
        y1_raw, sc_raw, st1_part, sts_part = res1
        stats_s = jnp.sum(sts_part, axis=0)          # (2, Coutp), tiny reduce
    else:
        y1_raw, st1_part = res1
    stats1 = jnp.sum(st1_part, axis=0)               # (2, Coutp), tiny reduce

    # ---------------- stage 2 ----------------
    k2 = _make_stage2_kernel(Ho, Wo, Coutp, count, eps)
    flops2 = 2 * N * Ho * Wo * 9 * Coutp * Coutp
    bytes2 = (y1_raw.size * 2 + w2f.size * 2
              + N * Ho * Wo * Coutp * 2 + N * 2 * Coutp * 4)
    y2_raw, st2_part = pl.pallas_call(
        k2, grid=(N,),
        in_specs=[img_spec(Ho, Wo, Coutp), tot_stats_spec, full2d(1, Coutp),
                  full2d(1, Coutp), full2d(9 * Coutp, Coutp)],
        out_specs=[img_spec(Ho, Wo, Coutp), part_stats_spec],
        out_shape=[jax.ShapeDtypeStruct((N, Ho, Wo, Coutp), bf16),
                   jax.ShapeDtypeStruct((N, 2, Coutp), f32)],
        scratch_shapes=[pltpu.VMEM((1, Ho + 2, Wo + 2, Coutp), bf16)],
        compiler_params=cp,
        cost_estimate=pl.CostEstimate(flops=flops2, transcendentals=Coutp,
                                      bytes_accessed=bytes2),
    )(y1_raw, stats1, g1, b1, w2f)
    stats2 = jnp.sum(st2_part, axis=0)

    # ---------------- stage 3 ----------------
    k3 = _make_stage3_kernel(Ho, Wo, Coutp, count, eps, has_proj)
    if has_proj:
        gs, bs = pad_vec(params["gs"]), pad_vec(params["bs"])
        in3 = [y2_raw, sc_raw, stats2, g2, b2, stats_s, gs, bs]
        in3_specs = [img_spec(Ho, Wo, Coutp), img_spec(Ho, Wo, Coutp),
                     tot_stats_spec, full2d(1, Coutp), full2d(1, Coutp),
                     tot_stats_spec, full2d(1, Coutp), full2d(1, Coutp)]
        sc_bytes = sc_raw.size * 2
    else:
        in3 = [y2_raw, xpad, stats2, g2, b2]
        in3_specs = [img_spec(Ho, Wo, Coutp), img_spec(H + 2, W + 2, Cinp),
                     tot_stats_spec, full2d(1, Coutp), full2d(1, Coutp)]
        sc_bytes = xpad.size * 2

    bytes3 = y2_raw.size * 2 + sc_bytes + N * Ho * Wo * Coutp * 4
    out_nhwc = pl.pallas_call(
        k3, grid=(N,), in_specs=in3_specs,
        out_specs=img_spec(Ho, Wo, Coutp),
        out_shape=jax.ShapeDtypeStruct((N, Ho, Wo, Coutp), f32),
        compiler_params=cp,
        cost_estimate=pl.CostEstimate(flops=8 * N * Ho * Wo * Coutp,
                                      transcendentals=2 * Coutp,
                                      bytes_accessed=bytes3),
    )(*in3)

    # layout glue back to NCHW, dropping the lane padding (kernel stores stay
    # lane-dense; consumers that accept NHWC can skip this transpose).
    return jnp.transpose(out_nhwc[..., :Cout], (0, 3, 1, 2))


# ---------------------------- pure-JAX reference ----------------------------
def _reference_forward(x_nchw, params, stride, eps=1e-5):
    Cout = params["w1"].shape[-1]
    Cin = x_nchw.shape[1]
    has_proj = (stride != 1) or (Cin != Cout)

    def conv(x, w, s, pad):
        return jax.lax.conv_general_dilated(
            x, w, window_strides=(s, s), padding=pad,
            dimension_numbers=("NHWC", "HWIO", "NHWC"))

    def bn(x, g, b):
        mean = jnp.mean(x, axis=(0, 1, 2), keepdims=True)
        var = jnp.mean(jnp.square(x - mean), axis=(0, 1, 2), keepdims=True)
        return (x - mean) * jax.lax.rsqrt(var + eps) * g.reshape(1, 1, 1, -1) \
            + b.reshape(1, 1, 1, -1)

    x = jnp.transpose(x_nchw, (0, 2, 3, 1))
    y = jax.nn.relu(bn(conv(x, params["w1"], stride, ((1, 1), (1, 1))),
                       params["g1"], params["b1"]))
    y = bn(conv(y, params["w2"], 1, ((1, 1), (1, 1))), params["g2"], params["b2"])
    if has_proj:
        ws = params["ws"].reshape(1, 1, Cin, Cout)
        sc = bn(conv(x, ws, stride, "VALID"), params["gs"], params["bs"])
    else:
        sc = x[:, ::stride, ::stride, :]
    out = jax.nn.relu(y + sc)
    return jnp.transpose(out, (0, 3, 1, 2))


# --------------------------------- main --------------------------------------
if __name__ == "__main__":
    key = jax.random.PRNGKey(0)
    k_x, k_w1, k_w2, k_ws, k_x2, k_u1, k_u2 = jax.random.split(key, 7)

    # --- test 1: projection shortcut path (Cin != Cout, stride=1) -----------
    N, Cin, H, W = 2, 4, 16, 16
    Cout = 8
    stride = 1
    x = jax.random.normal(k_x, (N, Cin, H, W), dtype=jnp.float32)
    params = {
        "w1": 0.1 * jax.random.normal(k_w1, (3, 3, Cin, Cout), jnp.float32),
        "g1": jnp.ones((1, Cout), jnp.float32),
        "b1": jnp.zeros((1, Cout), jnp.float32),
        "w2": 0.1 * jax.random.normal(k_w2, (3, 3, Cout, Cout), jnp.float32),
        "g2": jnp.ones((1, Cout), jnp.float32),
        "b2": jnp.zeros((1, Cout), jnp.float32),
        "ws": 0.1 * jax.random.normal(k_ws, (Cin, Cout), jnp.float32),
        "gs": jnp.ones((1, Cout), jnp.float32),
        "bs": jnp.zeros((1, Cout), jnp.float32),
    }
    fwd = jax.jit(functools.partial(resnet_block_2d_forward, stride=stride))
    out = jax.block_until_ready(fwd(x, params))
    ref = jax.block_until_ready(_reference_forward(x, params, stride))
    assert out.shape == ref.shape == (N, Cout, H // stride, W // stride)
    # bf16 MXU matmuls + bf16 activation storage -> loose tolerance.
    assert jnp.allclose(out, ref, rtol=5e-2, atol=5e-2), \
        f"proj path max abs err {jnp.max(jnp.abs(out - ref))}"

    # --- test 2: identity shortcut path (Cin == Cout, stride=1) -------------
    C2 = 8
    x2 = jax.random.normal(k_x2, (N, C2, H, W), dtype=jnp.float32)
    params2 = {
        "w1": 0.1 * jax.random.normal(k_u1, (3, 3, C2, C2), jnp.float32),
        "g1": jnp.ones((1, C2), jnp.float32),
        "b1": jnp.zeros((1, C2), jnp.float32),
        "w2": 0.1 * jax.random.normal(k_u2, (3, 3, C2, C2), jnp.float32),
        "g2": jnp.ones((1, C2), jnp.float32),
        "b2": jnp.zeros((1, C2), jnp.float32),
    }
    fwd2 = jax.jit(functools.partial(resnet_block_2d_forward, stride=1))
    out2 = jax.block_until_ready(fwd2(x2, params2))
    ref2 = jax.block_until_ready(_reference_forward(x2, params2, 1))
    assert out2.shape == ref2.shape == (N, C2, H, W)
    assert jnp.allclose(out2, ref2, rtol=5e-2, atol=5e-2), \
        f"identity path max abs err {jnp.max(jnp.abs(out2 - ref2))}"

    print("KERNEL_OK")
</pallas_src>

<mosaic_0001>
module attributes {stable_mosaic.version = 11 : i64} {
  func.func @kernel(%arg0: i32, %arg1: memref<1x16x16x128xbf16, #tpu.memory_space<vmem>>, %arg2: memref<2x128xf32, #tpu.memory_space<vmem>>, %arg3: memref<1x128xf32, #tpu.memory_space<vmem>>, %arg4: memref<1x128xf32, #tpu.memory_space<vmem>>, %arg5: memref<1152x128xbf16, #tpu.memory_space<vmem>>, %arg6: memref<1x16x16x128xbf16, #tpu.memory_space<vmem>>, %arg7: memref<1x2x128xf32, #tpu.memory_space<vmem>>, %arg8: memref<1x18x18x128xbf16, #tpu.memory_space<vmem>>) attributes {dimension_semantics = [#tpu.dimension_semantics<parallel>], iteration_bounds = array<i64: 2>, scalar_prefetch = 0 : i64, scratch_operands = 1 : i64, tpu.core_type = #tpu.core_type<tc>, window_params = [{transform_indices = @transform_0, window_bounds = array<i64: 1, 16, 16, 128>}, {pipeline_mode = #tpu.pipeline_mode<synchronous>, transform_indices = @transform_1, window_bounds = array<i64: 2, 128>}, {pipeline_mode = #tpu.pipeline_mode<synchronous>, transform_indices = @transform_2, window_bounds = array<i64: 1, 128>}, {pipeline_mode = #tpu.pipeline_mode<synchronous>, transform_indices = @transform_3, window_bounds = array<i64: 1, 128>}, {pipeline_mode = #tpu.pipeline_mode<synchronous>, transform_indices = @transform_4, window_bounds = array<i64: 1152, 128>}, {transform_indices = @transform_5, window_bounds = array<i64: 1, 16, 16, 128>}, {transform_indices = @transform_6, window_bounds = array<i64: 1, 2, 128>}]} {
    %c0 = arith.constant 0 : index
    %c0_0 = arith.constant 0 : index
    %0 = vector.load %arg2[%c0, %c0_0] : memref<2x128xf32, #tpu.memory_space<vmem>>, vector<1x128xf32>
    %cst = arith.constant 0.001953125 : f32
    %1 = vector.broadcast %cst : f32 to vector<1x128xf32>
    %2 = arith.mulf %0, %1 : vector<1x128xf32>
    %c1 = arith.constant 1 : index
    %c0_1 = arith.constant 0 : index
    %3 = vector.load %arg2[%c1, %c0_1] : memref<2x128xf32, #tpu.memory_space<vmem>>, vector<1x128xf32>
    %cst_2 = arith.constant 0.001953125 : f32
    %4 = vector.broadcast %cst_2 : f32 to vector<1x128xf32>
    %5 = arith.mulf %3, %4 : vector<1x128xf32>
    %6 = arith.mulf %2, %2 : vector<1x128xf32>
    %7 = arith.subf %5, %6 : vector<1x128xf32>
    %cst_3 = arith.constant 0.000000e+00 : f32
    %8 = vector.broadcast %cst_3 : f32 to vector<1x128xf32>
    %9 = arith.maximumf %7, %8 : vector<1x128xf32>
    %c0_4 = arith.constant 0 : index
    %c0_5 = arith.constant 0 : index
    %10 = vector.load %arg3[%c0_4, %c0_5] : memref<1x128xf32, #tpu.memory_space<vmem>>, vector<1x128xf32>
    %cst_6 = arith.constant 9.99999974E-6 : f32
    %11 = vector.broadcast %cst_6 : f32 to vector<1x128xf32>
    %12 = arith.addf %9, %11 : vector<1x128xf32>
    %13 = math.rsqrt %12 : vector<1x128xf32>
    %14 = arith.mulf %10, %13 : vector<1x128xf32>
    %c0_7 = arith.constant 0 : index
    %c0_8 = arith.constant 0 : index
    %15 = vector.load %arg4[%c0_7, %c0_8] : memref<1x128xf32, #tpu.memory_space<vmem>>, vector<1x128xf32>
    %16 = arith.mulf %2, %14 : vector<1x128xf32>
    %17 = arith.subf %15, %16 : vector<1x128xf32>
    %c0_9 = arith.constant 0 : index
    %c0_10 = arith.constant 0 : index
    %c0_11 = arith.constant 0 : index
    %c0_12 = arith.constant 0 : index
    %18 = vector.load %arg1[%c0_9, %c0_10, %c0_11, %c0_12] : memref<1x16x16x128xbf16, #tpu.memory_space<vmem>>, vector<1x16x16x128xbf16>
    %19 = arith.extf %18 : vector<1x16x16x128xbf16> to vector<1x16x16x128xf32>
    %20 = vector.shape_cast %19 : vector<1x16x16x128xf32> to vector<256x128xf32>
    %21 = vector.broadcast %14 : vector<1x128xf32> to vector<256x128xf32>
    %22 = arith.mulf %20, %21 : vector<256x128xf32>
    %23 = vector.broadcast %17 : vector<1x128xf32> to vector<256x128xf32>
    %24 = arith.addf %22, %23 : vector<256x128xf32>
    %cst_13 = arith.constant 0.000000e+00 : f32
    %25 = vector.broadcast %cst_13 : f32 to vector<256x128xf32>
    %26 = arith.maximumf %24, %25 : vector<256x128xf32>
    %cst_14 = arith.constant 0.000000e+00 : bf16
    %27 = vector.broadcast %cst_14 : bf16 to vector<1x1x18x128xbf16>
    %cst_15 = arith.constant 0.000000e+00 : bf16
    %28 = vector.broadcast %cst_15 : bf16 to vector<1x18x1x128xbf16>
    %c0_16 = arith.constant 0 : index
    %c0_17 = arith.constant 0 : index
    %c0_18 = arith.constant 0 : index
    %c0_19 = arith.constant 0 : index
    %29 = vector.load %arg8[%c0_16, %c0_17, %c0_18, %c0_19] : memref<1x18x18x128xbf16, #tpu.memory_space<vmem>>, vector<1x1x18x128xbf16>
    tpu.vector_store %arg8[%c0_16, %c0_17, %c0_18, %c0_19], %27 {strides = array<i32>} : memref<1x18x18x128xbf16, #tpu.memory_space<vmem>>, vector<1x1x18x128xbf16>,
    %c0_20 = arith.constant 0 : index
    %c17 = arith.constant 17 : index
    %c0_21 = arith.constant 0 : index
    %c0_22 = arith.constant 0 : index
    %30 = vector.load %arg8[%c0_20, %c17, %c0_21, %c0_22] : memref<1x18x18x128xbf16, #tpu.memory_space<vmem>>, vector<1x1x18x128xbf16>
    tpu.vector_store %arg8[%c0_20, %c17, %c0_21, %c0_22], %27 {strides = array<i32>} : memref<1x18x18x128xbf16, #tpu.memory_space<vmem>>, vector<1x1x18x128xbf16>,
    %c0_23 = arith.constant 0 : index
    %c0_24 = arith.constant 0 : index
    %c0_25 = arith.constant 0 : index
    %c0_26 = arith.constant 0 : index
    %31 = vector.load %arg8[%c0_23, %c0_24, %c0_25, %c0_26] : memref<1x18x18x128xbf16, #tpu.memory_space<vmem>>, vector<1x18x1x128xbf16>
    tpu.vector_store %arg8[%c0_23, %c0_24, %c0_25, %c0_26], %28 {strides = array<i32>} : memref<1x18x18x128xbf16, #tpu.memory_space<vmem>>, vector<1x18x1x128xbf16>,
    %c0_27 = arith.constant 0 : index
    %c0_28 = arith.constant 0 : index
    %c17_29 = arith.constant 17 : index
    %c0_30 = arith.constant 0 : index
    %32 = vector.load %arg8[%c0_27, %c0_28, %c17_29, %c0_30] : memref<1x18x18x128xbf16, #tpu.memory_space<vmem>>, vector<1x18x1x128xbf16>
    tpu.vector_store %arg8[%c0_27, %c0_28, %c17_29, %c0_30], %28 {strides = array<i32>} : memref<1x18x18x128xbf16, #tpu.memory_space<vmem>>, vector<1x18x1x128xbf16>,
    %33 = arith.truncf %26 : vector<256x128xf32> to vector<256x128xbf16>
    %34 = vector.shape_cast %33 : vector<256x128xbf16> to vector<1x16x16x128xbf16>
    %c0_31 = arith.constant 0 : index
    %c1_32 = arith.constant 1 : index
    %c1_33 = arith.constant 1 : index
    %c0_34 = arith.constant 0 : index
    %35 = vector.load %arg8[%c0_31, %c1_32, %c1_33, %c0_34] : memref<1x18x18x128xbf16, #tpu.memory_space<vmem>>, vector<1x16x16x128xbf16>
    tpu.vector_store %arg8[%c0_31, %c1_32, %c1_33, %c0_34], %34 {strides = array<i32>} : memref<1x18x18x128xbf16, #tpu.memory_space<vmem>>, vector<1x16x16x128xbf16>,
    %c0_35 = arith.constant 0 : index
    %c0_36 = arith.constant 0 : index
    %c0_37 = arith.constant 0 : index
    %c0_38 = arith.constant 0 : index
    %36 = vector.load %arg8[%c0_35, %c0_36, %c0_37, %c0_38] : memref<1x18x18x128xbf16, #tpu.memory_space<vmem>>, vector<1x18x18x128xbf16>
    %cst_39 = arith.constant 0.000000e+00 : f32
    %37 = vector.broadcast %cst_39 : f32 to vector<256x128xf32>
    %38 = vector.extract_strided_slice %36 {offsets = [0, 0, 0, 0], sizes = [1, 16, 16, 128], strides = [1, 1, 1, 1]} : vector<1x18x18x128xbf16> to vector<1x16x16x128xbf16>
    %39 = vector.shape_cast %38 : vector<1x16x16x128xbf16> to vector<256x128xbf16>
    %c0_40 = arith.constant 0 : index
    %c0_41 = arith.constant 0 : index
    %40 = vector.load %arg5[%c0_40, %c0_41] : memref<1152x128xbf16, #tpu.memory_space<vmem>>, vector<128x128xbf16>
    %cst_42 = arith.constant dense<0.000000e+00> : vector<256x128xf32>
    %41 = tpu.matmul %39, %40, %cst_42 {dimension_numbers = #tpu.dot_dimension_numbers<[1], [0], [0], [1], [0, 0, 1, 1], [], []>} : vector<256x128xbf16>, vector<128x128xbf16>, vector<256x128xf32> -> vector<256x128xf32>
    %42 = arith.addf %37, %41 : vector<256x128xf32>
    %43 = vector.extract_strided_slice %36 {offsets = [0, 0, 1, 0], sizes = [1, 16, 16, 128], strides = [1, 1, 1, 1]} : vector<1x18x18x128xbf16> to vector<1x16x16x128xbf16>
    %44 = vector.shape_cast %43 : vector<1x16x16x128xbf16> to vector<256x128xbf16>
    %c128 = arith.constant 128 : index
    %c0_43 = arith.constant 0 : index
    %45 = vector.load %arg5[%c128, %c0_43] : memref<1152x128xbf16, #tpu.memory_space<vmem>>, vector<128x128xbf16>
    %cst_44 = arith.constant dense<0.000000e+00> : vector<256x128xf32>
    %46 = tpu.matmul %44, %45, %cst_44 {dimension_numbers = #tpu.dot_dimension_numbers<[1], [0], [0], [1], [0, 0, 1, 1], [], []>} : vector<256x128xbf16>, vector<128x128xbf16>, vector<256x128xf32> -> vector<256x128xf32>
    %47 = arith.addf %42, %46 : vector<256x128xf32>
    %48 = vector.extract_strided_slice %36 {offsets = [0, 0, 2, 0], sizes = [1, 16, 16, 128], strides = [1, 1, 1, 1]} : vector<1x18x18x128xbf16> to vector<1x16x16x128xbf16>
    %49 = vector.shape_cast %48 : vector<1x16x16x128xbf16> to vector<256x128xbf16>
    %c256 = arith.constant 256 : index
    %c0_45 = arith.constant 0 : index
    %50 = vector.load %arg5[%c256, %c0_45] : memref<1152x128xbf16, #tpu.memory_space<vmem>>, vector<128x128xbf16>
    %cst_46 = arith.constant dense<0.000000e+00> : vector<256x128xf32>
    %51 = tpu.matmul %49, %50, %cst_46 {dimension_numbers = #tpu.dot_dimension_numbers<[1], [0], [0], [1], [0, 0, 1, 1], [], []>} : vector<256x128xbf16>, vector<128x128xbf16>, vector<256x128xf32> -> vector<256x128xf32>
    %52 = arith.addf %47, %51 : vector<256x128xf32>
    %53 = vector.extract_strided_slice %36 {offsets = [0, 1, 0, 0], sizes = [1, 16, 16, 128], strides = [1, 1, 1, 1]} : vector<1x18x18x128xbf16> to vector<1x16x16x128xbf16>
    %54 = vector.shape_cast %53 : vector<1x16x16x128xbf16> to vector<256x128xbf16>
    %c384 = arith.constant 384 : index
    %c0_47 = arith.constant 0 : index
    %55 = vector.load %arg5[%c384, %c0_47] : memref<1152x128xbf16, #tpu.memory_space<vmem>>, vector<128x128xbf16>
    %cst_48 = arith.constant dense<0.000000e+00> : vector<256x128xf32>
    %56 = tpu.matmul %54, %55, %cst_48 {dimension_numbers = #tpu.dot_dimension_numbers<[1], [0], [0], [1], [0, 0, 1, 1], [], []>} : vector<256x128xbf16>, vector<128x128xbf16>, vector<256x128xf32> -> vector<256x128xf32>
    %57 = arith.addf %52, %56 : vector<256x128xf32>
    %58 = vector.extract_strided_slice %36 {offsets = [0, 1, 1, 0], sizes = [1, 16, 16, 128], strides = [1, 1, 1, 1]} : vector<1x18x18x128xbf16> to vector<1x16x16x128xbf16>
    %59 = vector.shape_cast %58 : vector<1x16x16x128xbf16> to vector<256x128xbf16>
    %c512 = arith.constant 512 : index
    %c0_49 = arith.constant 0 : index
    %60 = vector.load %arg5[%c512, %c0_49] : memref<1152x128xbf16, #tpu.memory_space<vmem>>, vector<128x128xbf16>
    %cst_50 = arith.constant dense<0.000000e+00> : vector<256x128xf32>
    %61 = tpu.matmul %59, %60, %cst_50 {dimension_numbers = #tpu.dot_dimension_numbers<[1], [0], [0], [1], [0, 0, 1, 1], [], []>} : vector<256x128xbf16>, vector<128x128xbf16>, vector<256x128xf32> -> vector<256x128xf32>
    %62 = arith.addf %57, %61 : vector<256x128xf32>
    %63 = vector.extract_strided_slice %36 {offsets = [0, 1, 2, 0], sizes = [1, 16, 16, 128], strides = [1, 1, 1, 1]} : vector<1x18x18x128xbf16> to vector<1x16x16x128xbf16>
    %64 = vector.shape_cast %63 : vector<1x16x16x128xbf16> to vector<256x128xbf16>
    %c640 = arith.constant 640 : index
    %c0_51 = arith.constant 0 : index
    %65 = vector.load %arg5[%c640, %c0_51] : memref<1152x128xbf16, #tpu.memory_space<vmem>>, vector<128x128xbf16>
    %cst_52 = arith.constant dense<0.000000e+00> : vector<256x128xf32>
    %66 = tpu.matmul %64, %65, %cst_52 {dimension_numbers = #tpu.dot_dimension_numbers<[1], [0], [0], [1], [0, 0, 1, 1], [], []>} : vector<256x128xbf16>, vector<128x128xbf16>, vector<256x128xf32> -> vector<256x128xf32>
    %67 = arith.addf %62, %66 : vector<256x128xf32>
    %68 = vector.extract_strided_slice %36 {offsets = [0, 2, 0, 0], sizes = [1, 16, 16, 128], strides = [1, 1, 1, 1]} : vector<1x18x18x128xbf16> to vector<1x16x16x128xbf16>
    %69 = vector.shape_cast %68 : vector<1x16x16x128xbf16> to vector<256x128xbf16>
    %c768 = arith.constant 768 : index
    %c0_53 = arith.constant 0 : index
    %70 = vector.load %arg5[%c768, %c0_53] : memref<1152x128xbf16, #tpu.memory_space<vmem>>, vector<128x128xbf16>
    %cst_54 = arith.constant dense<0.000000e+00> : vector<256x128xf32>
    %71 = tpu.matmul %69, %70, %cst_54 {dimension_numbers = #tpu.dot_dimension_numbers<[1], [0], [0], [1], [0, 0, 1, 1], [], []>} : vector<256x128xbf16>, vector<128x128xbf16>, vector<256x128xf32> -> vector<256x128xf32>
    %72 = arith.addf %67, %71 : vector<256x128xf32>
    %73 = vector.extract_strided_slice %36 {offsets = [0, 2, 1, 0], sizes = [1, 16, 16, 128], strides = [1, 1, 1, 1]} : vector<1x18x18x128xbf16> to vector<1x16x16x128xbf16>
    %74 = vector.shape_cast %73 : vector<1x16x16x128xbf16> to vector<256x128xbf16>
    %c896 = arith.constant 896 : index
    %c0_55 = arith.constant 0 : index
    %75 = vector.load %arg5[%c896, %c0_55] : memref<1152x128xbf16, #tpu.memory_space<vmem>>, vector<128x128xbf16>
    %cst_56 = arith.constant dense<0.000000e+00> : vector<256x128xf32>
    %76 = tpu.matmul %74, %75, %cst_56 {dimension_numbers = #tpu.dot_dimension_numbers<[1], [0], [0], [1], [0, 0, 1, 1], [], []>} : vector<256x128xbf16>, vector<128x128xbf16>, vector<256x128xf32> -> vector<256x128xf32>
    %77 = arith.addf %72, %76 : vector<256x128xf32>
    %78 = vector.extract_strided_slice %36 {offsets = [0, 2, 2, 0], sizes = [1, 16, 16, 128], strides = [1, 1, 1, 1]} : vector<1x18x18x128xbf16> to vector<1x16x16x128xbf16>
    %79 = vector.shape_cast %78 : vector<1x16x16x128xbf16> to vector<256x128xbf16>
    %c1024 = arith.constant 1024 : index
    %c0_57 = arith.constant 0 : index
    %80 = vector.load %arg5[%c1024, %c0_57] : memref<1152x128xbf16, #tpu.memory_space<vmem>>, vector<128x128xbf16>
    %cst_58 = arith.constant dense<0.000000e+00> : vector<256x128xf32>
    %81 = tpu.matmul %79, %80, %cst_58 {dimension_numbers = #tpu.dot_dimension_numbers<[1], [0], [0], [1], [0, 0, 1, 1], [], []>} : vector<256x128xbf16>, vector<128x128xbf16>, vector<256x128xf32> -> vector<256x128xf32>
    %82 = arith.addf %77, %81 : vector<256x128xf32>
    %83 = arith.truncf %82 : vector<256x128xf32> to vector<256x128xbf16>
    %84 = vector.shape_cast %83 : vector<256x128xbf16> to vector<1x16x16x128xbf16>
    %c0_59 = arith.constant 0 : index
    %c0_60 = arith.constant 0 : index
    %c0_61 = arith.constant 0 : index
    %c0_62 = arith.constant 0 : index
    %85 = vector.load %arg6[%c0_59, %c0_60, %c0_61, %c0_62] : memref<1x16x16x128xbf16, #tpu.memory_space<vmem>>, vector<1x16x16x128xbf16>
    tpu.vector_store %arg6[%c0_59, %c0_60, %c0_61, %c0_62], %84 {strides = array<i32>} : memref<1x16x16x128xbf16, #tpu.memory_space<vmem>>, vector<1x16x16x128xbf16>,
    %cst_63 = arith.constant dense<0.000000e+00> : vector<128xf32>
    %86 = vector.multi_reduction <add>, %82, %cst_63 [0] : vector<256x128xf32> to vector<128xf32>
    %87 = vector.shape_cast %86 : vector<128xf32> to vector<1x128xf32>
    %88 = arith.mulf %82, %82 : vector<256x128xf32>
    %cst_64 = arith.constant dense<0.000000e+00> : vector<128xf32>
    %89 = vector.multi_reduction <add>, %88, %cst_64 [0] : vector<256x128xf32> to vector<128xf32>
    %90 = vector.shape_cast %89 : vector<128xf32> to vector<1x128xf32>
    %91 = tpu.concatenate %87, %90 in 0 : vector<1x128xf32>, vector<1x128xf32> -> vector<2x128xf32>
    %92 = vector.shape_cast %91 : vector<2x128xf32> to vector<1x2x128xf32>
    %c0_65 = arith.constant 0 : index
    %c0_66 = arith.constant 0 : index
    %c0_67 = arith.constant 0 : index
    %93 = vector.load %arg7[%c0_65, %c0_66, %c0_67] : memref<1x2x128xf32, #tpu.memory_space<vmem>>, vector<1x2x128xf32>
    tpu.vector_store %arg7[%c0_65, %c0_66, %c0_67], %92 {strides = array<i32>} : memref<1x2x128xf32, #tpu.memory_space<vmem>>, vector<1x2x128xf32>,
    return
  }
  func.func @transform_0(%arg0: i32) -> (i32, i32, i32, i32) {
    %c0_i32 = arith.constant 0 : i32
    %c0_i32_0 = arith.constant 0 : i32
    %c0_i32_1 = arith.constant 0 : i32
    %c0_i32_2 = arith.constant 0 : i32
    return %arg0, %c0_i32, %c0_i32_0, %c0_i32_1 : i32, i32, i32, i32
  }
  func.func @transform_1(%arg0: i32) -> (i32, i32) {
    %c0_i32 = arith.constant 0 : i32
    %c0_i32_0 = arith.constant 0 : i32
    %c0_i32_1 = arith.constant 0 : i32
    return %c0_i32, %c0_i32_0 : i32, i32
  }
  func.func @transform_2(%arg0: i32) -> (i32, i32) {
    %c0_i32 = arith.constant 0 : i32
    %c0_i32_0 = arith.constant 0 : i32
    %c0_i32_1 = arith.constant 0 : i32
    return %c0_i32, %c0_i32_0 : i32, i32
  }
  func.func @transform_3(%arg0: i32) -> (i32, i32) {
    %c0_i32 = arith.constant 0 : i32
    %c0_i32_0 = arith.constant 0 : i32
    %c0_i32_1 = arith.constant 0 : i32
    return %c0_i32, %c0_i32_0 : i32, i32
  }
  func.func @transform_4(%arg0: i32) -> (i32, i32) {
    %c0_i32 = arith.constant 0 : i32
    %c0_i32_0 = arith.constant 0 : i32
    %c0_i32_1 = arith.constant 0 : i32
    return %c0_i32, %c0_i32_0 : i32, i32
  }
  func.func @transform_5(%arg0: i32) -> (i32, i32, i32, i32) {
    %c0_i32 = arith.constant 0 : i32
    %c0_i32_0 = arith.constant 0 : i32
    %c0_i32_1 = arith.constant 0 : i32
    %c0_i32_2 = arith.constant 0 : i32
    return %arg0, %c0_i32, %c0_i32_0, %c0_i32_1 : i32, i32, i32, i32
  }
  func.func @transform_6(%arg0: i32) -> (i32, i32, i32) {
    %c0_i32 = arith.constant 0 : i32
    %c0_i32_0 = arith.constant 0 : i32
    %c0_i32_1 = arith.constant 0 : i32
    return %arg0, %c0_i32, %c0_i32_0 : i32, i32, i32
  }
}

module attributes {stable_mosaic.version = 11 : i64} {
  func.func @kernel(%arg0: i32, %arg1: memref<1x18x18x128xbf16, #tpu.memory_space<vmem>>, %arg2: memref<1152x128xbf16, #tpu.memory_space<vmem>>, %arg3: memref<128x128xbf16, #tpu.memory_space<vmem>>, %arg4: memref<1x16x16x128xbf16, #tpu.memory_space<vmem>>, %arg5: memref<1x16x16x128xbf16, #tpu.memory_space<vmem>>, %arg6: memref<1x2x128xf32, #tpu.memory_space<vmem>>, %arg7: memref<1x2x128xf32, #tpu.memory_space<vmem>>) attributes {dimension_semantics = [#tpu.dimension_semantics<parallel>], iteration_bounds = array<i64: 2>, scalar_prefetch = 0 : i64, scratch_operands = 0 : i64, tpu.core_type = #tpu.core_type<tc>, window_params = [{transform_indices = @transform_0, window_bounds = array<i64: 1, 18, 18, 128>}, {pipeline_mode = #tpu.pipeline_mode<synchronous>, transform_indices = @transform_1, window_bounds = array<i64: 1152, 128>}, {pipeline_mode = #tpu.pipeline_mode<synchronous>, transform_indices = @transform_2, window_bounds = array<i64: 128, 128>}, {transform_indices = @transform_3, window_bounds = array<i64: 1, 16, 16, 128>}, {transform_indices = @transform_4, window_bounds = array<i64: 1, 16, 16, 128>}, {transform_indices = @transform_5, window_bounds = array<i64: 1, 2, 128>}, {transform_indices = @transform_6, window_bounds = array<i64: 1, 2, 128>}]} {
    %c0 = arith.constant 0 : index
    %c0_0 = arith.constant 0 : index
    %c0_1 = arith.constant 0 : index
    %c0_2 = arith.constant 0 : index
    %0 = vector.load %arg1[%c0, %c0_0, %c0_1, %c0_2] : memref<1x18x18x128xbf16, #tpu.memory_space<vmem>>, vector<1x18x18x128xbf16>
    %cst = arith.constant 0.000000e+00 : f32
    %1 = vector.broadcast %cst : f32 to vector<256x128xf32>
    %2 = vector.extract_strided_slice %0 {offsets = [0, 0, 0, 0], sizes = [1, 16, 16, 128], strides = [1, 1, 1, 1]} : vector<1x18x18x128xbf16> to vector<1x16x16x128xbf16>
    %3 = vector.shape_cast %2 : vector<1x16x16x128xbf16> to vector<256x128xbf16>
    %c0_3 = arith.constant 0 : index
    %c0_4 = arith.constant 0 : index
    %4 = vector.load %arg2[%c0_3, %c0_4] : memref<1152x128xbf16, #tpu.memory_space<vmem>>, vector<128x128xbf16>
    %cst_5 = arith.constant dense<0.000000e+00> : vector<256x128xf32>
    %5 = tpu.matmul %3, %4, %cst_5 {dimension_numbers = #tpu.dot_dimension_numbers<[1], [0], [0], [1], [0, 0, 1, 1], [], []>} : vector<256x128xbf16>, vector<128x128xbf16>, vector<256x128xf32> -> vector<256x128xf32>
    %6 = arith.addf %1, %5 : vector<256x128xf32>
    %7 = vector.extract_strided_slice %0 {offsets = [0, 0, 1, 0], sizes = [1, 16, 16, 128], strides = [1, 1, 1, 1]} : vector<1x18x18x128xbf16> to vector<1x16x16x128xbf16>
    %8 = vector.shape_cast %7 : vector<1x16x16x128xbf16> to vector<256x128xbf16>
    %c128 = arith.constant 128 : index
    %c0_6 = arith.constant 0 : index
    %9 = vector.load %arg2[%c128, %c0_6] : memref<1152x128xbf16, #tpu.memory_space<vmem>>, vector<128x128xbf16>
    %cst_7 = arith.constant dense<0.000000e+00> : vector<256x128xf32>
    %10 = tpu.matmul %8, %9, %cst_7 {dimension_numbers = #tpu.dot_dimension_numbers<[1], [0], [0], [1], [0, 0, 1, 1], [], []>} : vector<256x128xbf16>, vector<128x128xbf16>, vector<256x128xf32> -> vector<256x128xf32>
    %11 = arith.addf %6, %10 : vector<256x128xf32>
    %12 = vector.extract_strided_slice %0 {offsets = [0, 0, 2, 0], sizes = [1, 16, 16, 128], strides = [1, 1, 1, 1]} : vector<1x18x18x128xbf16> to vector<1x16x16x128xbf16>
    %13 = vector.shape_cast %12 : vector<1x16x16x128xbf16> to vector<256x128xbf16>
    %c256 = arith.constant 256 : index
    %c0_8 = arith.constant 0 : index
    %14 = vector.load %arg2[%c256, %c0_8] : memref<1152x128xbf16, #tpu.memory_space<vmem>>, vector<128x128xbf16>
    %cst_9 = arith.constant dense<0.000000e+00> : vector<256x128xf32>
    %15 = tpu.matmul %13, %14, %cst_9 {dimension_numbers = #tpu.dot_dimension_numbers<[1], [0], [0], [1], [0, 0, 1, 1], [], []>} : vector<256x128xbf16>, vector<128x128xbf16>, vector<256x128xf32> -> vector<256x128xf32>
    %16 = arith.addf %11, %15 : vector<256x128xf32>
    %17 = vector.extract_strided_slice %0 {offsets = [0, 1, 0, 0], sizes = [1, 16, 16, 128], strides = [1, 1, 1, 1]} : vector<1x18x18x128xbf16> to vector<1x16x16x128xbf16>
    %18 = vector.shape_cast %17 : vector<1x16x16x128xbf16> to vector<256x128xbf16>
    %c384 = arith.constant 384 : index
    %c0_10 = arith.constant 0 : index
    %19 = vector.load %arg2[%c384, %c0_10] : memref<1152x128xbf16, #tpu.memory_space<vmem>>, vector<128x128xbf16>
    %cst_11 = arith.constant dense<0.000000e+00> : vector<256x128xf32>
    %20 = tpu.matmul %18, %19, %cst_11 {dimension_numbers = #tpu.dot_dimension_numbers<[1], [0], [0], [1], [0, 0, 1, 1], [], []>} : vector<256x128xbf16>, vector<128x128xbf16>, vector<256x128xf32> -> vector<256x128xf32>
    %21 = arith.addf %16, %20 : vector<256x128xf32>
    %22 = vector.extract_strided_slice %0 {offsets = [0, 1, 1, 0], sizes = [1, 16, 16, 128], strides = [1, 1, 1, 1]} : vector<1x18x18x128xbf16> to vector<1x16x16x128xbf16>
    %23 = vector.shape_cast %22 : vector<1x16x16x128xbf16> to vector<256x128xbf16>
    %c512 = arith.constant 512 : index
    %c0_12 = arith.constant 0 : index
    %24 = vector.load %arg2[%c512, %c0_12] : memref<1152x128xbf16, #tpu.memory_space<vmem>>, vector<128x128xbf16>
    %cst_13 = arith.constant dense<0.000000e+00> : vector<256x128xf32>
    %25 = tpu.matmul %23, %24, %cst_13 {dimension_numbers = #tpu.dot_dimension_numbers<[1], [0], [0], [1], [0, 0, 1, 1], [], []>} : vector<256x128xbf16>, vector<128x128xbf16>, vector<256x128xf32> -> vector<256x128xf32>
    %26 = arith.addf %21, %25 : vector<256x128xf32>
    %27 = vector.extract_strided_slice %0 {offsets = [0, 1, 2, 0], sizes = [1, 16, 16, 128], strides = [1, 1, 1, 1]} : vector<1x18x18x128xbf16> to vector<1x16x16x128xbf16>
    %28 = vector.shape_cast %27 : vector<1x16x16x128xbf16> to vector<256x128xbf16>
    %c640 = arith.constant 640 : index
    %c0_14 = arith.constant 0 : index
    %29 = vector.load %arg2[%c640, %c0_14] : memref<1152x128xbf16, #tpu.memory_space<vmem>>, vector<128x128xbf16>
    %cst_15 = arith.constant dense<0.000000e+00> : vector<256x128xf32>
    %30 = tpu.matmul %28, %29, %cst_15 {dimension_numbers = #tpu.dot_dimension_numbers<[1], [0], [0], [1], [0, 0, 1, 1], [], []>} : vector<256x128xbf16>, vector<128x128xbf16>, vector<256x128xf32> -> vector<256x128xf32>
    %31 = arith.addf %26, %30 : vector<256x128xf32>
    %32 = vector.extract_strided_slice %0 {offsets = [0, 2, 0, 0], sizes = [1, 16, 16, 128], strides = [1, 1, 1, 1]} : vector<1x18x18x128xbf16> to vector<1x16x16x128xbf16>
    %33 = vector.shape_cast %32 : vector<1x16x16x128xbf16> to vector<256x128xbf16>
    %c768 = arith.constant 768 : index
    %c0_16 = arith.constant 0 : index
    %34 = vector.load %arg2[%c768, %c0_16] : memref<1152x128xbf16, #tpu.memory_space<vmem>>, vector<128x128xbf16>
    %cst_17 = arith.constant dense<0.000000e+00> : vector<256x128xf32>
    %35 = tpu.matmul %33, %34, %cst_17 {dimension_numbers = #tpu.dot_dimension_numbers<[1], [0], [0], [1], [0, 0, 1, 1], [], []>} : vector<256x128xbf16>, vector<128x128xbf16>, vector<256x128xf32> -> vector<256x128xf32>
    %36 = arith.addf %31, %35 : vector<256x128xf32>
    %37 = vector.extract_strided_slice %0 {offsets = [0, 2, 1, 0], sizes = [1, 16, 16, 128], strides = [1, 1, 1, 1]} : vector<1x18x18x128xbf16> to vector<1x16x16x128xbf16>
    %38 = vector.shape_cast %37 : vector<1x16x16x128xbf16> to vector<256x128xbf16>
    %c896 = arith.constant 896 : index
    %c0_18 = arith.constant 0 : index
    %39 = vector.load %arg2[%c896, %c0_18] : memref<1152x128xbf16, #tpu.memory_space<vmem>>, vector<128x128xbf16>
    %cst_19 = arith.constant dense<0.000000e+00> : vector<256x128xf32>
    %40 = tpu.matmul %38, %39, %cst_19 {dimension_numbers = #tpu.dot_dimension_numbers<[1], [0], [0], [1], [0, 0, 1, 1], [], []>} : vector<256x128xbf16>, vector<128x128xbf16>, vector<256x128xf32> -> vector<256x128xf32>
    %41 = arith.addf %36, %40 : vector<256x128xf32>
    %42 = vector.extract_strided_slice %0 {offsets = [0, 2, 2, 0], sizes = [1, 16, 16, 128], strides = [1, 1, 1, 1]} : vector<1x18x18x128xbf16> to vector<1x16x16x128xbf16>
    %43 = vector.shape_cast %42 : vector<1x16x16x128xbf16> to vector<256x128xbf16>
    %c1024 = arith.constant 1024 : index
    %c0_20 = arith.constant 0 : index
    %44 = vector.load %arg2[%c1024, %c0_20] : memref<1152x128xbf16, #tpu.memory_space<vmem>>, vector<128x128xbf16>
    %cst_21 = arith.constant dense<0.000000e+00> : vector<256x128xf32>
    %45 = tpu.matmul %43, %44, %cst_21 {dimension_numbers = #tpu.dot_dimension_numbers<[1], [0], [0], [1], [0, 0, 1, 1], [], []>} : vector<256x128xbf16>, vector<128x128xbf16>, vector<256x128xf32> -> vector<256x128xf32>
    %46 = arith.addf %41, %45 : vector<256x128xf32>
    %47 = arith.truncf %46 : vector<256x128xf32> to vector<256x128xbf16>
    %48 = vector.shape_cast %47 : vector<256x128xbf16> to vector<1x16x16x128xbf16>
    %c0_22 = arith.constant 0 : index
    %c0_23 = arith.constant 0 : index
    %c0_24 = arith.constant 0 : index
    %c0_25 = arith.constant 0 : index
    %49 = vector.load %arg4[%c0_22, %c0_23, %c0_24, %c0_25] : memref<1x16x16x128xbf16, #tpu.memory_space<vmem>>, vector<1x16x16x128xbf16>
    tpu.vector_store %arg4[%c0_22, %c0_23, %c0_24, %c0_25], %48 {strides = array<i32>} : memref<1x16x16x128xbf16, #tpu.memory_space<vmem>>, vector<1x16x16x128xbf16>,
    %cst_26 = arith.constant dense<0.000000e+00> : vector<128xf32>
    %50 = vector.multi_reduction <add>, %46, %cst_26 [0] : vector<256x128xf32> to vector<128xf32>
    %51 = vector.shape_cast %50 : vector<128xf32> to vector<1x128xf32>
    %52 = arith.mulf %46, %46 : vector<256x128xf32>
    %cst_27 = arith.constant dense<0.000000e+00> : vector<128xf32>
    %53 = vector.multi_reduction <add>, %52, %cst_27 [0] : vector<256x128xf32> to vector<128xf32>
    %54 = vector.shape_cast %53 : vector<128xf32> to vector<1x128xf32>
    %55 = tpu.concatenate %51, %54 in 0 : vector<1x128xf32>, vector<1x128xf32> -> vector<2x128xf32>
    %56 = vector.shape_cast %55 : vector<2x128xf32> to vector<1x2x128xf32>
    %c0_28 = arith.constant 0 : index
    %c0_29 = arith.constant 0 : index
    %c0_30 = arith.constant 0 : index
    %57 = vector.load %arg6[%c0_28, %c0_29, %c0_30] : memref<1x2x128xf32, #tpu.memory_space<vmem>>, vector<1x2x128xf32>
    tpu.vector_store %arg6[%c0_28, %c0_29, %c0_30], %56 {strides = array<i32>} : memref<1x2x128xf32, #tpu.memory_space<vmem>>, vector<1x2x128xf32>,
    %58 = vector.extract_strided_slice %0 {offsets = [0, 1, 1, 0], sizes = [1, 16, 16, 128], strides = [1, 1, 1, 1]} : vector<1x18x18x128xbf16> to vector<1x16x16x128xbf16>
    %59 = vector.shape_cast %58 : vector<1x16x16x128xbf16> to vector<256x128xbf16>
    %c0_31 = arith.constant 0 : index
    %c0_32 = arith.constant 0 : index
    %60 = vector.load %arg3[%c0_31, %c0_32] : memref<128x128xbf16, #tpu.memory_space<vmem>>, vector<128x128xbf16>
    %cst_33 = arith.constant dense<0.000000e+00> : vector<256x128xf32>
    %61 = tpu.matmul %59, %60, %cst_33 {dimension_numbers = #tpu.dot_dimension_numbers<[1], [0], [0], [1], [0, 0, 1, 1], [], []>} : vector<256x128xbf16>, vector<128x128xbf16>, vector<256x128xf32> -> vector<256x128xf32>
    %62 = arith.truncf %61 : vector<256x128xf32> to vector<256x128xbf16>
    %63 = vector.shape_cast %62 : vector<256x128xbf16> to vector<1x16x16x128xbf16>
    %c0_34 = arith.constant 0 : index
    %c0_35 = arith.constant 0 : index
    %c0_36 = arith.constant 0 : index
    %c0_37 = arith.constant 0 : index
    %64 = vector.load %arg5[%c0_34, %c0_35, %c0_36, %c0_37] : memref<1x16x16x128xbf16, #tpu.memory_space<vmem>>, vector<1x16x16x128xbf16>
    tpu.vector_store %arg5[%c0_34, %c0_35, %c0_36, %c0_37], %63 {strides = array<i32>} : memref<1x16x16x128xbf16, #tpu.memory_space<vmem>>, vector<1x16x16x128xbf16>,
    %cst_38 = arith.constant dense<0.000000e+00> : vector<128xf32>
    %65 = vector.multi_reduction <add>, %61, %cst_38 [0] : vector<256x128xf32> to vector<128xf32>
    %66 = vector.shape_cast %65 : vector<128xf32> to vector<1x128xf32>
    %67 = arith.mulf %61, %61 : vector<256x128xf32>
    %cst_39 = arith.constant dense<0.000000e+00> : vector<128xf32>
    %68 = vector.multi_reduction <add>, %67, %cst_39 [0] : vector<256x128xf32> to vector<128xf32>
    %69 = vector.shape_cast %68 : vector<128xf32> to vector<1x128xf32>
    %70 = tpu.concatenate %66, %69 in 0 : vector<1x128xf32>, vector<1x128xf32> -> vector<2x128xf32>
    %71 = vector.shape_cast %70 : vector<2x128xf32> to vector<1x2x128xf32>
    %c0_40 = arith.constant 0 : index
    %c0_41 = arith.constant 0 : index
    %c0_42 = arith.constant 0 : index
    %72 = vector.load %arg7[%c0_40, %c0_41, %c0_42] : memref<1x2x128xf32, #tpu.memory_space<vmem>>, vector<1x2x128xf32>
    tpu.vector_store %arg7[%c0_40, %c0_41, %c0_42], %71 {strides = array<i32>} : memref<1x2x128xf32, #tpu.memory_space<vmem>>, vector<1x2x128xf32>,
    return
  }
  func.func @transform_0(%arg0: i32) -> (i32, i32, i32, i32) {
    %c0_i32 = arith.constant 0 : i32
    %c0_i32_0 = arith.constant 0 : i32
    %c0_i32_1 = arith.constant 0 : i32
    %c0_i32_2 = arith.constant 0 : i32
    return %arg0, %c0_i32, %c0_i32_0, %c0_i32_1 : i32, i32, i32, i32
  }
  func.func @transform_1(%arg0: i32) -> (i32, i32) {
    %c0_i32 = arith.constant 0 : i32
    %c0_i32_0 = arith.constant 0 : i32
    %c0_i32_1 = arith.constant 0 : i32
    return %c0_i32, %c0_i32_0 : i32, i32
  }
  func.func @transform_2(%arg0: i32) -> (i32, i32) {
    %c0_i32 = arith.constant 0 : i32
    %c0_i32_0 = arith.constant 0 : i32
    %c0_i32_1 = arith.constant 0 : i32
    return %c0_i32, %c0_i32_0 : i32, i32
  }
  func.func @transform_3(%arg0: i32) -> (i32, i32, i32, i32) {
    %c0_i32 = arith.constant 0 : i32
    %c0_i32_0 = arith.constant 0 : i32
    %c0_i32_1 = arith.constant 0 : i32
    %c0_i32_2 = arith.constant 0 : i32
    return %arg0, %c0_i32, %c0_i32_0, %c0_i32_1 : i32, i32, i32, i32
  }
  func.func @transform_4(%arg0: i32) -> (i32, i32, i32, i32) {
    %c0_i32 = arith.constant 0 : i32
    %c0_i32_0 = arith.constant 0 : i32
    %c0_i32_1 = arith.constant 0 : i32
    %c0_i32_2 = arith.constant 0 : i32
    return %arg0, %c0_i32, %c0_i32_0, %c0_i32_1 : i32, i32, i32, i32
  }
  func.func @transform_5(%arg0: i32) -> (i32, i32, i32) {
    %c0_i32 = arith.constant 0 : i32
    %c0_i32_0 = arith.constant 0 : i32
    %c0_i32_1 = arith.constant 0 : i32
    return %arg0, %c0_i32, %c0_i32_0 : i32, i32, i32
  }
  func.func @transform_6(%arg0: i32) -> (i32, i32, i32) {
    %c0_i32 = arith.constant 0 : i32
    %c0_i32_0 = arith.constant 0 : i32
    %c0_i32_1 = arith.constant 0 : i32
    return %arg0, %c0_i32, %c0_i32_0 : i32, i32, i32
  }
}

module attributes {stable_mosaic.version = 11 : i64} {
  func.func @kernel(%arg0: i32, %arg1: memref<1x16x16x128xbf16, #tpu.memory_space<vmem>>, %arg2: memref<1x16x16x128xbf16, #tpu.memory_space<vmem>>, %arg3: memref<2x128xf32, #tpu.memory_space<vmem>>, %arg4: memref<1x128xf32, #tpu.memory_space<vmem>>, %arg5: memref<1x128xf32, #tpu.memory_space<vmem>>, %arg6: memref<2x128xf32, #tpu.memory_space<vmem>>, %arg7: memref<1x128xf32, #tpu.memory_space<vmem>>, %arg8: memref<1x128xf32, #tpu.memory_space<vmem>>, %arg9: memref<1x16x16x128xf32, #tpu.memory_space<vmem>>) attributes {dimension_semantics = [#tpu.dimension_semantics<parallel>], iteration_bounds = array<i64: 2>, scalar_prefetch = 0 : i64, scratch_operands = 0 : i64, tpu.core_type = #tpu.core_type<tc>, window_params = [{transform_indices = @transform_0, window_bounds = array<i64: 1, 16, 16, 128>}, {transform_indices = @transform_1, window_bounds = array<i64: 1, 16, 16, 128>}, {pipeline_mode = #tpu.pipeline_mode<synchronous>, transform_indices = @transform_2, window_bounds = array<i64: 2, 128>}, {pipeline_mode = #tpu.pipeline_mode<synchronous>, transform_indices = @transform_3, window_bounds = array<i64: 1, 128>}, {pipeline_mode = #tpu.pipeline_mode<synchronous>, transform_indices = @transform_4, window_bounds = array<i64: 1, 128>}, {pipeline_mode = #tpu.pipeline_mode<synchronous>, transform_indices = @transform_5, window_bounds = array<i64: 2, 128>}, {pipeline_mode = #tpu.pipeline_mode<synchronous>, transform_indices = @transform_6, window_bounds = array<i64: 1, 128>}, {pipeline_mode = #tpu.pipeline_mode<synchronous>, transform_indices = @transform_7, window_bounds = array<i64: 1, 128>}, {transform_indices = @transform_8, window_bounds = array<i64: 1, 16, 16, 128>}]} {
    %c0 = arith.constant 0 : index
    %c0_0 = arith.constant 0 : index
    %0 = vector.load %arg3[%c0, %c0_0] : memref<2x128xf32, #tpu.memory_space<vmem>>, vector<1x128xf32>
    %cst = arith.constant 0.001953125 : f32
    %1 = vector.broadcast %cst : f32 to vector<1x128xf32>
    %2 = arith.mulf %0, %1 : vector<1x128xf32>
    %c1 = arith.constant 1 : index
    %c0_1 = arith.constant 0 : index
    %3 = vector.load %arg3[%c1, %c0_1] : memref<2x128xf32, #tpu.memory_space<vmem>>, vector<1x128xf32>
    %cst_2 = arith.constant 0.001953125 : f32
    %4 = vector.broadcast %cst_2 : f32 to vector<1x128xf32>
    %5 = arith.mulf %3, %4 : vector<1x128xf32>
    %6 = arith.mulf %2, %2 : vector<1x128xf32>
    %7 = arith.subf %5, %6 : vector<1x128xf32>
    %cst_3 = arith.constant 0.000000e+00 : f32
    %8 = vector.broadcast %cst_3 : f32 to vector<1x128xf32>
    %9 = arith.maximumf %7, %8 : vector<1x128xf32>
    %c0_4 = arith.constant 0 : index
    %c0_5 = arith.constant 0 : index
    %10 = vector.load %arg4[%c0_4, %c0_5] : memref<1x128xf32, #tpu.memory_space<vmem>>, vector<1x128xf32>
    %cst_6 = arith.constant 9.99999974E-6 : f32
    %11 = vector.broadcast %cst_6 : f32 to vector<1x128xf32>
    %12 = arith.addf %9, %11 : vector<1x128xf32>
    %13 = math.rsqrt %12 : vector<1x128xf32>
    %14 = arith.mulf %10, %13 : vector<1x128xf32>
    %c0_7 = arith.constant 0 : index
    %c0_8 = arith.constant 0 : index
    %15 = vector.load %arg5[%c0_7, %c0_8] : memref<1x128xf32, #tpu.memory_space<vmem>>, vector<1x128xf32>
    %16 = arith.mulf %2, %14 : vector<1x128xf32>
    %17 = arith.subf %15, %16 : vector<1x128xf32>
    %c0_9 = arith.constant 0 : index
    %c0_10 = arith.constant 0 : index
    %c0_11 = arith.constant 0 : index
    %c0_12 = arith.constant 0 : index
    %18 = vector.load %arg1[%c0_9, %c0_10, %c0_11, %c0_12] : memref<1x16x16x128xbf16, #tpu.memory_space<vmem>>, vector<1x16x16x128xbf16>
    %19 = arith.extf %18 : vector<1x16x16x128xbf16> to vector<1x16x16x128xf32>
    %20 = vector.shape_cast %19 : vector<1x16x16x128xf32> to vector<256x128xf32>
    %21 = vector.broadcast %14 : vector<1x128xf32> to vector<256x128xf32>
    %22 = arith.mulf %20, %21 : vector<256x128xf32>
    %23 = vector.broadcast %17 : vector<1x128xf32> to vector<256x128xf32>
    %24 = arith.addf %22, %23 : vector<256x128xf32>
    %c0_13 = arith.constant 0 : index
    %c0_14 = arith.constant 0 : index
    %25 = vector.load %arg6[%c0_13, %c0_14] : memref<2x128xf32, #tpu.memory_space<vmem>>, vector<1x128xf32>
    %cst_15 = arith.constant 0.001953125 : f32
    %26 = vector.broadcast %cst_15 : f32 to vector<1x128xf32>
    %27 = arith.mulf %25, %26 : vector<1x128xf32>
    %c1_16 = arith.constant 1 : index
    %c0_17 = arith.constant 0 : index
    %28 = vector.load %arg6[%c1_16, %c0_17] : memref<2x128xf32, #tpu.memory_space<vmem>>, vector<1x128xf32>
    %cst_18 = arith.constant 0.001953125 : f32
    %29 = vector.broadcast %cst_18 : f32 to vector<1x128xf32>
    %30 = arith.mulf %28, %29 : vector<1x128xf32>
    %31 = arith.mulf %27, %27 : vector<1x128xf32>
    %32 = arith.subf %30, %31 : vector<1x128xf32>
    %cst_19 = arith.constant 0.000000e+00 : f32
    %33 = vector.broadcast %cst_19 : f32 to vector<1x128xf32>
    %34 = arith.maximumf %32, %33 : vector<1x128xf32>
    %c0_20 = arith.constant 0 : index
    %c0_21 = arith.constant 0 : index
    %35 = vector.load %arg7[%c0_20, %c0_21] : memref<1x128xf32, #tpu.memory_space<vmem>>, vector<1x128xf32>
    %cst_22 = arith.constant 9.99999974E-6 : f32
    %36 = vector.broadcast %cst_22 : f32 to vector<1x128xf32>
    %37 = arith.addf %34, %36 : vector<1x128xf32>
    %38 = math.rsqrt %37 : vector<1x128xf32>
    %39 = arith.mulf %35, %38 : vector<1x128xf32>
    %c0_23 = arith.constant 0 : index
    %c0_24 = arith.constant 0 : index
    %40 = vector.load %arg8[%c0_23, %c0_24] : memref<1x128xf32, #tpu.memory_space<vmem>>, vector<1x128xf32>
    %41 = arith.mulf %27, %39 : vector<1x128xf32>
    %42 = arith.subf %40, %41 : vector<1x128xf32>
    %c0_25 = arith.constant 0 : index
    %c0_26 = arith.constant 0 : index
    %c0_27 = arith.constant 0 : index
    %c0_28 = arith.constant 0 : index
    %43 = vector.load %arg2[%c0_25, %c0_26, %c0_27, %c0_28] : memref<1x16x16x128xbf16, #tpu.memory_space<vmem>>, vector<1x16x16x128xbf16>
    %44 = arith.extf %43 : vector<1x16x16x128xbf16> to vector<1x16x16x128xf32>
    %45 = vector.shape_cast %44 : vector<1x16x16x128xf32> to vector<256x128xf32>
    %46 = vector.broadcast %39 : vector<1x128xf32> to vector<256x128xf32>
    %47 = arith.mulf %45, %46 : vector<256x128xf32>
    %48 = vector.broadcast %42 : vector<1x128xf32> to vector<256x128xf32>
    %49 = arith.addf %47, %48 : vector<256x128xf32>
    %50 = arith.addf %24, %49 : vector<256x128xf32>
    %cst_29 = arith.constant 0.000000e+00 : f32
    %51 = vector.broadcast %cst_29 : f32 to vector<256x128xf32>
    %52 = arith.maximumf %50, %51 : vector<256x128xf32>
    %53 = vector.shape_cast %52 : vector<256x128xf32> to vector<1x16x16x128xf32>
    %c0_30 = arith.constant 0 : index
    %c0_31 = arith.constant 0 : index
    %c0_32 = arith.constant 0 : index
    %c0_33 = arith.constant 0 : index
    %54 = vector.load %arg9[%c0_30, %c0_31, %c0_32, %c0_33] : memref<1x16x16x128xf32, #tpu.memory_space<vmem>>, vector<1x16x16x128xf32>
    tpu.vector_store %arg9[%c0_30, %c0_31, %c0_32, %c0_33], %53 {strides = array<i32>} : memref<1x16x16x128xf32, #tpu.memory_space<vmem>>, vector<1x16x16x128xf32>,
    return
  }
  func.func @transform_0(%arg0: i32) -> (i32, i32, i32, i32) {
    %c0_i32 = arith.constant 0 : i32
    %c0_i32_0 = arith.constant 0 : i32
    %c0_i32_1 = arith.constant 0 : i32
    %c0_i32_2 = arith.constant 0 : i32
    return %arg0, %c0_i32, %c0_i32_0, %c0_i32_1 : i32, i32, i32, i32
  }
  func.func @transform_1(%arg0: i32) -> (i32, i32, i32, i32) {
    %c0_i32 = arith.constant 0 : i32
    %c0_i32_0 = arith.constant 0 : i32
    %c0_i32_1 = arith.constant 0 : i32
    %c0_i32_2 = arith.constant 0 : i32
    return %arg0, %c0_i32, %c0_i32_0, %c0_i32_1 : i32, i32, i32, i32
  }
  func.func @transform_2(%arg0: i32) -> (i32, i32) {
    %c0_i32 = arith.constant 0 : i32
    %c0_i32_0 = arith.constant 0 : i32
    %c0_i32_1 = arith.constant 0 : i32
    return %c0_i32, %c0_i32_0 : i32, i32
  }
  func.func @transform_3(%arg0: i32) -> (i32, i32) {
    %c0_i32 = arith.constant 0 : i32
    %c0_i32_0 = arith.constant 0 : i32
    %c0_i32_1 = arith.constant 0 : i32
    return %c0_i32, %c0_i32_0 : i32, i32
  }
  func.func @transform_4(%arg0: i32) -> (i32, i32) {
    %c0_i32 = arith.constant 0 : i32
    %c0_i32_0 = arith.constant 0 : i32
    %c0_i32_1 = arith.constant 0 : i32
    return %c0_i32, %c0_i32_0 : i32, i32
  }
  func.func @transform_5(%arg0: i32) -> (i32, i32) {
    %c0_i32 = arith.constant 0 : i32
    %c0_i32_0 = arith.constant 0 : i32
    %c0_i32_1 = arith.constant 0 : i32
    return %c0_i32, %c0_i32_0 : i32, i32
  }
  func.func @transform_6(%arg0: i32) -> (i32, i32) {
    %c0_i32 = arith.constant 0 : i32
    %c0_i32_0 = arith.constant 0 : i32
    %c0_i32_1 = arith.constant 0 : i32
    return %c0_i32, %c0_i32_0 : i32, i32
  }
  func.func @transform_7(%arg0: i32) -> (i32, i32) {
    %c0_i32 = arith.constant 0 : i32
    %c0_i32_0 = arith.constant 0 : i32
    %c0_i32_1 = arith.constant 0 : i32
    return %c0_i32, %c0_i32_0 : i32, i32
  }
  func.func @transform_8(%arg0: i32) -> (i32, i32, i32, i32) {
    %c0_i32 = arith.constant 0 : i32
    %c0_i32_0 = arith.constant 0 : i32
    %c0_i32_1 = arith.constant 0 : i32
    %c0_i32_2 = arith.constant 0 : i32
    return %arg0, %c0_i32, %c0_i32_0, %c0_i32_1 : i32, i32, i32, i32
  }
}

</mosaic_0001>

<bundles_post_ra>
// kernel: resnet_block_2d_forward.5
= control target key start
LH: loop header
LB: loop body
LE: loop exit
PB: predicated region body
PF: predicated region fallthrough
CT: control target
= control target key end

     0   :  { %s1036_s27 = smov 0   ;;  %s1562_s0 = inlined_call_operand.vmem [shape: bf16[2,16,16,128], index: 0, kind: input, shape index: {}]   ;;  %s1563_s1 = inlined_call_operand.vmem [shape: bf16[2,16,16,128], index: 1, kind: input, shape index: {}]   ;;  %s1564_s2 = inlined_call_operand.vmem [shape: f32[2,128], index: 2, kind: input, shape index: {}]   ;;  %s1565_s3 = inlined_call_operand.vmem [shape: f32[1,128], index: 3, kind: input, shape index: {}]   ;;  %s1566_s4 = inlined_call_operand.vmem [shape: f32[1,128], index: 4, kind: input, shape index: {}]   ;;  %s1567_s5 = inlined_call_operand.vmem [shape: f32[2,128], index: 5, kind: input, shape index: {}]   ;;  %s1568_s6 = inlined_call_operand.vmem [shape: f32[1,128], index: 6, kind: input, shape index: {}]   ;;  %s1569_s7 = inlined_call_operand.vmem [shape: f32[1,128], index: 7, kind: input, shape index: {}]   ;;  %s1570_s8 = inlined_call_operand.vmem [shape: f32[2,16,16,128], index: 8, kind: output, shape index: {}]  }
   0x1 LB: > { %s797_s28 = sadd.s32 4294967295, %s989_s27   ;;  %p801_p0 = scmp.ge.s32.totalorder %s989_s27, 1  ;;  %s989_s27 = sphi %s1036_s27, %s18_s27  }
   0x2   : > { %p272_p1 = scmp.lt.s32.totalorder %s989_s27, 3 }
   0x4   : > { %p273_p2 = pnand %p801_p0, %p272_p1 }
   0x5   : > { %p311_p3 = scmp.lt.s32.totalorder (!%p273_p2), %s797_s28, 1  ;;  %v326_v0 = vld [vmem:[%s1564_s2] sm:$0x1] (!%p273_p2)  ;;  %v328_v1 = vld [vmem:[%s1564_s2 + $0x1] sm:$0x1] (!%p273_p2)  ;;  %v405_v2 = vlaneseq (!%p273_p2) }
   0x6   : > { %276 = sbr.rel (%p273_p2) target bundleno = 99 (0x63), region = 52  ;;  %v1050_v3 = vmul.f32 (!%p273_p2), 0.001953125, %v326_v0  ;;  %v329_v4 = vmul.f32 (!%p273_p2), 0.001953125, %v328_v1  ;;  %v480_v5 = vld [vmem:[%s1567_s5] sm:$0x1] (!%p273_p2) }
   0x7   : > { %v482_v6 = vld [vmem:[%s1567_s5 + $0x1] sm:$0x1] (!%p273_p2)  ;;  %v406_v8 = vshrl.u32 (!%p273_p2), %v405_v2, 7  ;;  %v1062_v9 = vmul.f32 (!%p273_p2), 0.001953125, %v480_v5  ;;  %v491_v47 = vld [vmem:[%s1569_s7] sm:$0x1] (!%p273_p2) }
   0x8   : > { %v330_v7 = vmul.f32 (!%p273_p2), %v1050_v3, %v1050_v3  ;;  %v483_v10 = vmul.f32 (!%p273_p2), 0.001953125, %v482_v6 }
   0x9   : > { %v484_v12 = vmul.f32 (!%p273_p2), %v1062_v9, %v1062_v9  ;;  %v1087_v18 = vsub.s32 (!%p273_p2), 0, %v406_v8 }
   0xa   : > { %v331_v11 = vsub.f32 (!%p273_p2), %v329_v4, %v330_v7  ;;  %v487_v4 = vld [vmem:[%s1568_s6] sm:$0x1] (!%p273_p2) }
   0xb   : > { %v485_v19 = vsub.f32 (!%p273_p2), %v483_v10, %v484_v12  ;;  %v337_v12 = vld [vmem:[%s1566_s4] sm:$0x1] (!%p273_p2) }
   0xc   : > { %v332_v16 = vmax.f32 (!%p273_p2), %v331_v11, 0.0 }
   0xd   : > { %s1617_s28 = smov (!%p311_p3, %s797_s28), 1  ;;  %v486_v29 = vmax.f32 %v485_v19, 0.0  ;;  %v333_v19 = vld [vmem:[%s1565_s3] sm:$0x1] }
   0xe   : > { %s810_s15 = sshll.u32 %s1617_s28, 7  ;;  %v334_v28 = vadd.f32 1e-05, %v332_v16  ;;  %s812_s10 = sshll.u32 %s1617_s28, 8 }
   0xf   : > { %s1068_s18 = scalar_lea.vmem %s1562_s0, %s810_s15  ;;  %s1073_s21 = scalar_lea.vmem %s1563_s1, %s810_s15  ;;  %v488_v39 = vadd.f32 1e-05, %v486_v29 }
  0x10   : > { %v1078_v13 = vld [vmem:[%s1068_s18] sm:$0xff]   ;;  %v1084_v15 = vld [vmem:[%s1068_s18 + $0x8] sm:$0xff]   ;;  %v1093_v21 = vld [vmem:[%s1068_s18 + $0x10] sm:$0xff]   ;;  %979 = vrsqrt.f32 %v334_v28  ;;  %s1323_s12 = scalar_lea.vmem %s1570_s8, %s812_s10 }
  0x11   : > { %v1081_v14 = vld [vmem:[%s1073_s21] sm:$0xff]   ;;  %v815_v17 = vunpack.c.l.bf16 %v1078_v13  ;;  %v1090_v20 = vld [vmem:[%s1073_s21 + $0x8] sm:$0xff]   ;;  %v1096_v22 = vld [vmem:[%s1073_s21 + $0x10] sm:$0xff]   ;;  %v816_v24 = vunpack.c.h.bf16 %v1078_v13  ;;  %v819_v26 = vunpack.c.l.bf16 %v1084_v15  ;;  %v820_v31 = vunpack.c.h.bf16 %v1084_v15 }
  0x12   : > { %v879_v23 = vunpack.c.l.bf16 %v1081_v14  ;;  %v880_v25 = vunpack.c.h.bf16 %v1081_v14  ;;  %v1103_v27 = vld [vmem:[%s1068_s18 + $0x18] sm:$0xff]   ;;  %v883_v30 = vunpack.c.l.bf16 %v1090_v20  ;;  %v1111_v33 = vld [vmem:[%s1068_s18 + $0x20] sm:$0xff]   ;;  %v884_v34 = vunpack.c.h.bf16 %v1090_v20  ;;  %v1123_v42 = vld [vmem:[%s1068_s18 + $0x28] sm:$0xff]  }
  0x13   : > { %v1108_v32 = vld [vmem:[%s1073_s21 + $0x18] sm:$0xff]   ;;  %v823_v35 = vunpack.c.l.bf16 %v1093_v21  ;;  %v887_v36 = vunpack.c.l.bf16 %v1096_v22  ;;  %v824_v37 = vunpack.c.h.bf16 %v1093_v21  ;;  %v1118_v38 = vld [vmem:[%s1073_s21 + $0x20] sm:$0xff]   ;;  %v888_v40 = vunpack.c.h.bf16 %v1096_v22  ;;  %v1126_v43 = vld [vmem:[%s1073_s21 + $0x28] sm:$0xff]  }
  0x14   : > { %v827_v41 = vunpack.c.l.bf16 %v1103_v27  ;;  %v891_v44 = vunpack.c.l.bf16 %v1108_v32  ;;  %v828_v45 = vunpack.c.h.bf16 %v1103_v27  ;;  %v1133_v48 = vld [vmem:[%s1068_s18 + $0x30] sm:$0xff]   ;;  %981 = vrsqrt.f32 %v488_v39  ;;  %v1142_v53 = vld [vmem:[%s1068_s18 + $0x38] sm:$0xff]   ;;  %v1152_v59 = vld [vmem:[%s1068_s18 + $0x40] sm:$0xff]  }
  0x15   : > { %v1136_v49 = vld [vmem:[%s1073_s21 + $0x30] sm:$0xff]   ;;  %v1145_v54 = vld [vmem:[%s1073_s21 + $0x38] sm:$0xff]   ;;  %v1155_v60 = vld [vmem:[%s1073_s21 + $0x40] sm:$0xff]   ;;  %v1574_v27 = vunpack.c.h.bf16 %v1111_v33 }
  0x16   : > { %v1162_v1 = vld [vmem:[%s1068_s18 + $0x48] sm:$0xff]   ;;  %v1172_v8 = vld [vmem:[%s1068_s18 + $0x50] sm:$0xff]   ;;  %v1182_v28 = vld [vmem:[%s1068_s18 + $0x58] sm:$0xff]  }
  0x17   : > { %v1165_v2 = vld [vmem:[%s1073_s21 + $0x48] sm:$0xff]   ;;  %v1175_v10 = vld [vmem:[%s1073_s21 + $0x50] sm:$0xff]   ;;  %v1185_v29 = vld [vmem:[%s1073_s21 + $0x58] sm:$0xff]  }
  0x18   : > { %v1192_v11 = vld [vmem:[%s1068_s18 + $0x60] sm:$0xff]   ;;  %v1205_v6 = vld [vmem:[%s1068_s18 + $0x68] sm:$0xff]   ;;  %v1215_v61 = vld [vmem:[%s1068_s18 + $0x70] sm:$0xff]  }
  0x19   : > { %v1195_v16 = vld [vmem:[%s1073_s21 + $0x60] sm:$0xff]   ;;  %v1208_v0 = vld [vmem:[%s1073_s21 + $0x68] sm:$0xff]   ;;  %v1218_v39 = vld [vmem:[%s1073_s21 + $0x70] sm:$0xff]  }
  0x1a   : > { %v980_v7 = vpop.eup %979  ;;  %v1231_v52 = vld [vmem:[%s1068_s18 + $0x78] sm:$0xff]   ;;  %v936_v58 = vunpack.c.h.bf16 %v1218_v39 }
  0x1b   : > { %v336_v62 = vmul.f32 %v980_v7, %v333_v19  ;;  %v1234_v51 = vld [vmem:[%s1073_s21 + $0x78] sm:$0xff]   ;;  %v875_v63 = vunpack.c.l.bf16 %v1231_v52 }
  0x1c   : > { %v939_v57 = vunpack.c.l.bf16 %v1234_v51  ;;  %v940_v19 = vunpack.c.h.bf16 %v1234_v51 }
  0x1d   : > { %v338_v56 = vmul.f32 %v336_v62, %v1050_v3  ;;  %v1245_v55 = vrot.slane %v336_v62, %v1087_v18 }
  0x1e   : > { %v982_v50 = vpop.eup %981 }
  0x1f   : > { %v490_v5 = vmul.f32 %v982_v50, %v487_v4  ;;  %v339_v46 = vsub.f32 %v337_v12, %v338_v56  ;;  %v410_v3 = vmul.f32 %v815_v17, %v1245_v55  ;;  %v411_v4 = vmul.f32 %v816_v24, %v1245_v55 }
  0x20   : > { %v412_v7 = vmul.f32 %v819_v26, %v1245_v55  ;;  %v413_v56 = vmul.f32 %v820_v31, %v1245_v55  ;;  %v414_v17 = vmul.f32 %v823_v35, %v1245_v55 }
  0x21   : > { %v492_v50 = vmul.f32 %v490_v5, %v1062_v9  ;;  %v1260_v62 = vrot.slane %v490_v5, %v1087_v18  ;;  %v1275_v9 = vrot.slane %v339_v46, %v1087_v18 }
  0x23   : > { %v493_v5 = vsub.f32 %v491_v47, %v492_v50  ;;  %v564_v13 = vmul.f32 %v879_v23, %v1260_v62  ;;  %v565_v24 = vmul.f32 %v880_v25, %v1260_v62  ;;  %v566_v15 = vmul.f32 %v883_v30, %v1260_v62 }
  0x24   : > { %v567_v26 = vmul.f32 %v884_v34, %v1260_v62  ;;  %v568_v31 = vmul.f32 %v887_v36, %v1260_v62  ;;  %v415_v23 = vmul.f32 %v824_v37, %v1245_v55  ;;  %v448_v35 = vadd.f32 %v1275_v9, %v410_v3 }
  0x25   : > { %v1297_v14 = vrot.slane %v493_v5, %v1087_v18  ;;  %v449_v25 = vadd.f32 %v1275_v9, %v411_v4  ;;  %v450_v30 = vadd.f32 %v1275_v9, %v412_v7  ;;  %v451_v20 = vadd.f32 %v1275_v9, %v413_v56 }
  0x26   : > { %v452_v34 = vadd.f32 %v1275_v9, %v414_v17  ;;  %v453_v46 = vadd.f32 %v1275_v9, %v415_v23  ;;  %v569_v21 = vmul.f32 %v888_v40, %v1260_v62  ;;  %v416_v3 = vmul.f32 %v827_v41, %v1245_v55 }
  0x27   : > { %v602_v36 = vadd.f32 %v1297_v14, %v564_v13  ;;  %v603_v18 = vadd.f32 %v1297_v14, %v565_v24  ;;  %v604_v37 = vadd.f32 %v1297_v14, %v566_v15  ;;  %v605_v47 = vadd.f32 %v1297_v14, %v567_v26 }
  0x28   : > { %v606_v12 = vadd.f32 %v1297_v14, %v568_v31  ;;  %v607_v7 = vadd.f32 %v1297_v14, %v569_v21  ;;  %v570_v22 = vmul.f32 %v891_v44, %v1260_v62  ;;  %v454_v41 = vadd.f32 %v1275_v9, %v416_v3 }
  0x29   : > { %v634_v40 = vadd.f32 %v602_v36, %v448_v35  ;;  %v635_v50 = vadd.f32 %v603_v18, %v449_v25  ;;  %v636_v4 = vadd.f32 %v604_v37, %v450_v30  ;;  %v637_v56 = vadd.f32 %v605_v47, %v451_v20 }
  0x2a   : > { %v638_v17 = vadd.f32 %v606_v12, %v452_v34  ;;  %v639_v5 = vadd.f32 %v607_v7, %v453_v46  ;;  %v608_v13 = vadd.f32 %v1297_v14, %v570_v22  ;;  %v417_v25 = vmul.f32 %v828_v45, %v1245_v55 }
  0x2b   : > { %v666_v44 = vmax.f32 %v634_v40, 0.0  ;;  %v667_v24 = vmax.f32 %v635_v50, 0.0  ;;  %v668_v15 = vmax.f32 %v636_v4, 0.0  ;;  %v669_v26 = vmax.f32 %v637_v56, 0.0 }
  0x2c   : > { %v670_v31 = vmax.f32 %v638_v17, 0.0  ;;  %v671_v23 = vmax.f32 %v639_v5, 0.0  ;;  %v640_v35 = vadd.f32 %v608_v13, %v454_v41  ;;  %v1571_v30 = vunpack.c.h.bf16 %v1108_v32 }
  0x2d   : > { %698 = vst [vmem:[%s1323_s12] sm:$0xff] %v666_v44  ;;  %699 = vst [vmem:[%s1323_s12 + $0x8] sm:$0xff] %v667_v24  ;;  %v1572_v34 = vunpack.c.l.bf16 %v1111_v33  ;;  %v1573_v21 = vunpack.c.l.bf16 %v1118_v38  ;;  %v419_v45 = vmul.f32 %v1574_v27, %v1245_v55  ;;  %v455_v37 = vadd.f32 %v1275_v9, %v417_v25 }
  0x2e   : > { %700 = vst [vmem:[%s1323_s12 + $0x10] sm:$0xff] %v668_v15  ;;  %701 = vst [vmem:[%s1323_s12 + $0x18] sm:$0xff] %v669_v26  ;;  %v571_v20 = vmul.f32 %v1571_v30, %v1260_v62  ;;  %v672_v18 = vmax.f32 %v640_v35, 0.0  ;;  %v1575_v32 = vunpack.c.h.bf16 %v1118_v38  ;;  %v1576_v12 = vunpack.c.l.bf16 %v1123_v42 }
  0x2f   : > { %v418_v46 = vmul.f32 %v1572_v34, %v1245_v55  ;;  %v572_v36 = vmul.f32 %v1573_v21, %v1260_v62  ;;  %702 = vst [vmem:[%s1323_s12 + $0x20] sm:$0xff] %v670_v31  ;;  %703 = vst [vmem:[%s1323_s12 + $0x28] sm:$0xff] %v671_v23  ;;  %v457_v40 = vadd.f32 %v1275_v9, %v419_v45  ;;  %v1577_v38 = vunpack.c.l.bf16 %v1126_v43 }
  0x30   : > { %v573_v47 = vmul.f32 %v1575_v32, %v1260_v62  ;;  %v420_v7 = vmul.f32 %v1576_v12, %v1245_v55  ;;  %v609_v3 = vadd.f32 %v1297_v14, %v571_v20  ;;  %704 = vst [vmem:[%s1323_s12 + $0x30] sm:$0xff] %v672_v18  ;;  %v1578_v17 = vunpack.c.h.bf16 %v1123_v42 }
  0x31   : > { %v456_v22 = vadd.f32 %v1275_v9, %v418_v46  ;;  %v610_v33 = vadd.f32 %v1297_v14, %v572_v36  ;;  %v574_v56 = vmul.f32 %v1577_v38, %v1260_v62  ;;  %v1579_v44 = vunpack.c.h.bf16 %v1126_v43 }
  0x32   : > { %v611_v50 = vadd.f32 %v1297_v14, %v573_v47  ;;  %v458_v4 = vadd.f32 %v1275_v9, %v420_v7  ;;  %v421_v5 = vmul.f32 %v1578_v17, %v1245_v55  ;;  %v641_v41 = vadd.f32 %v609_v3, %v455_v37 }
  0x33   : > { %v642_v13 = vadd.f32 %v610_v33, %v456_v22  ;;  %v575_v24 = vmul.f32 %v1579_v44, %v1260_v62  ;;  %v1580_v15 = vunpack.c.l.bf16 %v1133_v48  ;;  %v612_v23 = vadd.f32 %v1297_v14, %v574_v56 }
  0x34   : > { %v643_v31 = vadd.f32 %v611_v50, %v457_v40  ;;  %v459_v35 = vadd.f32 %v1275_v9, %v421_v5  ;;  %v1581_v42 = vunpack.c.l.bf16 %v1136_v49  ;;  %v673_v30 = vmax.f32 %v641_v41, 0.0 }
  0x35   : > { %v422_v26 = vmul.f32 %v1580_v15, %v1245_v55  ;;  %v674_v20 = vmax.f32 %v642_v13, 0.0  ;;  %v613_v43 = vadd.f32 %v1297_v14, %v575_v24  ;;  %v644_v21 = vadd.f32 %v612_v23, %v458_v4 }
  0x36   : > { %v576_v25 = vmul.f32 %v1581_v42, %v1260_v62  ;;  %v675_v46 = vmax.f32 %v643_v31, 0.0  ;;  %v1582_v27 = vunpack.c.h.bf16 %v1133_v48  ;;  %705 = vst [vmem:[%s1323_s12 + $0x38] sm:$0xff] %v673_v30  ;;  %v1583_v37 = vunpack.c.h.bf16 %v1136_v49 }
  0x37   : > { %v460_v34 = vadd.f32 %v1275_v9, %v422_v26  ;;  %706 = vst [vmem:[%s1323_s12 + $0x40] sm:$0xff] %v674_v20  ;;  %v645_v18 = vadd.f32 %v613_v43, %v459_v35  ;;  %v1584_v47 = vunpack.c.l.bf16 %v1142_v53  ;;  %v1585_v7 = vunpack.c.l.bf16 %v1145_v54 }
  0x38   : > { %v614_v36 = vadd.f32 %v1297_v14, %v576_v25  ;;  %v423_v45 = vmul.f32 %v1582_v27, %v1245_v55  ;;  %v577_v32 = vmul.f32 %v1583_v37, %v1260_v62  ;;  %707 = vst [vmem:[%s1323_s12 + $0x48] sm:$0xff] %v675_v46  ;;  %v676_v48 = vmax.f32 %v644_v21, 0.0 }
  0x39   : > { %v424_v12 = vmul.f32 %v1584_v47, %v1245_v55  ;;  %v578_v3 = vmul.f32 %v1585_v7, %v1260_v62  ;;  %v1586_v40 = vunpack.c.h.bf16 %v1142_v53  ;;  %v677_v50 = vmax.f32 %v645_v18, 0.0 }
  0x3a   : > { %v646_v22 = vadd.f32 %v614_v36, %v460_v34  ;;  %v461_v33 = vadd.f32 %v1275_v9, %v423_v45  ;;  %v615_v4 = vadd.f32 %v1297_v14, %v577_v32  ;;  %708 = vst [vmem:[%s1323_s12 + $0x50] sm:$0xff] %v676_v48  ;;  %v1587_v41 = vunpack.c.h.bf16 %v1145_v54 }
  0x3b   : > { %v425_v49 = vmul.f32 %v1586_v40, %v1245_v55  ;;  %v462_v38 = vadd.f32 %v1275_v9, %v424_v12  ;;  %v616_v56 = vadd.f32 %v1297_v14, %v578_v3  ;;  %v1588_v53 = vunpack.c.l.bf16 %v1152_v59  ;;  %709 = vst [vmem:[%s1323_s12 + $0x58] sm:$0xff] %v677_v50 }
  0x3c   : > { %v678_v17 = vmax.f32 %v646_v22, 0.0  ;;  %v579_v13 = vmul.f32 %v1587_v41, %v1260_v62  ;;  %v647_v24 = vadd.f32 %v615_v4, %v461_v33  ;;  %v1589_v26 = vunpack.c.l.bf16 %v1155_v60 }
  0x3d   : > { %v463_v5 = vadd.f32 %v1275_v9, %v425_v49  ;;  %v426_v44 = vmul.f32 %v1588_v53, %v1245_v55  ;;  %v648_v15 = vadd.f32 %v616_v56, %v462_v38  ;;  %v1590_v23 = vunpack.c.h.bf16 %v1152_v59 }
  0x3e   : > { %v580_v31 = vmul.f32 %v1589_v26, %v1260_v62  ;;  %710 = vst [vmem:[%s1323_s12 + $0x60] sm:$0xff] %v678_v17  ;;  %v617_v54 = vadd.f32 %v1297_v14, %v579_v13  ;;  %v1591_v25 = vunpack.c.h.bf16 %v1155_v60  ;;  %v1592_v20 = vunpack.c.l.bf16 %v1162_v1 }
  0x3f   : > { %v427_v35 = vmul.f32 %v1590_v23, %v1245_v55  ;;  %v464_v42 = vadd.f32 %v1275_v9, %v426_v44  ;;  %v679_v34 = vmax.f32 %v647_v24, 0.0  ;;  %v680_v46 = vmax.f32 %v648_v15, 0.0 }
  0x40   : > { %v581_v30 = vmul.f32 %v1591_v25, %v1260_v62  ;;  %v428_v43 = vmul.f32 %v1592_v20, %v1245_v55  ;;  %v618_v21 = vadd.f32 %v1297_v14, %v580_v31  ;;  %v649_v36 = vadd.f32 %v617_v54, %v463_v5 }
  0x41   : > { %v465_v59 = vadd.f32 %v1275_v9, %v427_v35  ;;  %v1593_v18 = vunpack.c.l.bf16 %v1165_v2  ;;  %711 = vst [vmem:[%s1323_s12 + $0x68] sm:$0xff] %v679_v34  ;;  %712 = vst [vmem:[%s1323_s12 + $0x70] sm:$0xff] %v680_v46  ;;  %v1594_v32 = vunpack.c.h.bf16 %v1162_v1  ;;  %v1595_v12 = vunpack.c.h.bf16 %v1165_v2 }
  0x42   : > { %v619_v27 = vadd.f32 %v1297_v14, %v581_v30  ;;  %v466_v45 = vadd.f32 %v1275_v9, %v428_v43  ;;  %v650_v37 = vadd.f32 %v618_v21, %v464_v42  ;;  %v1596_v3 = vunpack.c.l.bf16 %v1172_v8 }
  0x43   : > { %v582_v60 = vmul.f32 %v1593_v18, %v1260_v62  ;;  %v429_v47 = vmul.f32 %v1594_v32, %v1245_v55  ;;  %v583_v7 = vmul.f32 %v1595_v12, %v1260_v62  ;;  %v681_v22 = vmax.f32 %v649_v36, 0.0 }
  0x44   : > { %v430_v48 = vmul.f32 %v1596_v3, %v1245_v55  ;;  %v651_v33 = vadd.f32 %v619_v27, %v465_v59  ;;  %v1597_v49 = vunpack.c.l.bf16 %v1175_v10  ;;  %v682_v1 = vmax.f32 %v650_v37, 0.0 }
  0x45   : > { %v620_v40 = vadd.f32 %v1297_v14, %v582_v60  ;;  %v467_v4 = vadd.f32 %v1275_v9, %v429_v47  ;;  %v621_v2 = vadd.f32 %v1297_v14, %v583_v7  ;;  %713 = vst [vmem:[%s1323_s12 + $0x78] sm:$0xff] %v681_v22  ;;  %v1598_v41 = vunpack.c.h.bf16 %v1172_v8 }
  0x46   : > { %v584_v50 = vmul.f32 %v1597_v49, %v1260_v62  ;;  %v468_v38 = vadd.f32 %v1275_v9, %v430_v48  ;;  %v683_v56 = vmax.f32 %v651_v33, 0.0  ;;  %714 = vst [vmem:[%s1323_s12 + $0x80] sm:$0xff] %v682_v1  ;;  %v1599_v44 = vunpack.c.h.bf16 %v1175_v10 }
  0x47   : > { %v652_v17 = vadd.f32 %v620_v40, %v466_v45  ;;  %v431_v13 = vmul.f32 %v1598_v41, %v1245_v55  ;;  %v653_v53 = vadd.f32 %v621_v2, %v467_v4  ;;  %v1600_v15 = vunpack.c.l.bf16 %v1182_v28 }
  0x48   : > { %v622_v5 = vadd.f32 %v1297_v14, %v584_v50  ;;  %v585_v24 = vmul.f32 %v1599_v44, %v1260_v62  ;;  %v1601_v31 = vunpack.c.l.bf16 %v1185_v29  ;;  %715 = vst [vmem:[%s1323_s12 + $0x88] sm:$0xff] %v683_v56  ;;  %v1602_v42 = vunpack.c.h.bf16 %v1182_v28 }
  0x49   : > { %v432_v26 = vmul.f32 %v1600_v15, %v1245_v55  ;;  %v684_v35 = vmax.f32 %v652_v17, 0.0  ;;  %v469_v54 = vadd.f32 %v1275_v9, %v431_v13  ;;  %v685_v25 = vmax.f32 %v653_v53, 0.0 }
  0x4a   : > { %v586_v23 = vmul.f32 %v1601_v31, %v1260_v62  ;;  %v654_v8 = vadd.f32 %v622_v5, %v468_v38  ;;  %v433_v10 = vmul.f32 %v1602_v42, %v1245_v55  ;;  %v623_v30 = vadd.f32 %v1297_v14, %v585_v24 }
  0x4b   : > { %v470_v20 = vadd.f32 %v1275_v9, %v432_v26  ;;  %716 = vst [vmem:[%s1323_s12 + $0x90] sm:$0xff] %v684_v35  ;;  %v1603_v21 = vunpack.c.h.bf16 %v1185_v29  ;;  %v1604_v28 = vunpack.c.l.bf16 %v1192_v11  ;;  %717 = vst [vmem:[%s1323_s12 + $0x98] sm:$0xff] %v685_v25  ;;  %v1605_v18 = vunpack.c.l.bf16 %v1195_v16 }
  0x4c   : > { %v624_v43 = vadd.f32 %v1297_v14, %v586_v23  ;;  %v686_v34 = vmax.f32 %v654_v8, 0.0  ;;  %v471_v46 = vadd.f32 %v1275_v9, %v433_v10  ;;  %v655_v27 = vadd.f32 %v623_v30, %v469_v54 }
  0x4d   : > { %v587_v59 = vmul.f32 %v1603_v21, %v1260_v62  ;;  %v434_v36 = vmul.f32 %v1604_v28, %v1245_v55  ;;  %v588_v60 = vmul.f32 %v1605_v18, %v1260_v62  ;;  %v1606_v37 = vunpack.c.h.bf16 %v1192_v11 }
  0x4e   : > { %v656_v45 = vadd.f32 %v624_v43, %v470_v20  ;;  %718 = vst [vmem:[%s1323_s12 + $0xa0] sm:$0xff] %v686_v34  ;;  %v1607_v12 = vunpack.c.h.bf16 %v1195_v16  ;;  %v1608_v3 = vunpack.c.l.bf16 %v1205_v6  ;;  %v687_v22 = vmax.f32 %v655_v27, 0.0 }
  0x4f   : > { %v435_v32 = vmul.f32 %v1606_v37, %v1245_v55  ;;  %v625_v29 = vadd.f32 %v1297_v14, %v587_v59  ;;  %v472_v47 = vadd.f32 %v1275_v9, %v434_v36  ;;  %v626_v40 = vadd.f32 %v1297_v14, %v588_v60 }
  0x50   : > { %v589_v7 = vmul.f32 %v1607_v12, %v1260_v62  ;;  %v436_v48 = vmul.f32 %v1608_v3, %v1245_v55  ;;  %v688_v33 = vmax.f32 %v656_v45, 0.0  ;;  %v1609_v4 = vunpack.c.l.bf16 %v1208_v0  ;;  %719 = vst [vmem:[%s1323_s12 + $0xa8] sm:$0xff] %v687_v22 }
  0x51   : > { %v473_v11 = vadd.f32 %v1275_v9, %v435_v32  ;;  %v657_v49 = vadd.f32 %v625_v29, %v471_v46  ;;  %v658_v2 = vadd.f32 %v626_v40, %v472_v47  ;;  %v1610_v38 = vunpack.c.h.bf16 %v1205_v6 }
  0x52   : > { %v627_v50 = vadd.f32 %v1297_v14, %v589_v7  ;;  %v474_v1 = vadd.f32 %v1275_v9, %v436_v48  ;;  %v590_v16 = vmul.f32 %v1609_v4, %v1260_v62  ;;  %720 = vst [vmem:[%s1323_s12 + $0xb0] sm:$0xff] %v688_v33  ;;  %v1611_v17 = vunpack.c.h.bf16 %v1208_v0 }
  0x53   : > { %v437_v56 = vmul.f32 %v1610_v38, %v1245_v55  ;;  %v1612_v41 = vunpack.c.l.bf16 %v1215_v61  ;;  %v689_v53 = vmax.f32 %v657_v49, 0.0  ;;  %v1613_v15 = vunpack.c.l.bf16 %v1218_v39 }
  0x54   : > { %v591_v5 = vmul.f32 %v1611_v17, %v1260_v62  ;;  %v659_v44 = vadd.f32 %v627_v50, %v473_v11  ;;  %v628_v24 = vadd.f32 %v1297_v14, %v590_v16  ;;  %v690_v6 = vmax.f32 %v658_v2, 0.0 }
  0x55   : > { %v438_v13 = vmul.f32 %v1612_v41, %v1245_v55  ;;  %v592_v26 = vmul.f32 %v1613_v15, %v1260_v62  ;;  %v475_v31 = vadd.f32 %v1275_v9, %v437_v56  ;;  %721 = vst [vmem:[%s1323_s12 + $0xb8] sm:$0xff] %v689_v53  ;;  %v1614_v42 = vunpack.c.h.bf16 %v1215_v61 }
  0x56   : > { %v629_v0 = vadd.f32 %v1297_v14, %v591_v5  ;;  %v691_v35 = vmax.f32 %v659_v44, 0.0  ;;  %v660_v8 = vadd.f32 %v628_v24, %v474_v1  ;;  %722 = vst [vmem:[%s1323_s12 + $0xc0] sm:$0xff] %v690_v6  ;;  %v593_v30 = vmul.f32 %v936_v58, %v1260_v62 }
  0x57   : > { %v476_v23 = vadd.f32 %v1275_v9, %v438_v13  ;;  %v630_v54 = vadd.f32 %v1297_v14, %v592_v26  ;;  %v439_v10 = vmul.f32 %v1614_v42, %v1245_v55  ;;  %v440_v20 = vmul.f32 %v875_v63, %v1245_v55 }
  0x58   : > { %v661_v25 = vadd.f32 %v629_v0, %v475_v31  ;;  %v594_v43 = vmul.f32 %v939_v57, %v1260_v62  ;;  %723 = vst [vmem:[%s1323_s12 + $0xc8] sm:$0xff] %v691_v35  ;;  %v692_v61 = vmax.f32 %v660_v8, 0.0  ;;  %v1615_v21 = vunpack.c.h.bf16 %v1231_v52 }
  0x59   : > { %v662_v34 = vadd.f32 %v630_v54, %v476_v23  ;;  %v477_v46 = vadd.f32 %v1275_v9, %v439_v10  ;;  %v631_v59 = vadd.f32 %v1297_v14, %v593_v30  ;;  %v478_v63 = vadd.f32 %v1275_v9, %v440_v20 }
  0x5a   : > { %v441_v39 = vmul.f32 %v1615_v21, %v1245_v55  ;;  %v693_v58 = vmax.f32 %v661_v25, 0.0  ;;  %v632_v28 = vadd.f32 %v1297_v14, %v594_v43  ;;  %724 = vst [vmem:[%s1323_s12 + $0xd0] sm:$0xff] %v692_v61  ;;  %v595_v27 = vmul.f32 %v940_v19, %v1260_v62 }
  0x5b   : > { %v694_v57 = vmax.f32 %v662_v34, 0.0  ;;  %v663_v52 = vadd.f32 %v631_v59, %v477_v46 }
  0x5c   : > { %v479_v36 = vadd.f32 %v1275_v9, %v441_v39  ;;  %725 = vst [vmem:[%s1323_s12 + $0xd8] sm:$0xff] %v693_v58  ;;  %v664_v55 = vadd.f32 %v632_v28, %v478_v63  ;;  %v633_v45 = vadd.f32 %v1297_v14, %v595_v27 }
  0x5d   : > { %726 = vst [vmem:[%s1323_s12 + $0xe0] sm:$0xff] %v694_v57  ;;  %v695_v18 = vmax.f32 %v663_v52, 0.0 }
  0x5e   : > { %v696_v60 = vmax.f32 %v664_v55, 0.0  ;;  %v665_v37 = vadd.f32 %v633_v45, %v479_v36 }
  0x5f   : > { %727 = vst [vmem:[%s1323_s12 + $0xe8] sm:$0xff] %v695_v18 }
  0x60   : > { %728 = vst [vmem:[%s1323_s12 + $0xf0] sm:$0xff] %v696_v60  ;;  %v697_v32 = vmax.f32 %v665_v37, 0.0 }
  0x62   : > { %729 = vst [vmem:[%s1323_s12 + $0xf8] sm:$0xff] %v697_v32 }
  0x63 PF: > { %s18_s27 = sadd.s32 1, %s989_s27  }
  0x64   : > { %p15_p4 = scmp.ge.s32.totalorder %s18_s27, 4  }
  0x66   :  { %17 = sbr.rel (!%p15_p4) target bundleno = 1 (0x1), region = 85 }

// kernel: resnet_block_2d_forward.3
= control target key start
LH: loop header
LB: loop body
LE: loop exit
PB: predicated region body
PF: predicated region fallthrough
CT: control target
= control target key end

     0   :  { %s5950_s21 = smov 0   ;;  %s7097_s0 = inlined_call_operand.vmem [shape: bf16[2,18,18,128], index: 0, kind: input, shape index: {}]   ;;  %s7098_s1 = inlined_call_operand.vmem [shape: bf16[1152,128], index: 1, kind: input, shape index: {}]   ;;  %s7099_s2 = inlined_call_operand.vmem [shape: bf16[128,128], index: 2, kind: input, shape index: {}]   ;;  %s7100_s3 = inlined_call_operand.vmem [shape: bf16[2,16,16,128], index: 3, kind: output, shape index: {0}]   ;;  %s7101_s4 = inlined_call_operand.vmem [shape: bf16[2,16,16,128], index: 4, kind: output, shape index: {1}]   ;;  %s7102_s5 = inlined_call_operand.vmem [shape: f32[2,2,128], index: 5, kind: output, shape index: {2}]   ;;  %s7103_s6 = inlined_call_operand.vmem [shape: f32[2,2,128], index: 6, kind: output, shape index: {3}]  }
   0x1 LB: > { %s4335_s22 = sadd.s32 4294967295, %s5913_s21   ;;  %p4339_p0 = scmp.ge.s32.totalorder %s5913_s21, 1  ;;  %s5913_s21 = sphi %s5950_s21, %s17_s21  }
   0x2   : > { %p219_p1 = scmp.lt.s32.totalorder %s5913_s21, 3 }
   0x4   : > { %p220_p2 = pnand %p4339_p0, %p219_p1 }
   0x6   : > { %223 = sbr.rel (%p220_p2) target bundleno = 601 (0x259), region = 32 }
   0xd   : > { %v5806_v0 = vld [vmem:[%s7098_s1 + $0x40] sm:$0xff]   ;;  %p262_p3 = scmp.lt.s32.totalorder %s4335_s22, 1  ;;  %v5808_v2 = vld [vmem:[%s7098_s1 + $0x48] sm:$0xff]   ;;  %v5810_v4 = vld [vmem:[%s7098_s1 + $0x50] sm:$0xff]   ;;  %vm356_vm0 = vsmask.f32 3328 }
   0xe   : > { %v5807_v1 = vld [vmem:[%s7098_s1 + $0x100] sm:$0xff]   ;;  %5061 = vmatprep.subr.bf16.mxu1 %v5806_v0  ;;  %v5809_v3 = vld [vmem:[%s7098_s1 + $0x108] sm:$0xff]   ;;  %v5811_v5 = vld [vmem:[%s7098_s1 + $0x110] sm:$0xff]   ;;  %vm357_vm1 = vsmask.f32 7440  ;;  %vm1353_vm3 = vcmask 1042432  }
   0xf   : > { %5253 = vmatprep.subr.bf16.mxu0 %v5807_v1  ;;  %5062 = vmatpush3.bf16.msra.mxu1 %v5806_v0  ;;  %s7202_s22 = smov (!%p262_p3, %s4335_s22), 1  ;;  %v5812_v6 = vld [vmem:[%s7098_s1 + $0x58] sm:$0xff]   ;;  %v5814_v8 = vld [vmem:[%s7098_s1 + $0x60] sm:$0xff]   ;;  %v5816_v10 = vld [vmem:[%s7098_s1 + $0x68] sm:$0xff]   ;;  %vm1354_vm4 = vcmask 1046532   ;;  %vm3689_vm6 = vcmask 1040384  }
  0x10   : > { %5254 = vmatpush3.bf16.msra.mxu0 %v5807_v1  ;;  %5063 = vmatprep.subr.bf16.mxu1 %v5808_v2  ;;  %v5813_v7 = vld [vmem:[%s7098_s1 + $0x118] sm:$0xff]   ;;  %s5797_s15 = smul.u32 216, %s7202_s22  ;;  %v5815_v9 = vld [vmem:[%s7098_s1 + $0x120] sm:$0xff]   ;;  %v5817_v11 = vld [vmem:[%s7098_s1 + $0x128] sm:$0xff]   ;;  %s4345_s23 = sshll.u32 %s7202_s22, 1 }
  0x11   : > { %5255 = vmatprep.subr.bf16.mxu0 %v5809_v3  ;;  %v5818_v17 = vld [vmem:[%s7098_s1 + $0x70] sm:$0xff]   ;;  %v5820_v38 = vld [vmem:[%s7098_s1 + $0x78] sm:$0xff]   ;;  %vm6045_vm2 = vmor %vm356_vm0, %vm357_vm1  ;;  %s284_s27 = scalar_lea.vmem %s7103_s6, %s4345_s23  ;;  %s280_s30 = scalar_lea.vmem %s7102_s5, %s4345_s23 }
  0x12   : > { %s5994_s24 = scalar_lea.vmem %s7097_s0, %s5797_s15  ;;  %v5819_v32 = vld [vmem:[%s7098_s1 + $0x130] sm:$0xff]   ;;  %v5821_v53 = vld [vmem:[%s7098_s1 + $0x138] sm:$0xff]   ;;  %vm6436_vm5 = vmor %vm1353_vm3, %vm1354_vm4 }
  0x13   : > { %5064 = vmatpush3.bf16.msra.mxu1 %v5808_v2  ;;  %v6003_v12 = vld [vmem:[%s5994_s24] sm:$0xf]  ;;  %v6006_v13 = vld [vmem:[%s5994_s24 + $0x4] sm:$0xf]  ;;  %v288_v14 = vld [vmem:[%s5994_s24 + $0x8] sm:$0x1] }
  0x14   : > { %5256 = vmatpush3.bf16.msra.mxu0 %v5809_v3  ;;  %5065 = vmatprep.subr.bf16.mxu1 %v5810_v4  ;;  %v360_v15 = vshrl.u32 %v6003_v12, 16  ;;  %v363_v16 = vshll.u32 %v6003_v12, 16  ;;  %v369_v18 = vshll.u32 %v6006_v13, 16  ;;  %v373_v19 = vshrl.u32 %v6006_v13, 16  ;;  %v6017_v21 = vld [vmem:[%s5994_s24 + $0xc] sm:$0xf] }
  0x15   : > { %5257 = vmatprep.subr.bf16.mxu0 %v5811_v5  ;;  %v379_v20 = vshll.u32 %v288_v14, 16  ;;  %v6020_v24 = vld [vmem:[%s5994_s24 + $0x10] sm:$0xf]  ;;  %v6023_v25 = vld [vmem:[%s5994_s24 + $0x14] sm:$0x1]  ;;  %v384_v30 = vshrl.u32 %v6017_v21, 16 }
  0x16   : > { %v362_v22 = vrot.slane %v360_v15, 4  ;;  %v365_v23 = vrot.slane %v363_v16, 5  ;;  %v371_v27 = vrot.slane %v369_v18, 5  ;;  %v375_v28 = vrot.slane %v373_v19, 4  ;;  %v6029_v31 = vld [vmem:[%s5994_s24 + $0x18] sm:$0xf] }
  0x17   : > { %5066 = vmatpush3.bf16.msra.mxu1 %v5810_v4  ;;  %v381_v29 = vrot.slane %v379_v20, 5  ;;  %v387_v34 = vshll.u32 %v6017_v21, 16  ;;  %v393_v35 = vshll.u32 %v6020_v24, 16  ;;  %v397_v36 = vshrl.u32 %v6020_v24, 16  ;;  %v6038_v37 = vld [vmem:[%s5994_s24 + $0x1c] sm:$0xf] }
  0x18   : > { %5258 = vmatpush3.bf16.msra.mxu0 %v5811_v5  ;;  %5067 = vmatprep.subr.bf16.mxu1 %v5812_v6  ;;  %v366_v33 = vor.u32 %v365_v23, %v362_v22  ;;  %v376_v40 = vor.u32 %v375_v28, %v371_v27  ;;  %v386_v41 = vrot.slane %v384_v30, 4  ;;  %v403_v42 = vshll.u32 %v6023_v25, 16  ;;  %v6051_v43 = vld [vmem:[%s5994_s24 + $0x20] sm:$0x1]  ;;  %v6066_v62 = vld [vmem:[%s5994_s24 + $0x24] sm:$0xf] }
  0x19   : > { %5259 = vmatprep.subr.bf16.mxu0 %v5813_v7  ;;  %v408_v44 = vshrl.u32 %v6029_v31, 16  ;;  %v389_v46 = vrot.slane %v387_v34, 5  ;;  %v395_v47 = vrot.slane %v393_v35, 5  ;;  %v399_v48 = vrot.slane %v397_v36, 4  ;;  %v6069_v3 = vld [vmem:[%s5994_s24 + $0x28] sm:$0xf] }
  0x1a   : > { %v367_v45 = vrot.slane %v366_v33, 4  ;;  %v377_v49 = vrot.slane %v376_v40, 4  ;;  %v405_v50 = vrot.slane %v403_v42, 5  ;;  %v411_v52 = vshll.u32 %v6029_v31, 16  ;;  %v5823_v14 = vld [vmem:[%s7098_s1] sm:$0xff]  }
  0x1b   : > { %5068 = vmatpush3.bf16.msra.mxu1 %v5812_v6  ;;  %v410_v51 = vrot.slane %v408_v44, 4  ;;  %v390_v55 = vor.u32 %v389_v46, %v386_v41  ;;  %v400_v56 = vor.u32 %v399_v48, %v395_v47  ;;  %v417_v57 = vshll.u32 %v6038_v37, 16  ;;  %v6094_v23 = vld [vmem:[%s5994_s24 + $0x34] sm:$0xf]  ;;  %v6286_v26 = vld [vmem:[%s5994_s24 + $0x88] sm:$0xf] }
  0x1c   : > { %5260 = vmatpush3.bf16.msra.mxu0 %v5813_v7  ;;  %5069 = vmatprep.subr.bf16.mxu1 %v5814_v8  ;;  %v372_v54 = vsel %vm6045_vm2, %v367_v45, %v371_v27  ;;  %v382_v58 = vsel %vm6045_vm2, %v377_v49, %v381_v29  ;;  %v413_v59 = vrot.slane %v411_v52, 5  ;;  %v421_v60 = vshrl.u32 %v6038_v37, 16  ;;  %v6115_v49 = vld [vmem:[%s5994_s24 + $0x3c] sm:$0xf]  ;;  %7156 = vst [vmem:[#allocation9_spill] sm:$0xff] %v6286_v26 }
  0x1d   : > { %5261 = vmatprep.subr.bf16.mxu0 %v5815_v9  ;;  %v427_v61 = vshll.u32 %v6051_v43, 16  ;;  %v4347_v63 = vcombine.low %v372_v54, %v382_v58  ;;  %v391_v0 = vrot.slane %v390_v55, 4  ;;  %v401_v1 = vrot.slane %v400_v56, 4  ;;  %v5824_v54 = vld [vmem:[%s7098_s1 + $0x148] sm:$0xff]   ;;  %v6123_v55 = vld [vmem:[%s5994_s24 + $0x40] sm:$0xf] }
  0x1e   : > { %v419_v2 = vrot.slane %v417_v57, 5  ;;  %v414_v4 = vor.u32 %v413_v59, %v410_v51  ;;  %v423_v5 = vrot.slane %v421_v60, 4  ;;  %v432_v15 = vshrl.u32 %v6066_v62, 16  ;;  %v5827_v56 = vld [vmem:[%s7098_s1 + $0x10] sm:$0xff]   ;;  %v6130_v60 = vld [vmem:[%s5994_s24 + $0x44] sm:$0x1] }
  0x1f   : > { %5070 = vmatpush3.bf16.msra.mxu1 %v5814_v8  ;;  %v429_v6 = vrot.slane %v427_v61, 5  ;;  %v6073_v8 = vld [vmem:[%s5994_s24 + $0x2c] sm:$0x1]  ;;  %5077 = vmatprep.mubr.bf16.mxu1 %v4347_v63  ;;  %v435_v16 = vshll.u32 %v6066_v62, 16  ;;  %v441_v22 = vshll.u32 %v6069_v3, 16  ;;  %v445_v29 = vshrl.u32 %v6069_v3, 16 }
  0x20   : > { %5262 = vmatpush3.bf16.msra.mxu0 %v5815_v9  ;;  %5071 = vmatprep.subr.bf16.mxu1 %v5816_v10  ;;  %v396_v9 = vsel %vm6045_vm2, %v391_v0, %v395_v47  ;;  %v415_v19 = vrot.slane %v414_v4, 4  ;;  %v424_v20 = vor.u32 %v423_v5, %v419_v2  ;;  %v434_v27 = vrot.slane %v432_v15, 4  ;;  %v6139_v4 = vld [vmem:[%s5994_s24 + $0x48] sm:$0xf]  ;;  %v6142_v5 = vld [vmem:[%s5994_s24 + $0x4c] sm:$0xf] }
  0x21   : > { %5263 = vmatprep.subr.bf16.mxu0 %v5817_v11  ;;  %v437_v28 = vrot.slane %v435_v16, 5  ;;  %v451_v30 = vshll.u32 %v6073_v8, 16  ;;  %v443_v35 = vrot.slane %v441_v22, 5  ;;  %v447_v41 = vrot.slane %v445_v29, 4  ;;  %v5826_v22 = vld [vmem:[%s7098_s1 + $0x150] sm:$0xff]  }
  0x22   : > { %v420_v33 = vsel %vm6045_vm2, %v415_v19, %v419_v2  ;;  %v425_v34 = vrot.slane %v424_v20, 4  ;;  %v465_v47 = vshll.u32 %v6094_v23, 16  ;;  %v469_v48 = vshrl.u32 %v6094_v23, 16 }
  0x23   : > { %5072 = vmatpush3.bf16.msra.mxu1 %v5816_v10  ;;  %v406_v10 = vsel %vm6045_vm2, %v401_v1, %v405_v50  ;;  %v438_v40 = vor.u32 %v437_v28, %v434_v27  ;;  %v453_v42 = vrot.slane %v451_v30, 5  ;;  %v448_v52 = vor.u32 %v447_v41, %v443_v35  ;;  %v5829_v30 = vld [vmem:[%s7098_s1 + $0x18] sm:$0xff]  }
  0x24   : > { %5264 = vmatpush3.bf16.msra.mxu0 %v5817_v11  ;;  %5073 = vmatprep.subr.bf16.mxu1 %v5818_v17  ;;  %v5822_v11 = vld [vmem:[%s7098_s1 + $0x140] sm:$0xff]   ;;  %v6090_v18 = vcombine.low %v396_v9, %v406_v10  ;;  %v430_v45 = vsel %vm6045_vm2, %v425_v34, %v429_v6  ;;  %v467_v57 = vrot.slane %v465_v47, 5  ;;  %v471_v58 = vrot.slane %v469_v48, 4 }
  0x25   : > { %5265 = vmatprep.subr.bf16.mxu0 %v5819_v32  ;;  %v6117_v50 = vcombine.low %v420_v33, %v430_v45  ;;  %v439_v51 = vrot.slane %v438_v40, 4  ;;  %v480_v61 = vshrl.u32 %v6115_v49, 16  ;;  %v449_v0 = vrot.slane %v448_v52, 4  ;;  %v6170_v45 = vld [vmem:[%s5994_s24 + $0x54] sm:$0xf] }
  0x26   : > { %7149 = vst [vmem:[#allocation2_spill] sm:$0xff] %v6090_v18  ;;  %5269 = vmatprep.mubr.bf16.mxu0 %v6090_v18  ;;  %v483_v2 = vshll.u32 %v6115_v49, 16  ;;  %v472_v6 = vor.u32 %v471_v58, %v467_v57  ;;  %v493_v20 = vshrl.u32 %v6123_v55, 16  ;;  %v499_v29 = vshll.u32 %v6130_v60, 16  ;;  %v6175_v52 = vld [vmem:[%s5994_s24 + $0x58] sm:$0xf] }
  0x27   : > { %5074 = vmatpush3.bf16.msra.mxu1 %v5818_v17  ;;  %v6088_v17 = vld [vmem:[%s5994_s24 + $0x30] sm:$0xf]  ;;  %7150 = vst [vmem:[#allocation3_spill] sm:$0xff] %v6117_v50  ;;  %v444_v63 = vsel %vm6045_vm2, %v439_v51, %v443_v35  ;;  %v482_v10 = vrot.slane %v480_v61, 4  ;;  %v454_v15 = vsel %vm6045_vm2, %v449_v0, %v453_v42  ;;  %v507_v42 = vshll.u32 %v6139_v4, 16 }
  0x28   : > { %5266 = vmatpush3.bf16.msra.mxu0 %v5819_v32  ;;  %5075 = vmatprep.subr.bf16.mxu1 %v5820_v38  ;;  %v6099_v32 = vld [vmem:[%s5994_s24 + $0x38] sm:$0x1]  ;;  %v456_v36 = vshrl.u32 %v6088_v17, 16  ;;  %v459_v44 = vshll.u32 %v6088_v17, 16  ;;  %v485_v19 = vrot.slane %v483_v2, 5  ;;  %v473_v27 = vrot.slane %v472_v6, 4 }
  0x29   : > { %5267 = vmatprep.subr.bf16.mxu0 %v5821_v53  ;;  %v475_v59 = vshll.u32 %v6099_v32, 16  ;;  %v495_v35 = vrot.slane %v493_v20, 4  ;;  %v501_v41 = vrot.slane %v499_v29, 5  ;;  %v509_v58 = vrot.slane %v507_v42, 5 }
  0x2a   : > { %v458_v46 = vrot.slane %v456_v36, 4  ;;  %v486_v34 = vor.u32 %v485_v19, %v482_v10  ;;  %v6160_v36 = vld [vmem:[%s5994_s24 + $0x50] sm:$0x1]  ;;  %v517_v61 = vshrl.u32 %v6142_v5, 16  ;;  %v528_v2 = vshrl.u32 %v6170_v45, 16  ;;  %v5830_v19 = vld [vmem:[%s7098_s1 + $0x160] sm:$0xff]  }
  0x2b   : > { %5076 = vmatpush3.bf16.msra.mxu1 %v5820_v38  ;;  %v5825_v38 = vld [vmem:[%s7098_s1 + $0x8] sm:$0xff]   ;;  %v477_v9 = vrot.slane %v475_v59, 5  ;;  %v531_v6 = vshll.u32 %v6170_v45, 16  ;;  %v541_v29 = vshrl.u32 %v6175_v52, 16 }
  0x2c   : > { %5268 = vmatpush3.bf16.msra.mxu0 %v5821_v53  ;;  %5109 = vmatprep.subr.bf16.mxu1 %v5823_v14  ;;  %v461_v53 = vrot.slane %v459_v44, 5  ;;  %v513_v44 = vshll.u32 %v6142_v5, 16  ;;  %v487_v47 = vrot.slane %v486_v34, 4 }
  0x2d   : > { %5301 = vmatprep.subr.bf16.mxu0 %v5822_v11  ;;  %v478_v40 = vsel %vm6045_vm2, %v473_v27, %v477_v9  ;;  %v6198_v9 = vld [vmem:[%s5994_s24 + $0x64] sm:$0xf]  ;;  %v530_v27 = vrot.slane %v528_v2, 4  ;;  %v6224_v2 = vld [vmem:[%s5994_s24 + $0x6c] sm:$0xf] }
  0x2e   : > { %5078 = vmatmul.mubr.bf16.vlgmr.msra.gmra.mrb[0].mxu1 %v6090_v18  ;;  %v462_v1 = vor.u32 %v461_v53, %v458_v46  ;;  %v5828_v53 = vld [vmem:[%s7098_s1 + $0x158] sm:$0xff]   ;;  %v515_v59 = vrot.slane %v513_v44, 5 }
  0x2f   : > { %5110 = vmatpush3.bf16.msra.mxu1 %v5823_v14  ;;  %5270 = vmatmul.mubr.bf16.vlgmr.msra.gmra.mrb[0].mxu0 %v6117_v50  ;;  %v489_v14 = vshll.u32 %v6123_v55, 16 }
  0x30   : > { %5111 = vmatprep.subr.bf16.mxu1 %v5825_v38  ;;  %5081 = vmatprep.mubr.bf16.mxu1 %v6117_v50  ;;  %v463_v16 = vrot.slane %v462_v1, 4 }
  0x31   : > { %5302 = vmatpush3.bf16.msra.mxu0 %v5822_v11  ;;  %v6151_v11 = vcombine.low %v444_v63, %v454_v15  ;;  %v491_v28 = vrot.slane %v489_v14, 5  ;;  %v6186_v63 = vld [vmem:[%s5994_s24 + $0x5c] sm:$0x1]  ;;  %v519_v14 = vrot.slane %v517_v61, 4 }
  0x32   : > { %5303 = vmatprep.subr.bf16.mxu0 %v5824_v54  ;;  %v468_v33 = vsel %vm6045_vm2, %v463_v16, %v467_v57  ;;  %v5831_v57 = vld [vmem:[%s7098_s1 + $0x20] sm:$0xff]   ;;  %v537_v16 = vshll.u32 %v6175_v52, 16 }
  0x33   : > { %5112 = vmatpush3.bf16.msra.mxu1 %v5825_v38  ;;  %7151 = vst [vmem:[#allocation4_spill] sm:$0xff] %v6151_v11  ;;  %v504_v38 = vshrl.u32 %v6139_v4, 16  ;;  %5273 = vmatprep.mubr.bf16.mxu0 %v6151_v11  ;;  %v6172_v46 = vcombine.low %v468_v33, %v478_v40  ;;  %v496_v48 = vor.u32 %v495_v35, %v491_v28  ;;  %v5833_v33 = vld [vmem:[%s7098_s1 + $0x28] sm:$0xff]  }
  0x34   : > { %5113 = vmatprep.subr.bf16.mxu1 %v5827_v56  ;;  %v492_v0 = vsel %vm6045_vm2, %v487_v47, %v491_v28  ;;  %v533_v28 = vrot.slane %v531_v6, 5  ;;  %v539_v40 = vrot.slane %v537_v16, 5  ;;  %v565_v16 = vshrl.u32 %v6198_v9, 16 }
  0x35   : > { %7152 = vst [vmem:[#allocation5_spill] sm:$0xff] %v6172_v46  ;;  %5304 = vmatpush3.bf16.msra.mxu0 %v5824_v54  ;;  %v506_v51 = vrot.slane %v504_v38, 4  ;;  %v523_v54 = vshll.u32 %v6160_v36, 16  ;;  %v497_v1 = vrot.slane %v496_v48, 4  ;;  %v520_v38 = vor.u32 %v519_v14, %v515_v59  ;;  %v6219_v48 = vld [vmem:[%s5994_s24 + $0x68] sm:$0x1] }
  0x36   : > { %5082 = vmatmul.mubr.bf16.gmra.mrb[4].mxu1 %v6151_v11  ;;  %5305 = vmatprep.subr.bf16.mxu0 %v5826_v22  ;;  %v534_v42 = vor.u32 %v533_v28, %v530_v27  ;;  %v6349_v11 = vld [vmem:[%s5994_s24 + $0xa4] sm:$0x1] }
  0x37   : > { %5114 = vmatpush3.bf16.msra.mxu1 %v5827_v56  ;;  %v6189_v56 = vld [vmem:[%s5994_s24 + $0x60] sm:$0xf]  ;;  %5274 = vmatmul.mubr.bf16.gmra.mrb[4].mxu0 %v6172_v46  ;;  %v510_v10 = vor.u32 %v509_v58, %v506_v51  ;;  %v525_v15 = vrot.slane %v523_v54, 5  ;;  %v502_v20 = vsel %vm6045_vm2, %v497_v1, %v501_v41  ;;  %v547_v41 = vshll.u32 %v6186_v63, 16  ;;  %7166 = vst [vmem:[#allocation19_spill] sm:$0xff] %v6349_v11 }
  0x38   : > { %5115 = vmatprep.subr.bf16.mxu1 %v5829_v30  ;;  %5085 = vmatprep.mubr.bf16.mxu1 %v6172_v46  ;;  %v6210_v34 = vcombine.low %v492_v0, %v502_v20  ;;  %v552_v44 = vshrl.u32 %v6189_v56, 16  ;;  %v521_v47 = vrot.slane %v520_v38, 4  ;;  %v555_v51 = vshll.u32 %v6189_v56, 16  ;;  %v6233_v20 = vld [vmem:[%s5994_s24 + $0x70] sm:$0xf] }
  0x39   : > { %5306 = vmatpush3.bf16.msra.mxu0 %v5826_v22  ;;  %v511_v35 = vrot.slane %v510_v10, 4  ;;  %v543_v22 = vrot.slane %v541_v29, 4  ;;  %v561_v58 = vshll.u32 %v6198_v9, 16  ;;  %v535_v61 = vrot.slane %v534_v42, 4  ;;  %v6244_v29 = vld [vmem:[%s5994_s24 + $0x74] sm:$0x1] }
  0x3a   : > { %7153 = vst [vmem:[#allocation6_spill] sm:$0xff] %v6210_v34  ;;  %5307 = vmatprep.subr.bf16.mxu0 %v5828_v53  ;;  %5277 = vmatprep.mubr.bf16.mxu0 %v6210_v34  ;;  %v549_v0 = vrot.slane %v547_v41, 5  ;;  %v554_v1 = vrot.slane %v552_v44, 4  ;;  %v526_v6 = vsel %vm6045_vm2, %v521_v47, %v525_v15  ;;  %v557_v10 = vrot.slane %v555_v51, 5  ;;  %v6252_v44 = vld [vmem:[%s5994_s24 + $0x7c] sm:$0xf] }
  0x3b   : > { %5116 = vmatpush3.bf16.msra.mxu1 %v5829_v30  ;;  %v516_v30 = vsel %vm6045_vm2, %v511_v35, %v515_v59  ;;  %v544_v54 = vor.u32 %v543_v22, %v539_v40  ;;  %v5832_v59 = vld [vmem:[%s7098_s1 + $0x168] sm:$0xff]   ;;  %v563_v14 = vrot.slane %v561_v58, 5  ;;  %v540_v27 = vsel %vm6045_vm2, %v535_v61, %v539_v40  ;;  %v6247_v35 = vld [vmem:[%s5994_s24 + $0x78] sm:$0xf] }
  0x3c   : > { %5117 = vmatprep.subr.bf16.mxu1 %v5831_v57  ;;  %v571_v15 = vshll.u32 %v6219_v48, 16  ;;  %v558_v38 = vor.u32 %v557_v10, %v554_v1  ;;  %v567_v42 = vrot.slane %v565_v16, 4  ;;  %v576_v22 = vshrl.u32 %v6224_v2, 16 }
  0x3d   : > { %5308 = vmatpush3.bf16.msra.mxu0 %v5828_v53  ;;  %v5835_v53 = vld [vmem:[%s7098_s1 + $0x30] sm:$0xff]   ;;  %v545_v28 = vrot.slane %v544_v54, 4  ;;  %v579_v41 = vshll.u32 %v6224_v2, 16  ;;  %v585_v47 = vshll.u32 %v6233_v20, 16  ;;  %v589_v51 = vshrl.u32 %v6233_v20, 16 }
  0x3e   : > { %5086 = vmatmul.mubr.bf16.gmra.mrb[8].mxu1 %v6210_v34  ;;  %5309 = vmatprep.subr.bf16.mxu0 %v5830_v19  ;;  %v559_v61 = vrot.slane %v558_v38, 4  ;;  %v568_v54 = vor.u32 %v567_v42, %v563_v14  ;;  %v578_v1 = vrot.slane %v576_v22, 4  ;;  %v595_v7 = vshll.u32 %v6244_v29, 16 }
  0x3f   : > { %5118 = vmatpush3.bf16.msra.mxu1 %v5831_v57  ;;  %v6238_v57 = vcombine.low %v516_v30, %v526_v6  ;;  %v550_v40 = vsel %vm6045_vm2, %v545_v28, %v549_v0  ;;  %v573_v30 = vrot.slane %v571_v15, 5  ;;  %v581_v6 = vrot.slane %v579_v41, 5  ;;  %v5834_v0 = vld [vmem:[%s7098_s1 + $0x170] sm:$0xff]   ;;  %v6276_v41 = vld [vmem:[%s5994_s24 + $0x80] sm:$0x1] }
  0x40   : > { %5119 = vmatprep.subr.bf16.mxu1 %v5833_v33  ;;  %v6260_v58 = vcombine.low %v540_v27, %v550_v40  ;;  %v587_v10 = vrot.slane %v585_v47, 5  ;;  %v591_v16 = vrot.slane %v589_v51, 4  ;;  %v5837_v27 = vld [vmem:[%s7098_s1 + $0x38] sm:$0xff]   ;;  %v600_v28 = vshrl.u32 %v6247_v35, 16  ;;  %v6280_v47 = vld [vmem:[%s5994_s24 + $0x84] sm:$0xf] }
  0x41   : > { %7154 = vst [vmem:[#allocation7_spill] sm:$0xff] %v6238_v57  ;;  %5278 = vmatmul.mubr.bf16.gmra.mrb[8].mxu0 %v6238_v57  ;;  %5089 = vmatprep.mubr.bf16.mxu1 %v6238_v57  ;;  %v603_v15 = vshll.u32 %v6247_v35, 16  ;;  %v582_v38 = vor.u32 %v581_v6, %v578_v1  ;;  %v597_v22 = vrot.slane %v595_v7, 5  ;;  %v609_v40 = vshll.u32 %v6252_v44, 16  ;;  %v5836_v7 = vld [vmem:[%s7098_s1 + $0x178] sm:$0xff]  }
  0x42   : > { %7155 = vst [vmem:[#allocation8_spill] sm:$0xff] %v6260_v58  ;;  %5310 = vmatpush3.bf16.msra.mxu0 %v5830_v19  ;;  %5281 = vmatprep.mubr.bf16.mxu0 %v6260_v58  ;;  %v564_v19 = vsel %vm6045_vm2, %v559_v61, %v563_v14  ;;  %v592_v42 = vor.u32 %v591_v16, %v587_v10  ;;  %v602_v14 = vrot.slane %v600_v28, 4  ;;  %v624_v28 = vshrl.u32 %v6280_v47, 16  ;;  %v6317_v57 = vld [vmem:[%s5994_s24 + $0x94] sm:$0xf] }
  0x43   : > { %5120 = vmatpush3.bf16.msra.mxu1 %v5833_v33  ;;  %5311 = vmatprep.subr.bf16.mxu0 %v5832_v59  ;;  %v569_v33 = vrot.slane %v568_v54, 4  ;;  %v605_v61 = vrot.slane %v603_v15, 5  ;;  %v613_v54 = vshrl.u32 %v6252_v44, 16  ;;  %v583_v6 = vrot.slane %v582_v38, 4  ;;  %7161 = vst [vmem:[#allocation14_spill] sm:$0xff] %v6317_v57 }
  0x44   : > { %5121 = vmatprep.subr.bf16.mxu1 %v5835_v53  ;;  %v593_v16 = vrot.slane %v592_v42, 4  ;;  %v611_v18 = vrot.slane %v609_v40, 5  ;;  %v627_v42 = vshll.u32 %v6280_v47, 16  ;;  %v633_v40 = vshll.u32 %v6286_v26, 16 }
  0x45   : > { %v574_v51 = vsel %vm6045_vm2, %v569_v33, %v573_v30  ;;  %v6297_v30 = vld [vmem:[%s5994_s24 + $0x90] sm:$0xf]  ;;  %v615_v33 = vrot.slane %v613_v54, 4  ;;  %v588_v15 = vsel %vm6045_vm2, %v583_v6, %v587_v10  ;;  %v6323_v6 = vld [vmem:[%s7098_s1 + $0x180] sm:$0xff]  }
  0x46   : > { %5090 = vmatmul.mubr.bf16.gmra.mrb[12].mxu1 %v6260_v58  ;;  %5312 = vmatpush3.bf16.msra.mxu0 %v5832_v59  ;;  %v6291_v1 = vcombine.low %v564_v19, %v574_v51  ;;  %v6294_v58 = vld [vmem:[%s5994_s24 + $0x8c] sm:$0x1]  ;;  %7159 = vst [vmem:[#allocation12_spill] sm:$0xff] %v6297_v30  ;;  %v6302_v59 = vld [vmem:[%s7098_s1 + $0x80] sm:$0xff]   ;;  %v619_v19 = vshll.u32 %v6276_v41, 16  ;;  %v598_v38 = vsel %vm6045_vm2, %v593_v16, %v597_v22  ;;  %v629_v34 = vrot.slane %v627_v42, 5 }
  0x47   : > { %5122 = vmatpush3.bf16.msra.mxu1 %v5835_v53  ;;  %7158 = vst [vmem:[#allocation11_spill] sm:$0xff] %v6294_v58  ;;  %5313 = vmatprep.subr.bf16.mxu0 %v5834_v0  ;;  %v606_v53 = vor.u32 %v605_v61, %v602_v14  ;;  %v6314_v51 = vcombine.low %v588_v15, %v598_v38  ;;  %v635_v10 = vrot.slane %v633_v40, 5  ;;  %v637_v22 = vshrl.u32 %v6286_v26, 16  ;;  %v6338_v42 = vld [vmem:[%s5994_s24 + $0x9c] sm:$0xf] }
  0x48   : > { %7157 = vst [vmem:[#allocation10_spill] sm:$0xff] %v6291_v1  ;;  %5123 = vmatprep.subr.bf16.mxu1 %v5837_v27  ;;  %5093 = vmatprep.mubr.bf16.mxu1 %v6291_v1  ;;  %v616_v61 = vor.u32 %v615_v33, %v611_v18  ;;  %v621_v54 = vrot.slane %v619_v19, 5  ;;  %v643_v16 = vshll.u32 %v6294_v58, 16  ;;  %v648_v33 = vshrl.u32 %v6297_v30, 16  ;;  %7163 = vst [vmem:[#allocation16_spill] sm:$0xff] %v6338_v42 }
  0x49   : > { %5282 = vmatmul.mubr.bf16.gmra.mrb[12].mxu0 %v6291_v1  ;;  %7160 = vst [vmem:[#allocation13_spill] sm:$0xff] %v6314_v51  ;;  %v607_v14 = vrot.slane %v606_v53, 4  ;;  %v626_v1 = vrot.slane %v624_v28, 4  ;;  %v6332_v53 = vld [vmem:[%s5994_s24 + $0x98] sm:$0x1]  ;;  %v639_v28 = vrot.slane %v637_v22, 4 }
  0x4a   : > { %5314 = vmatpush3.bf16.msra.mxu0 %v5834_v0  ;;  %5285 = vmatprep.mubr.bf16.mxu0 %v6314_v51  ;;  %7162 = vst [vmem:[#allocation15_spill] sm:$0xff] %v6332_v53  ;;  %v651_v15 = vshll.u32 %v6297_v30, 16  ;;  %v657_v38 = vshll.u32 %v6317_v57, 16 }
  0x4b   : > { %5124 = vmatpush3.bf16.msra.mxu1 %v5837_v27  ;;  %5315 = vmatprep.subr.bf16.mxu0 %v5836_v7  ;;  %v612_v0 = vsel %vm6045_vm2, %v607_v14, %v611_v18  ;;  %v617_v27 = vrot.slane %v616_v61, 4  ;;  %v630_v19 = vor.u32 %v629_v34, %v626_v1  ;;  %v645_v18 = vrot.slane %v643_v16, 5 }
  0x4c   : > { %5157 = vmatprep.subr.bf16.mxu1 %v6302_v59  ;;  %v650_v14 = vrot.slane %v648_v33, 4  ;;  %v661_v61 = vshrl.u32 %v6317_v57, 16  ;;  %v640_v1 = vor.u32 %v639_v28, %v635_v10  ;;  %v653_v22 = vrot.slane %v651_v15, 5  ;;  %v6375_v57 = vld [vmem:[%s5994_s24 + $0xb0] sm:$0x1] }
  0x4d   : > { %v622_v40 = vsel %vm6045_vm2, %v617_v27, %v621_v54  ;;  %v631_v34 = vrot.slane %v630_v19, 4  ;;  %v659_v50 = vrot.slane %v657_v38, 5  ;;  %v667_v54 = vshll.u32 %v6332_v53, 16  ;;  %7170 = vst [vmem:[#allocation23_spill] sm:$0xff] %v6375_v57 }
  0x4e   : > { %5094 = vmatmul.mubr.bf16.gmra.mrb[16].mxu1 %v6314_v51  ;;  %v6344_v51 = vld [vmem:[%s5994_s24 + $0xa0] sm:$0xf]  ;;  %5316 = vmatpush3.bf16.msra.mxu0 %v5836_v7  ;;  %v6346_v46 = vcombine.low %v612_v0, %v622_v40  ;;  %v663_v30 = vrot.slane %v661_v61, 4  ;;  %v672_v27 = vshrl.u32 %v6338_v42, 16  ;;  %v641_v0 = vrot.slane %v640_v1, 4 }
  0x4f   : > { %7164 = vst [vmem:[#allocation17_spill] sm:$0xff] %v6344_v51  ;;  %5349 = vmatprep.subr.bf16.mxu0 %v6323_v6  ;;  %v636_v7 = vsel %vm6045_vm2, %v631_v34, %v635_v10  ;;  %v654_v16 = vor.u32 %v653_v22, %v650_v14  ;;  %v675_v33 = vshll.u32 %v6338_v42, 16  ;;  %v669_v28 = vrot.slane %v667_v54, 5  ;;  %v6361_v40 = vld [vmem:[%s5994_s24 + $0xa8] sm:$0xf] }
  0x50   : > { %7165 = vst [vmem:[#allocation18_spill] sm:$0xff] %v6346_v46  ;;  %5097 = vmatprep.mubr.bf16.mxu1 %v6346_v46  ;;  %v664_v19 = vor.u32 %v663_v30, %v659_v50  ;;  %v674_v15 = vrot.slane %v672_v27, 4  ;;  %v681_v38 = vshll.u32 %v6344_v51, 16  ;;  %7167 = vst [vmem:[#allocation20_spill] sm:$0xff] %v6361_v40  ;;  %v646_v61 = vsel %vm6045_vm2, %v641_v0, %v645_v18  ;;  %v6367_v34 = vld [vmem:[%s5994_s24 + $0xac] sm:$0xf] }
  0x51   : > { %5286 = vmatmul.mubr.bf16.gmra.mrb[16].mxu0 %v6346_v46  ;;  %v655_v46 = vrot.slane %v654_v16, 4  ;;  %v677_v53 = vrot.slane %v675_v33, 5  ;;  %v685_v10 = vshrl.u32 %v6344_v51, 16  ;;  %7168 = vst [vmem:[#allocation21_spill] sm:$0xff] %v6367_v34  ;;  %v6369_v14 = vcombine.low %v636_v7, %v646_v61  ;;  %v6379_v0 = vld [vmem:[%s5994_s24 + $0xb4] sm:$0xf] }
  0x52   : > { %v665_v30 = vrot.slane %v664_v19, 4  ;;  %v683_v1 = vrot.slane %v681_v38, 5  ;;  %v691_v22 = vshll.u32 %v6349_v11, 16  ;;  %v696_v18 = vshrl.u32 %v6361_v40, 16  ;;  %7171 = vst [vmem:[#allocation24_spill] sm:$0xff] %v6379_v0 }
  0x53   : > { %7169 = vst [vmem:[#allocation22_spill] sm:$0xff] %v6369_v14  ;;  %v660_v54 = vsel %vm6045_vm2, %v655_v46, %v659_v50  ;;  %v678_v27 = vor.u32 %v677_v53, %v674_v15  ;;  %v687_v42 = vrot.slane %v685_v10, 4  ;;  %5289 = vmatprep.mubr.bf16.mxu0 %v6369_v14  ;;  %v699_v50 = vshll.u32 %v6361_v40, 16  ;;  %v6388_v53 = vld [vmem:[%s5994_s24 + $0xb8] sm:$0xf] }
  0x54   : > { %v670_v7 = vsel %vm6045_vm2, %v665_v30, %v669_v28  ;;  %v693_v16 = vrot.slane %v691_v22, 5  ;;  %v705_v46 = vshll.u32 %v6367_v34, 16  ;;  %v698_v38 = vrot.slane %v696_v18, 4  ;;  %v6395_v22 = vld [vmem:[%s5994_s24 + $0xbc] sm:$0x1] }
  0x55   : > { %v6390_v33 = vcombine.low %v660_v54, %v670_v7  ;;  %v679_v19 = vrot.slane %v678_v27, 4  ;;  %v688_v15 = vor.u32 %v687_v42, %v683_v1  ;;  %v701_v61 = vrot.slane %v699_v50, 5  ;;  %v6407_v7 = vld [vmem:[%s5994_s24 + $0xc4] sm:$0xf] }
  0x56   : > { %5098 = vmatmul.mubr.bf16.gmra.mrb[20].mxu1 %v6369_v14  ;;  %v707_v10 = vrot.slane %v705_v46, 5  ;;  %v709_v28 = vshrl.u32 %v6367_v34, 16  ;;  %v715_v30 = vshll.u32 %v6375_v57, 16  ;;  %v6398_v14 = vld [vmem:[%s5994_s24 + $0xc0] sm:$0xf]  ;;  %v720_v42 = vshrl.u32 %v6379_v0, 16 }
  0x57   : > { %7172 = vst [vmem:[#allocation25_spill] sm:$0xff] %v6390_v33  ;;  %5101 = vmatprep.mubr.bf16.mxu1 %v6390_v33  ;;  %v684_v54 = vsel %vm6045_vm2, %v679_v19, %v683_v1  ;;  %v689_v27 = vrot.slane %v688_v15, 4  ;;  %v723_v18 = vshll.u32 %v6379_v0, 16  ;;  %v702_v50 = vor.u32 %v701_v61, %v698_v38  ;;  %v6416_v0 = vld [vmem:[%s5994_s24 + $0xc8] sm:$0x1] }
  0x58   : > { %v711_v46 = vrot.slane %v709_v28, 4  ;;  %v717_v57 = vrot.slane %v715_v30, 5  ;;  %v729_v34 = vshll.u32 %v6388_v53, 16  ;;  %v733_v1 = vshrl.u32 %v6388_v53, 16 }
  0x59   : > { %5290 = vmatmul.mubr.bf16.gmra.mrb[20].mxu0 %v6390_v33  ;;  %v694_v40 = vsel %vm6045_vm2, %v689_v27, %v693_v16  ;;  %v722_v33 = vrot.slane %v720_v42, 4  ;;  %v725_v11 = vrot.slane %v723_v18, 5  ;;  %v703_v15 = vrot.slane %v702_v50, 4 }
  0x5a   : > { %v6413_v19 = vcombine.low %v684_v54, %v694_v40  ;;  %v712_v51 = vor.u32 %v711_v46, %v707_v10  ;;  %v731_v58 = vrot.slane %v729_v34, 5  ;;  %v735_v38 = vrot.slane %v733_v1, 4 }
  0x5b   : > { %v726_v26 = vor.u32 %v725_v11, %v722_v33  ;;  %v739_v61 = vshll.u32 %v6395_v22, 16  ;;  %v2053_v28 = vshrl.u32 %v6398_v14, 16  ;;  %v708_v16 = vsel %vm6045_vm2, %v703_v15, %v707_v10 }
  0x5c   : > { %5293 = vmatprep.mubr.bf16.mxu0 %v6413_v19  ;;  %v713_v40 = vrot.slane %v712_v51, 4  ;;  %v2056_v30 = vshll.u32 %v6398_v14, 16  ;;  %v2062_v34 = vshll.u32 %v6407_v7, 16  ;;  %v736_v27 = vor.u32 %v735_v38, %v731_v58 }
  0x5d   : > { %v727_v54 = vrot.slane %v726_v26, 4  ;;  %v741_v11 = vrot.slane %v739_v61, 5  ;;  %v2055_v33 = vrot.slane %v2053_v28, 4  ;;  %v2066_v46 = vshrl.u32 %v6407_v7, 16 }
  0x5e   : > { %5102 = vmatmul.mubr.bf16.gmra.mrb[24].mxu1 %v6413_v19  ;;  %v718_v42 = vsel %vm6045_vm2, %v713_v40, %v717_v57  ;;  %v2058_v18 = vrot.slane %v2056_v30, 5  ;;  %v2064_v50 = vrot.slane %v2062_v34, 5  ;;  %v737_v10 = vrot.slane %v736_v27, 4 }
  0x5f   : > { %v6429_v1 = vcombine.low %v708_v16, %v718_v42  ;;  %v732_v51 = vsel %vm6045_vm2, %v727_v54, %v731_v58  ;;  %v2072_v15 = vshll.u32 %v6416_v0, 16  ;;  %v2068_v57 = vrot.slane %v2066_v46, 4 }
  0x60   : > { %v2059_v38 = vor.u32 %v2058_v18, %v2055_v33  ;;  %v4396_v61 = vrot.slane %v6017_v21, 9  ;;  %v1365_v28 = vrot.slane %v6020_v24, 5  ;;  %v742_v58 = vsel %vm6045_vm2, %v737_v10, %v741_v11 }
  0x61   : > { %5294 = vmatmul.mubr.bf16.gmra.mrb[24].mxu0 %v6429_v1  ;;  %5105 = vmatprep.mubr.bf16.mxu1 %v6429_v1  ;;  %v2074_v16 = vrot.slane %v2072_v15, 5  ;;  %v1368_v40 = vrot.slane %v6023_v25, 5  ;;  %v6449_v30 = vcombine.low %v6017_v21, %v6020_v24  ;;  %v6451_v34 = vcombine.low %v732_v51, %v742_v58 }
  0x62   : > { %v2060_v54 = vrot.slane %v2059_v38, 4  ;;  %v2069_v27 = vor.u32 %v2068_v57, %v2064_v50  ;;  %v1366_v33 = vsel %vm6436_vm5, %v4396_v61, %v1365_v28  ;;  %v1367_v42 = vrot.slane %v1365_v28, 4 }
  0x63   : > { %v4397_v18 = vrot.slane %v6029_v31, 9  ;;  %v1372_v46 = vrot.slane %v6038_v37, 5  ;;  %v6459_v11 = vcombine.low %v6029_v31, %v6038_v37  ;;  %5297 = vmatprep.mubr.bf16.mxu0 %v6451_v34  ;;  %v4398_v25 = vrot.slane %v6066_v62, 9 }
  0x64   : > { %v2065_v21 = vsel %vm6045_vm2, %v2060_v54, %v2064_v50  ;;  %v2070_v24 = vrot.slane %v2069_v27, 4  ;;  %v1379_v51 = vrot.slane %v6069_v3, 5  ;;  %v7175_v10 = vcombine.low %v6003_v12, %v6006_v13 }
  0x65   : > { %v1369_v31 = vsel %vm6436_vm5, %v1367_v42, %v1368_v40  ;;  %v1373_v37 = vsel %vm6436_vm5, %v4397_v18, %v1372_v46  ;;  %v1374_v15 = vrot.slane %v1372_v46, 4  ;;  %v1382_v38 = vrot.slane %v6073_v8, 5 }
  0x66   : > { %5106 = vmatmul.mubr.bf16.gmra.mrb[28].mxu1 %v6451_v34  ;;  %v2075_v50 = vsel %vm6045_vm2, %v2070_v24, %v2074_v16  ;;  %v6477_v57 = vcombine.low %v1366_v33, %v1369_v31  ;;  %v1380_v61 = vsel %vm6436_vm5, %v4398_v25, %v1379_v51  ;;  %v1381_v28 = vrot.slane %v1379_v51, 4 }
  0x67   : > { %5125 = vmatprep.mubr.bf16.mxu1 %v7175_v10  ;;  %v6481_v12 = vcombine.low %v2065_v21, %v2075_v50  ;;  %v7176_v13 = vrot.slane %v6051_v43, 5  ;;  %v6489_v40 = vcombine.low %v6066_v62, %v6069_v3  ;;  %v4399_v8 = vrot.slane %v6088_v17, 9  ;;  %v5845_v43 = vld [vmem:[%s7098_s1 + $0x88] sm:$0xff]  }
  0x68   : > { %v1383_v54 = vsel %vm6436_vm5, %v1381_v28, %v1382_v38  ;;  %v1386_v27 = vrot.slane %v6094_v23, 5  ;;  %v1389_v33 = vrot.slane %v6099_v32, 5  ;;  %v6506_v62 = vcombine.low %v6088_v17, %v6094_v23  ;;  %v5849_v28 = vld [vmem:[%s7098_s1 + $0x90] sm:$0xff]  }
  0x69   : > { %v1376_v58 = vsel %vm6436_vm5, %v1374_v15, %v7176_v13  ;;  %5298 = vmatmul.mubr.bf16.gmra.mrb[28].mxu0 %v6481_v12  ;;  %v6502_v42 = vcombine.low %v1380_v61, %v1383_v54  ;;  %v4400_v3 = vrot.slane %v6115_v49, 9  ;;  %v1393_v18 = vrot.slane %v6123_v55, 5 }
  0x6a   : > { %v6492_v16 = vcombine.low %v1373_v37, %v1376_v58  ;;  %5317 = vmatprep.mubr.bf16.mxu0 %v6477_v57  ;;  %v1387_v32 = vsel %vm6436_vm5, %v4399_v8, %v1386_v27  ;;  %v1388_v46 = vrot.slane %v1386_v27, 4  ;;  %v1396_v21 = vrot.slane %v6130_v60, 5  ;;  %v5844_v37 = vld [vmem:[%s7098_s1 + $0x188] sm:$0xff]  }
  0x6b   : > { %v6516_v24 = vcombine.low %v6115_v49, %v6123_v55  ;;  %v1394_v17 = vsel %vm6436_vm5, %v4400_v3, %v1393_v18  ;;  %v1395_v23 = vrot.slane %v1393_v18, 4  ;;  %v4401_v25 = vrot.slane %v6139_v4, 9 }
  0x6c   : > { %v1400_v51 = vrot.slane %v6142_v5, 5  ;;  %v1390_v10 = vsel %vm6436_vm5, %v1388_v46, %v1389_v33  ;;  %v1403_v31 = vrot.slane %v6160_v36, 5  ;;  %v6528_v60 = vcombine.low %v6139_v4, %v6142_v5  ;;  %v5848_v46 = vld [vmem:[%s7098_s1 + $0x190] sm:$0xff]  }
  0x6d   : > { %v4402_v49 = vrot.slane %v6170_v45, 9  ;;  %v6533_v55 = vcombine.low %v1387_v32, %v1390_v10  ;;  %v1397_v15 = vsel %vm6436_vm5, %v1395_v23, %v1396_v21  ;;  %v1410_v38 = vrot.slane %v6186_v63, 5 }
  0x6e   : > { %5126 = vmatmul.mubr.bf16.vlgmr.msra.gmra.mrb[0].mxu1 %v6449_v30  ;;  %v1401_v36 = vsel %vm6436_vm5, %v4401_v25, %v1400_v51  ;;  %v1402_v4 = vrot.slane %v1400_v51, 4  ;;  %v6542_v5 = vcombine.low %v1394_v17, %v1397_v15  ;;  %v6548_v50 = vcombine.low %v6170_v45, %v6175_v52  ;;  %v7178_v15 = vld [vmem:[#allocation11_spill] sm:$0xff] }
  0x6f   : > { %5158 = vmatpush3.bf16.msra.mxu1 %v6302_v59  ;;  %5129 = vmatprep.mubr.bf16.mxu1 %v6459_v11  ;;  %v1407_v59 = vrot.slane %v6175_v52, 5  ;;  %v4403_v13 = vrot.slane %v6189_v56, 9  ;;  %v1414_v58 = vrot.slane %v6198_v9, 5  ;;  %v1417_v8 = vrot.slane %v6219_v48, 5  ;;  %v5853_v48 = vld [vmem:[%s7098_s1 + $0x98] sm:$0xff]  }
  0x70   : > { %5159 = vmatprep.subr.bf16.mxu1 %v5845_v43  ;;  %v1404_v61 = vsel %vm6436_vm5, %v1402_v4, %v1403_v31  ;;  %v6564_v52 = vcombine.low %v6189_v56, %v6198_v9  ;;  %v4404_v3 = vrot.slane %v6224_v2, 9  ;;  %v1421_v18 = vrot.slane %v6233_v20, 5  ;;  %v7177_v31 = vld [vmem:[#allocation9_spill] sm:$0xff] }
  0x71   : > { %v6558_v54 = vcombine.low %v1401_v36, %v1404_v61  ;;  %v1408_v63 = vsel %vm6436_vm5, %v4402_v49, %v1407_v59  ;;  %v1409_v45 = vrot.slane %v1407_v59, 4  ;;  %5318 = vmatmul.mubr.bf16.vlgmr.msra.gmra.mrb[0].mxu0 %v6492_v16  ;;  %v1415_v27 = vsel %vm6436_vm5, %v4403_v13, %v1414_v58 }
  0x72   : > { %v1416_v33 = vrot.slane %v1414_v58, 4  ;;  %5350 = vmatpush3.bf16.msra.mxu0 %v6323_v6  ;;  %5321 = vmatprep.mubr.bf16.mxu0 %v6502_v42  ;;  %v1424_v9 = vrot.slane %v6244_v29, 5  ;;  %v4405_v32 = vrot.slane %v6247_v35, 9  ;;  %v1422_v29 = vsel %vm6436_vm5, %v4404_v3, %v1421_v18  ;;  %v7180_v58 = vld [vmem:[#allocation14_spill] sm:$0xff] }
  0x73   : > { %5160 = vmatpush3.bf16.msra.mxu1 %v5845_v43  ;;  %v1411_v56 = vsel %vm6436_vm5, %v1409_v45, %v1410_v38  ;;  %v6581_v43 = vcombine.low %v6224_v2, %v6233_v20  ;;  %5351 = vmatprep.subr.bf16.mxu0 %v5844_v37  ;;  %v1423_v17 = vrot.slane %v1421_v18, 4  ;;  %v1428_v20 = vrot.slane %v6252_v44, 5  ;;  %v7181_v45 = vld [vmem:[#allocation15_spill] sm:$0xff] }
  0x74   : > { %5161 = vmatprep.subr.bf16.mxu1 %v5849_v28  ;;  %v6587_v6 = vcombine.low %v1408_v63, %v1411_v56  ;;  %v1418_v21 = vsel %vm6436_vm5, %v1416_v33, %v1417_v8  ;;  %v1431_v23 = vrot.slane %v6276_v41, 5  ;;  %v6600_v25 = vcombine.low %v6247_v35, %v6252_v44  ;;  %v5852_v41 = vld [vmem:[%s7098_s1 + $0x198] sm:$0xff]   ;;  %v7182_v33 = vld [vmem:[#allocation16_spill] sm:$0xff] }
  0x75   : > { %v6594_v2 = vcombine.low %v1415_v27, %v1418_v21  ;;  %v1425_v51 = vsel %vm6436_vm5, %v1423_v17, %v1424_v9  ;;  %v4406_v10 = vrot.slane %v6280_v47, 9  ;;  %v1435_v49 = vrot.slane %v7177_v31, 5  ;;  %v5861_v21 = vld [vmem:[%s7098_s1 + $0xa8] sm:$0xff]   ;;  %v7183_v17 = vld [vmem:[#allocation17_spill] sm:$0xff] }
  0x76   : > { %5130 = vmatmul.mubr.bf16.gmra.mrb[4].mxu1 %v6489_v40  ;;  %v1438_v36 = vrot.slane %v7178_v15, 5  ;;  %5352 = vmatpush3.bf16.msra.mxu0 %v5844_v37  ;;  %v6611_v35 = vcombine.low %v1422_v29, %v1425_v51  ;;  %v1429_v44 = vsel %vm6436_vm5, %v4405_v32, %v1428_v20  ;;  %v1430_v4 = vrot.slane %v1428_v20, 4  ;;  %v5857_v37 = vld [vmem:[%s7098_s1 + $0xa0] sm:$0xff]   ;;  %v7184_v20 = vld [vmem:[#allocation19_spill] sm:$0xff]  ;;  %v7186_v15 = vld [vmem:[#allocation21_spill] sm:$0xff] }
  0x77   : > { %5133 = vmatprep.mubr.bf16.mxu1 %v6506_v62  ;;  %5162 = vmatpush3.bf16.msra.mxu1 %v5849_v28  ;;  %v6617_v59 = vcombine.low %v6280_v47, %v7177_v31  ;;  %v1436_v38 = vsel %vm6436_vm5, %v4406_v10, %v1435_v49  ;;  %v1437_v61 = vrot.slane %v1435_v49, 4  ;;  %v7179_v28 = vld [vmem:[#allocation12_spill] sm:$0xff]  ;;  %v1442_v8 = vrot.slane %v7180_v58, 5  ;;  %v5856_v10 = vld [vmem:[%s7098_s1 + $0x1a0] sm:$0xff]  }
  0x78   : > { %5163 = vmatprep.subr.bf16.mxu1 %v5853_v48  ;;  %5353 = vmatprep.subr.bf16.mxu0 %v5848_v46  ;;  %v4407_v13 = vrot.slane %v7179_v28, 9  ;;  %v1432_v63 = vsel %vm6436_vm5, %v1430_v4, %v1431_v23  ;;  %v1445_v27 = vrot.slane %v7181_v45, 5  ;;  %v6631_v47 = vcombine.low %v7179_v28, %v7180_v58 }
  0x79   : > { %v4408_v3 = vrot.slane %v7182_v33, 9  ;;  %5322 = vmatmul.mubr.bf16.gmra.mrb[4].mxu0 %v6533_v55  ;;  %v6635_v18 = vcombine.low %v1429_v44, %v1432_v63  ;;  %v1439_v56 = vsel %vm6436_vm5, %v1437_v61, %v1438_v36  ;;  %v1444_v32 = vrot.slane %v1442_v8, 4  ;;  %v7187_v44 = vld [vmem:[#allocation23_spill] sm:$0xff]  ;;  %v7188_v63 = vld [vmem:[#allocation24_spill] sm:$0xff] }
  0x7a   : > { %v1443_v9 = vsel %vm6436_vm5, %v4407_v13, %v1442_v8  ;;  %5325 = vmatprep.mubr.bf16.mxu0 %v6542_v5  ;;  %5354 = vmatpush3.bf16.msra.mxu0 %v5848_v46  ;;  %v6645_v29 = vcombine.low %v1436_v38, %v1439_v56  ;;  %v1452_v23 = vrot.slane %v7184_v20, 5  ;;  %v6651_v51 = vcombine.low %v7182_v33, %v7183_v17  ;;  %v7185_v46 = vld [vmem:[#allocation20_spill] sm:$0xff]  ;;  %v5860_v33 = vld [vmem:[%s7098_s1 + $0x1a8] sm:$0xff]  }
  0x7b   : > { %5164 = vmatpush3.bf16.msra.mxu1 %v5853_v48  ;;  %v1449_v48 = vrot.slane %v7183_v17, 5  ;;  %5355 = vmatprep.subr.bf16.mxu0 %v5852_v41  ;;  %v1446_v31 = vsel %vm6436_vm5, %v1444_v32, %v1445_v27  ;;  %v4409_v49 = vrot.slane %v7185_v46, 9  ;;  %v1456_v36 = vrot.slane %v7186_v15, 5  ;;  %v5865_v17 = vld [vmem:[%s7098_s1 + $0xb0] sm:$0xff]  }
  0x7c   : > { %5165 = vmatprep.subr.bf16.mxu1 %v5857_v37  ;;  %v1459_v4 = vrot.slane %v7187_v44, 5  ;;  %v6662_v38 = vcombine.low %v1443_v9, %v1446_v31  ;;  %v6668_v13 = vcombine.low %v7185_v46, %v7186_v15  ;;  %v4410_v45 = vrot.slane %v7188_v63, 9  ;;  %v5871_v44 = vld [vmem:[%s7098_s1 + $0xc0] sm:$0xff]  }
  0x7d   : > { %v1450_v61 = vsel %vm6436_vm5, %v4408_v3, %v1449_v48  ;;  %v1451_v28 = vrot.slane %v1449_v48, 4  ;;  %v1457_v58 = vsel %vm6436_vm5, %v4409_v49, %v1456_v36  ;;  %v1458_v8 = vrot.slane %v1456_v36, 4 }
  0x7e   : > { %5134 = vmatmul.mubr.bf16.gmra.mrb[8].mxu1 %v6516_v24  ;;  %v1463_v27 = vrot.slane %v6388_v53, 5  ;;  %5356 = vmatpush3.bf16.msra.mxu0 %v5852_v41  ;;  %v1466_v56 = vrot.slane %v6395_v22, 5  ;;  %v4453_v9 = vrot.slane %v6398_v14, 9  ;;  %v6704_v46 = vcombine.low %v6398_v14, %v6407_v7 }
  0x7f   : > { %5137 = vmatprep.mubr.bf16.mxu1 %v6528_v60  ;;  %5166 = vmatpush3.bf16.msra.mxu1 %v5857_v37  ;;  %v1453_v3 = vsel %vm6436_vm5, %v1451_v28, %v1452_v23  ;;  %v6683_v37 = vcombine.low %v7188_v63, %v6388_v53  ;;  %v1460_v41 = vsel %vm6436_vm5, %v1458_v8, %v1459_v4  ;;  %v2340_v53 = vrot.slane %v6407_v7, 5  ;;  %v5870_v4 = vld [vmem:[%s7098_s1 + $0x1c0] sm:$0xff]  }
  0x80   : > { %5167 = vmatprep.subr.bf16.mxu1 %v5861_v21  ;;  %5357 = vmatprep.subr.bf16.mxu0 %v5856_v10  ;;  %v6686_v32 = vcombine.low %v1450_v61, %v1453_v3  ;;  %v1464_v48 = vsel %vm6436_vm5, %v4410_v45, %v1463_v27  ;;  %v1465_v22 = vrot.slane %v1463_v27, 4  ;;  %v6695_v20 = vcombine.low %v1457_v58, %v1460_v41  ;;  %v5904_v61 = vld [vmem:[%s5994_s24 + $0x4] sm:$0xf]  ;;  %v5905_v58 = vld [vmem:[%s5994_s24 + $0x8] sm:$0x1] }
  0x81   : > { %v2343_v23 = vrot.slane %v6416_v0, 5  ;;  %5326 = vmatmul.mubr.bf16.gmra.mrb[8].mxu0 %v6558_v54  ;;  %v2341_v15 = vsel %vm6436_vm5, %v4453_v9, %v2340_v53  ;;  %v2342_v36 = vrot.slane %v2340_v53, 4  ;;  %v5869_v0 = vld [vmem:[%s7098_s1 + $0xb8] sm:$0xff]   ;;  %v1358_v28 = vrot.slane %v5904_v61, 5  ;;  %v5906_v63 = vld [vmem:[%s5994_s24] sm:$0xf] }
  0x82   : > { %v1467_v31 = vsel %vm6436_vm5, %v1465_v22, %v1466_v56  ;;  %5329 = vmatprep.mubr.bf16.mxu0 %v6587_v6  ;;  %5358 = vmatpush3.bf16.msra.mxu0 %v5856_v10  ;;  %v5868_v10 = vld [vmem:[%s7098_s1 + $0x1b8] sm:$0xff]   ;;  %v1361_v8 = vrot.slane %v5905_v58, 5  ;;  %v4395_v45 = vrot.slane %v5906_v63, 9  ;;  %v5873_v9 = vld [vmem:[%s7098_s1 + $0xc8] sm:$0xff]   ;;  %v5879_v53 = vld [vmem:[%s7098_s1 + $0xe0] sm:$0xff]  }
  0x83   : > { %5168 = vmatpush3.bf16.msra.mxu1 %v5861_v21  ;;  %v6707_v49 = vcombine.low %v1464_v48, %v1467_v31  ;;  %5359 = vmatprep.subr.bf16.mxu0 %v5860_v33  ;;  %v5864_v21 = vld [vmem:[%s7098_s1 + $0x1b0] sm:$0xff]   ;;  %v2344_v14 = vsel %vm6436_vm5, %v2342_v36, %v2343_v23  ;;  %v1360_v27 = vrot.slane %v1358_v28, 4  ;;  %v5872_v41 = vld [vmem:[%s7098_s1 + $0x1c8] sm:$0xff]   ;;  %v5876_v22 = vld [vmem:[%s7098_s1 + $0x1d8] sm:$0xff]  }
  0x84   : > { %5169 = vmatprep.subr.bf16.mxu1 %v5865_v17  ;;  %v6721_v7 = vcombine.low %v2341_v15, %v2344_v14  ;;  %v5874_v48 = vld [vmem:[%s7098_s1 + $0x1d0] sm:$0xff]   ;;  %v5881_v23 = vld [vmem:[%s7098_s1 + $0xe8] sm:$0xff]   ;;  %v5878_v31 = vld [vmem:[%s7098_s1 + $0x1e0] sm:$0xff]  }
  0x85   : > { %v1362_v3 = vsel %vm6436_vm5, %v1360_v27, %v1361_v8  ;;  %v5880_v15 = vld [vmem:[%s7098_s1 + $0x1e8] sm:$0xff]   ;;  %v5883_v36 = vld [vmem:[%s7098_s1 + $0xf0] sm:$0xff]   ;;  %v5886_v14 = vld [vmem:[%s7098_s1 + $0x1f8] sm:$0xff]  }
  0x86   : > { %5138 = vmatmul.mubr.bf16.gmra.mrb[12].mxu1 %v6548_v50  ;;  %5360 = vmatpush3.bf16.msra.mxu0 %v5860_v33  ;;  %v1359_v33 = vsel %vm6436_vm5, %v4395_v45, %v1358_v28  ;;  %v6836_v61 = vld [vmem:[%s5994_s24 + $0xd0] sm:$0xf]  ;;  %v7189_v58 = vld [vmem:[#allocation3_spill] sm:$0xff]  ;;  %v7191_v27 = vld [vmem:[#allocation5_spill] sm:$0xff] }
  0x87   : > { %5141 = vmatprep.mubr.bf16.mxu1 %v6564_v52  ;;  %5170 = vmatpush3.bf16.msra.mxu1 %v5865_v17  ;;  %v4411_v56 = vcombine.low %v1359_v33, %v1362_v3  ;;  %v5875_v17 = vld [vmem:[%s7098_s1 + $0xd0] sm:$0xff]   ;;  %v5891_v8 = vld [vmem:[%s7099_s2 + $0x8] sm:$0xff]   ;;  %v5894_v33 = vld [vmem:[%s7098_s1 + $0x218] sm:$0xff]   ;;  %v3157_v39 = vrot.slane %v6836_v61, 5 }
  0x88   : > { %5171 = vmatprep.subr.bf16.mxu1 %v5869_v0  ;;  %5361 = vmatprep.subr.bf16.mxu0 %v5864_v21  ;;  %v5890_v63 = vld [vmem:[%s7098_s1 + $0x208] sm:$0xff]   ;;  %v7190_v45 = vld [vmem:[#allocation4_spill] sm:$0xff]  ;;  %v5897_v3 = vld [vmem:[%s7099_s2 + $0x20] sm:$0xff]  }
  0x89   : > { %5330 = vmatmul.mubr.bf16.gmra.mrb[12].mxu0 %v6594_v2 }
  0x8a   : > { %5333 = vmatprep.mubr.bf16.mxu0 %v6611_v35  ;;  %5362 = vmatpush3.bf16.msra.mxu0 %v5864_v21  ;;  %v5882_v21 = vld [vmem:[%s7098_s1 + $0x1f0] sm:$0xff]  }
  0x8b   : > { %5172 = vmatpush3.bf16.msra.mxu1 %v5869_v0  ;;  %5363 = vmatprep.subr.bf16.mxu0 %v5868_v10  ;;  %v5887_v0 = vld [vmem:[%s7098_s1 + $0xf8] sm:$0xff]  }
  0x8c   : > { %5205 = vmatprep.subr.bf16.mxu1 %v5871_v44 }
  0x8e   : > { %5142 = vmatmul.mubr.bf16.gmra.mrb[16].mxu1 %v6581_v43  ;;  %5364 = vmatpush3.bf16.msra.mxu0 %v5868_v10  ;;  %v5889_v10 = vld [vmem:[%s7099_s2] sm:$0xff]  }
  0x8f   : > { %5145 = vmatprep.mubr.bf16.mxu1 %v6600_v25  ;;  %5397 = vmatprep.subr.bf16.mxu0 %v5870_v4 }
  0x91   : > { %5334 = vmatmul.mubr.bf16.gmra.mrb[16].mxu0 %v6635_v18 }
  0x92   : > { %5337 = vmatprep.mubr.bf16.mxu0 %v6645_v29 }
  0x96   : > { %5146 = vmatmul.mubr.bf16.gmra.mrb[20].mxu1 %v6617_v59 }
  0x97   : > { %5149 = vmatprep.mubr.bf16.mxu1 %v6631_v47 }
  0x99   : > { %5338 = vmatmul.mubr.bf16.gmra.mrb[20].mxu0 %v6662_v38 }
  0x9a   : > { %5341 = vmatprep.mubr.bf16.mxu0 %v6686_v32 }
  0x9e   : > { %5150 = vmatmul.mubr.bf16.gmra.mrb[24].mxu1 %v6651_v51 }
  0x9f   : > { %5153 = vmatprep.mubr.bf16.mxu1 %v6668_v13 }
  0xa1   : > { %5342 = vmatmul.mubr.bf16.gmra.mrb[24].mxu0 %v6695_v20 }
  0xa2   : > { %5345 = vmatprep.mubr.bf16.mxu0 %v6707_v49 }
  0xa6   : > { %5154 = vmatmul.mubr.bf16.gmra.mrb[28].mxu1 %v6683_v37 }
  0xa7   : > { %5173 = vmatprep.mubr.bf16.mxu1 %v4411_v56  ;;  %v7192_v56 = vld [vmem:[#allocation6_spill] sm:$0xff] }
  0xa9   : > { %5346 = vmatmul.mubr.bf16.gmra.mrb[28].mxu0 %v6721_v7 }
  0xaa   : > { %5365 = vmatprep.mubr.bf16.mxu0 %v6459_v11 }
  0xae   : > { %5174 = vmatmul.mubr.bf16.vlgmr.msra.gmra.mrb[0].mxu1 %v6477_v57  ;;  %v5877_v57 = vld [vmem:[%s7098_s1 + $0xd8] sm:$0xff]  }
  0xaf   : > { %5206 = vmatpush3.bf16.msra.mxu1 %v5871_v44  ;;  %5177 = vmatprep.mubr.bf16.mxu1 %v6492_v16  ;;  %v5888_v44 = vld [vmem:[%s7098_s1 + $0x200] sm:$0xff]  }
  0xb0   : > { %5207 = vmatprep.subr.bf16.mxu1 %v5873_v9 }
  0xb1   : > { %5366 = vmatmul.mubr.bf16.vlgmr.msra.gmra.mrb[0].mxu0 %v6489_v40 }
  0xb2   : > { %5398 = vmatpush3.bf16.msra.mxu0 %v5870_v4  ;;  %5369 = vmatprep.mubr.bf16.mxu0 %v6506_v62  ;;  %v6833_v4 = vld [vmem:[%s5994_s24 + $0xcc] sm:$0xf] }
  0xb3   : > { %5208 = vmatpush3.bf16.msra.mxu1 %v5873_v9  ;;  %5399 = vmatprep.subr.bf16.mxu0 %v5872_v41  ;;  %v4463_v28 = vcombine.low %v6833_v4, %v6836_v61  ;;  %v7193_v9 = vld [vmem:[#allocation7_spill] sm:$0xff] }
  0xb4   : > { %5209 = vmatprep.subr.bf16.mxu1 %v5875_v17 }
  0xb6   : > { %5178 = vmatmul.mubr.bf16.gmra.mrb[4].mxu1 %v6502_v42  ;;  %5400 = vmatpush3.bf16.msra.mxu0 %v5872_v41  ;;  %v5898_v41 = vld [vmem:[%s7098_s1 + $0x228] sm:$0xff]  }
  0xb7   : > { %5181 = vmatprep.mubr.bf16.mxu1 %v6533_v55  ;;  %5210 = vmatpush3.bf16.msra.mxu1 %v5875_v17  ;;  %v5901_v17 = vld [vmem:[%s7099_s2 + $0x30] sm:$0xff]  }
  0xb8   : > { %5211 = vmatprep.subr.bf16.mxu1 %v5877_v57  ;;  %5401 = vmatprep.subr.bf16.mxu0 %v5874_v48 }
  0xb9   : > { %5370 = vmatmul.mubr.bf16.gmra.mrb[4].mxu0 %v6516_v24 }
  0xba   : > { %5373 = vmatprep.mubr.bf16.mxu0 %v6528_v60  ;;  %5402 = vmatpush3.bf16.msra.mxu0 %v5874_v48  ;;  %v7195_v48 = vld [vmem:[#allocation10_spill] sm:$0xff] }
  0xbb   : > { %5212 = vmatpush3.bf16.msra.mxu1 %v5877_v57  ;;  %5403 = vmatprep.subr.bf16.mxu0 %v5876_v22  ;;  %v7194_v57 = vld [vmem:[#allocation8_spill] sm:$0xff] }
  0xbc   : > { %5213 = vmatprep.subr.bf16.mxu1 %v5879_v53 }
  0xbe   : > { %5182 = vmatmul.mubr.bf16.gmra.mrb[8].mxu1 %v6542_v5  ;;  %5404 = vmatpush3.bf16.msra.mxu0 %v5876_v22  ;;  %v5902_v22 = vld [vmem:[%s7098_s1 + $0x238] sm:$0xff]  }
  0xbf   : > { %5185 = vmatprep.mubr.bf16.mxu1 %v6558_v54  ;;  %5214 = vmatpush3.bf16.msra.mxu1 %v5879_v53  ;;  %v7196_v53 = vld [vmem:[#allocation13_spill] sm:$0xff] }
  0xc0   : > { %5215 = vmatprep.subr.bf16.mxu1 %v5881_v23  ;;  %5405 = vmatprep.subr.bf16.mxu0 %v5878_v31 }
  0xc1   : > { %5374 = vmatmul.mubr.bf16.gmra.mrb[8].mxu0 %v6548_v50 }
  0xc2   : > { %5377 = vmatprep.mubr.bf16.mxu0 %v6564_v52  ;;  %5406 = vmatpush3.bf16.msra.mxu0 %v5878_v31  ;;  %v2873_v31 = vshll.u32 %v6833_v4, 16 }
  0xc3   : > { %5216 = vmatpush3.bf16.msra.mxu1 %v5881_v23  ;;  %5407 = vmatprep.subr.bf16.mxu0 %v5880_v15  ;;  %v7197_v23 = vld [vmem:[#allocation18_spill] sm:$0xff] }
  0xc4   : > { %5217 = vmatprep.subr.bf16.mxu1 %v5883_v36 }
  0xc6   : > { %5186 = vmatmul.mubr.bf16.gmra.mrb[12].mxu1 %v6587_v6  ;;  %5408 = vmatpush3.bf16.msra.mxu0 %v5880_v15  ;;  %v2883_v15 = vshrl.u32 %v6836_v61, 16 }
  0xc7   : > { %5189 = vmatprep.mubr.bf16.mxu1 %v6594_v2  ;;  %5218 = vmatpush3.bf16.msra.mxu1 %v5883_v36  ;;  %v7199_v36 = vld [vmem:[#allocation25_spill] sm:$0xff] }
  0xc8   : > { %5219 = vmatprep.subr.bf16.mxu1 %v5887_v0  ;;  %5409 = vmatprep.subr.bf16.mxu0 %v5882_v21 }
  0xc9   : > { %5378 = vmatmul.mubr.bf16.gmra.mrb[12].mxu0 %v6581_v43 }
  0xca   : > { %5381 = vmatprep.mubr.bf16.mxu0 %v6600_v25  ;;  %5410 = vmatpush3.bf16.msra.mxu0 %v5882_v21  ;;  %v2875_v21 = vrot.slane %v2873_v31, 5 }
  0xcb   : > { %5220 = vmatpush3.bf16.msra.mxu1 %v5887_v0  ;;  %5411 = vmatprep.subr.bf16.mxu0 %v5886_v14  ;;  %v2879_v0 = vshll.u32 %v6836_v61, 16 }
  0xcc   : > { %5493 = vmatprep.subr.bf16.mxu1 %v5889_v10 }
  0xce   : > { %5190 = vmatmul.mubr.bf16.gmra.mrb[16].mxu1 %v6611_v35  ;;  %5412 = vmatpush3.bf16.msra.mxu0 %v5886_v14  ;;  %v2885_v14 = vrot.slane %v2883_v15, 4 }
  0xcf   : > { %5193 = vmatprep.mubr.bf16.mxu1 %v6635_v18  ;;  %5445 = vmatprep.subr.bf16.mxu0 %v5888_v44 }
  0xd1   : > { %5382 = vmatmul.mubr.bf16.gmra.mrb[16].mxu0 %v6617_v59 }
  0xd2   : > { %5385 = vmatprep.mubr.bf16.mxu0 %v6631_v47 }
  0xd6   : > { %5194 = vmatmul.mubr.bf16.gmra.mrb[20].mxu1 %v6645_v29 }
  0xd7   : > { %5197 = vmatprep.mubr.bf16.mxu1 %v6662_v38 }
  0xd9   : > { %5386 = vmatmul.mubr.bf16.gmra.mrb[20].mxu0 %v6651_v51 }
  0xda   : > { %5389 = vmatprep.mubr.bf16.mxu0 %v6668_v13 }
  0xde   : > { %5198 = vmatmul.mubr.bf16.gmra.mrb[24].mxu1 %v6686_v32 }
  0xdf   : > { %5201 = vmatprep.mubr.bf16.mxu1 %v6695_v20 }
  0xe1   : > { %5390 = vmatmul.mubr.bf16.gmra.mrb[24].mxu0 %v6683_v37 }
  0xe2   : > { %5393 = vmatprep.mubr.bf16.mxu0 %v6704_v46 }
  0xe6   : > { %5202 = vmatmul.mubr.bf16.gmra.mrb[28].mxu1 %v6707_v49 }
  0xe7   : > { %5221 = vmatprep.mubr.bf16.mxu1 %v6449_v30  ;;  %v5893_v30 = vld [vmem:[%s7099_s2 + $0x10] sm:$0xff]  }
  0xe9   : > { %5394 = vmatmul.mubr.bf16.gmra.mrb[28].mxu0 %v4463_v28 }
  0xea   : > { %5413 = vmatprep.mubr.bf16.mxu0 %v7189_v58 }
  0xee   : > { %5222 = vmatmul.mubr.bf16.vlgmr.msra.gmra.mrb[0].mxu1 %v6459_v11  ;;  %v5895_v11 = vld [vmem:[%s7099_s2 + $0x18] sm:$0xff]  }
  0xef   : > { %5494 = vmatpush3.bf16.msra.mxu1 %v5889_v10  ;;  %5225 = vmatprep.mubr.bf16.mxu1 %v6489_v40  ;;  %v5892_v40 = vld [vmem:[%s7098_s1 + $0x210] sm:$0xff]  }
  0xf0   : > { %5495 = vmatprep.subr.bf16.mxu1 %v5891_v8  ;;  %v339_v10 = vld [vmem:[%s5994_s24 + $0xd4] sm:$0x1]  ;;  %s4565_s24 = sshll.u32 %s7202_s22, 7 }
  0xf1   : > { %5414 = vmatmul.mubr.bf16.vlgmr.msra.gmra.mrb[0].mxu0 %v7190_v45  ;;  %s7020_s17 = scalar_lea.vmem %s7101_s4, %s4565_s24  ;;  %s7027_s20 = scalar_lea.vmem %s7100_s3, %s4565_s24 }
  0xf2   : > { %5446 = vmatpush3.bf16.msra.mxu0 %v5888_v44  ;;  %5417 = vmatprep.mubr.bf16.mxu0 %v7191_v27 }
  0xf3   : > { %5496 = vmatpush3.bf16.msra.mxu1 %v5891_v8  ;;  %5447 = vmatprep.subr.bf16.mxu0 %v5890_v63  ;;  %v2889_v8 = vshll.u32 %v339_v10, 16 }
  0xf4   : > { %5497 = vmatprep.subr.bf16.mxu1 %v5893_v30 }
  0xf6   : > { %5226 = vmatmul.mubr.bf16.gmra.mrb[4].mxu1 %v6506_v62  ;;  %5448 = vmatpush3.bf16.msra.mxu0 %v5890_v63  ;;  %v5899_v62 = vld [vmem:[%s7099_s2 + $0x28] sm:$0xff]  }
  0xf7   : > { %5229 = vmatprep.mubr.bf16.mxu1 %v6516_v24  ;;  %5498 = vmatpush3.bf16.msra.mxu1 %v5893_v30  ;;  %v5896_v24 = vld [vmem:[%s7098_s1 + $0x220] sm:$0xff]   ;;  %v2891_v30 = vrot.slane %v2889_v8, 5 }
  0xf8   : > { %5499 = vmatprep.subr.bf16.mxu1 %v5895_v11  ;;  %5449 = vmatprep.subr.bf16.mxu0 %v5892_v40 }
  0xf9   : > { %5418 = vmatmul.mubr.bf16.gmra.mrb[4].mxu0 %v7192_v56 }
  0xfa   : > { %5421 = vmatprep.mubr.bf16.mxu0 %v7193_v9  ;;  %5450 = vmatpush3.bf16.msra.mxu0 %v5892_v40 }
  0xfb   : > { %5500 = vmatpush3.bf16.msra.mxu1 %v5895_v11  ;;  %5451 = vmatprep.subr.bf16.mxu0 %v5894_v33 }
  0xfc   : > { %5501 = vmatprep.subr.bf16.mxu1 %v5897_v3 }
  0xfe   : > { %5230 = vmatmul.mubr.bf16.gmra.mrb[8].mxu1 %v6528_v60  ;;  %5452 = vmatpush3.bf16.msra.mxu0 %v5894_v33  ;;  %v5903_v60 = vld [vmem:[%s7099_s2 + $0x38] sm:$0xff]   ;;  %v7200_v33 = vld [vmem:[#allocation2_spill] sm:$0xff] }
  0xff   : > { %5233 = vmatprep.mubr.bf16.mxu1 %v6548_v50  ;;  %5502 = vmatpush3.bf16.msra.mxu1 %v5897_v3  ;;  %v5900_v50 = vld [vmem:[%s7098_s1 + $0x230] sm:$0xff]  }
 0x100   : > { %5503 = vmatprep.subr.bf16.mxu1 %v5899_v62  ;;  %5453 = vmatprep.subr.bf16.mxu0 %v5896_v24 }
 0x101   : > { %5422 = vmatmul.mubr.bf16.gmra.mrb[8].mxu0 %v7194_v57 }
 0x102   : > { %5425 = vmatprep.mubr.bf16.mxu0 %v7195_v48  ;;  %5454 = vmatpush3.bf16.msra.mxu0 %v5896_v24 }
 0x103   : > { %5504 = vmatpush3.bf16.msra.mxu1 %v5899_v62  ;;  %5455 = vmatprep.subr.bf16.mxu0 %v5898_v41 }
 0x104   : > { %5505 = vmatprep.subr.bf16.mxu1 %v5901_v17 }
 0x106   : > { %5234 = vmatmul.mubr.bf16.gmra.mrb[12].mxu1 %v6564_v52  ;;  %5456 = vmatpush3.bf16.msra.mxu0 %v5898_v41  ;;  %v7198_v52 = vld [vmem:[#allocation22_spill] sm:$0xff] }
 0x107   : > { %5237 = vmatprep.mubr.bf16.mxu1 %v6581_v43  ;;  %5506 = vmatpush3.bf16.msra.mxu1 %v5901_v17  ;;  %v2870_v43 = vshrl.u32 %v6833_v4, 16 }
 0x108   : > { %5507 = vmatprep.subr.bf16.mxu1 %v5903_v60  ;;  %5457 = vmatprep.subr.bf16.mxu0 %v5900_v50 }
 0x109   : > { %5426 = vmatmul.mubr.bf16.gmra.mrb[12].mxu0 %v7196_v53 }
 0x10a   : > { %5429 = vmatprep.mubr.bf16.mxu0 %v7197_v23  ;;  %5458 = vmatpush3.bf16.msra.mxu0 %v5900_v50 }
 0x10b   : > { %5508 = vmatpush3.bf16.msra.mxu1 %v5903_v60  ;;  %5459 = vmatprep.subr.bf16.mxu0 %v5902_v22 }
 0x10e   : > { %5238 = vmatmul.mubr.bf16.gmra.mrb[16].mxu1 %v6600_v25  ;;  %5460 = vmatpush3.bf16.msra.mxu0 %v5902_v22  ;;  %v2872_v25 = vrot.slane %v2870_v43, 4 }
 0x10f   : > { %5241 = vmatprep.mubr.bf16.mxu1 %v6617_v59  ;;  %v2881_v59 = vrot.slane %v2879_v0, 5 }
 0x110   : > { %v2876_v44 = vor.u32 %v2875_v21, %v2872_v25 }
 0x111   : > { %5430 = vmatmul.mubr.bf16.gmra.mrb[16].mxu0 %v7198_v52  ;;  %v2886_v28 = vor.u32 %v2885_v14, %v2881_v59 }
 0x112   : > { %5433 = vmatprep.mubr.bf16.mxu0 %v7199_v36  ;;  %v2877_v63 = vrot.slane %v2876_v44, 4 }
 0x116   : > { %5242 = vmatmul.mubr.bf16.gmra.mrb[20].mxu1 %v6631_v47  ;;  %v2887_v47 = vrot.slane %v2886_v28, 4 }
 0x117   : > { %5245 = vmatprep.mubr.bf16.mxu1 %v6651_v51  ;;  %v2882_v51 = vsel %vm6045_vm2, %v2877_v63, %v2881_v59 }
 0x118   : > { %v2892_v11 = vsel %vm6045_vm2, %v2887_v47, %v2891_v30 }
 0x119   : > { %5434 = vmatmul.mubr.bf16.gmra.mrb[20].mxu0 %v6413_v19  ;;  %v4472_v40 = vcombine.low %v2882_v51, %v2892_v11 }
 0x11a   : > { %5437 = vmatprep.mubr.bf16.mxu0 %v6429_v1 }
 0x11e   : > { %5246 = vmatmul.mubr.bf16.gmra.mrb[24].mxu1 %v6668_v13 }
 0x11f   : > { %5249 = vmatprep.mubr.bf16.mxu1 %v6683_v37 }
 0x121   : > { %5438 = vmatmul.mubr.bf16.gmra.mrb[24].mxu0 %v6451_v34 }
 0x122   : > { %5441 = vmatprep.mubr.bf16.mxu0 %v6481_v12 }
 0x126   : > { %5250 = vmatmul.mubr.bf16.gmra.mrb[28].mxu1 %v6704_v46 }
 0x127   : > { %5509 = vmatprep.mubr.bf16.mxu1 %v7200_v33 }
 0x129   : > { %5442 = vmatmul.mubr.bf16.gmra.mrb[28].mxu0 %v4472_v40 }
 0x12a   : > { %5461 = vmatprep.mubr.bf16.mxu0 %v6492_v16  ;;  %v4481_v16 = vrot.slane %v6833_v4, 9 }
 0x12e   : > { %5510 = vmatmul.mubr.bf16.vlgmr.msra.gmra.mrb[32].mxu1 %v7189_v58 }
 0x12f   : > { %5513 = vmatprep.mubr.bf16.mxu1 %v7190_v45 }
 0x131   : > { %5462 = vmatmul.mubr.bf16.vlgmr.msra.gmra.mrb[0].mxu0 %v6502_v42  ;;  %v3159_v42 = vrot.slane %v3157_v39, 4 }
 0x132   : > { %5465 = vmatprep.mubr.bf16.mxu0 %v6533_v55  ;;  %v3160_v55 = vrot.slane %v339_v10, 5 }
 0x136   : > { %5514 = vmatmul.mubr.bf16.gmra.mrb[36].mxu1 %v7191_v27 }
 0x137   : > { %5517 = vmatprep.mubr.bf16.mxu1 %v7192_v56 }
 0x139   : > { %5466 = vmatmul.mubr.bf16.gmra.mrb[4].mxu0 %v6542_v5  ;;  %v3161_v5 = vsel %vm6436_vm5, %v3159_v42, %v3160_v55 }
 0x13a   : > { %5469 = vmatprep.mubr.bf16.mxu0 %v6558_v54 }
 0x13e   : > { %5518 = vmatmul.mubr.bf16.gmra.mrb[40].mxu1 %v7193_v9 }
 0x13f   : > { %5521 = vmatprep.mubr.bf16.mxu1 %v7194_v57 }
 0x141   : > { %5470 = vmatmul.mubr.bf16.gmra.mrb[8].mxu0 %v6587_v6 }
 0x142   : > { %5473 = vmatprep.mubr.bf16.mxu0 %v6594_v2 }
 0x146   : > { %5522 = vmatmul.mubr.bf16.gmra.mrb[44].mxu1 %v7195_v48 }
 0x147   : > { %5525 = vmatprep.mubr.bf16.mxu1 %v7196_v53 }
 0x149   : > { %5474 = vmatmul.mubr.bf16.gmra.mrb[12].mxu0 %v6611_v35 }
 0x14a   : > { %5477 = vmatprep.mubr.bf16.mxu0 %v6635_v18 }
 0x14e   : > { %5526 = vmatmul.mubr.bf16.gmra.mrb[48].mxu1 %v7197_v23 }
 0x14f   : > { %5529 = vmatprep.mubr.bf16.mxu1 %v7198_v52 }
 0x151   : > { %5478 = vmatmul.mubr.bf16.gmra.mrb[16].mxu0 %v6645_v29 }
 0x152   : > { %5481 = vmatprep.mubr.bf16.mxu0 %v6662_v38 }
 0x156   : > { %5530 = vmatmul.mubr.bf16.gmra.mrb[52].mxu1 %v7199_v36 }
 0x157   : > { %5533 = vmatprep.mubr.bf16.mxu1 %v6413_v19  ;;  %v3158_v19 = vsel %vm6436_vm5, %v4481_v16, %v3157_v39 }
 0x158   : > { %v4482_v54 = vcombine.low %v3158_v19, %v3161_v5 }
 0x159   : > { %5482 = vmatmul.mubr.bf16.gmra.mrb[20].mxu0 %v6686_v32 }
 0x15a   : > { %5485 = vmatprep.mubr.bf16.mxu0 %v6695_v20 }
 0x15e   : > { %5534 = vmatmul.mubr.bf16.gmra.mrb[56].mxu1 %v6429_v1 }
 0x15f   : > { %5537 = vmatprep.mubr.bf16.mxu1 %v6451_v34 }
 0x161   : > { %5486 = vmatmul.mubr.bf16.gmra.mrb[24].mxu0 %v6707_v49 }
 0x162   : > { %5489 = vmatprep.mubr.bf16.mxu0 %v6721_v7 }
 0x166   : > { %5538 = vmatmul.mubr.bf16.gmra.mrb[60].mxu1 %v6481_v12 }
 0x169   : > { %5490 = vmatmul.mubr.bf16.gmra.mrb[28].mxu0 %v4482_v54 }
 0x1c1   : > { %v5223_v1 = vpop.f32.mrb[0].mxu1 }
 0x1c2   : > { %v1893_v34 = vpop.f32.mrb[1].mxu1 }
 0x1c3   : > { %v5224_v6 = vpop.f32.mrb[2].mxu1 }
 0x1c4   : > { %v1896_v2 = vpop.f32.mrb[3].mxu1 }
 0x1c9   : > { %v6960_v35 = vpop.f32.mrb[4].mxu1 }
 0x1ca   : > { %v6962_v18 = vpop.f32.mrb[5].mxu1 }
 0x1cb   : > { %v6964_v29 = vpop.f32.mrb[6].mxu1 }
 0x1cc   : > { %v6966_v38 = vpop.f32.mrb[7].mxu1 }
 0x1d1   : > { %v6968_v13 = vpop.f32.mrb[8].mxu1 }
 0x1d2   : > { %v6970_v26 = vpop.f32.mrb[9].mxu1 }
 0x1d3   : > { %v6972_v37 = vpop.f32.mrb[10].mxu1 }
 0x1d4   : > { %v6974_v12 = vpop.f32.mrb[11].mxu1 }
 0x1d9   : > { %v6976_v32 = vpop.f32.mrb[12].mxu1 }
 0x1da   : > { %v6978_v20 = vpop.f32.mrb[13].mxu1 }
 0x1db   : > { %v6980_v46 = vpop.f32.mrb[14].mxu1 }
 0x1dc   : > { %v6982_v49 = vpop.f32.mrb[15].mxu1 }
 0x1e1   : > { %v6984_v7 = vpop.f32.mrb[16].mxu1 }
 0x1e2   : > { %v6986_v4 = vpop.f32.mrb[17].mxu1 }
 0x1e3   : > { %v6988_v61 = vpop.f32.mrb[18].mxu1 }
 0x1e4   : > { %v6990_v58 = vpop.f32.mrb[19].mxu1 }
 0x1e9   : > { %v6992_v45 = vpop.f32.mrb[20].mxu1 }
 0x1ea   : > { %v6994_v27 = vpop.f32.mrb[21].mxu1 }
 0x1eb   : > { %v6996_v3 = vpop.f32.mrb[22].mxu1 }
 0x1ec   : > { %v6998_v56 = vpop.f32.mrb[23].mxu1 }
 0x1f1   : > { %v7000_v9 = vpop.f32.mrb[24].mxu1 }
 0x1f2   : > { %v7002_v62 = vpop.f32.mrb[25].mxu1 }
 0x1f3   : > { %v7004_v24 = vpop.f32.mrb[26].mxu1 }
 0x1f4   : > { %v7006_v41 = vpop.f32.mrb[27].mxu1 }
 0x1f9   : > { %v7008_v17 = vpop.f32.mrb[28].mxu1 }
 0x1fa   : > { %v7010_v57 = vpop.f32.mrb[29].mxu1 }
 0x1fb   : > { %v7012_v48 = vpop.f32.mrb[30].mxu1 }
 0x1fc   : > { %v7014_v60 = vpop.f32.mrb[31].mxu1 }
 0x201   : > { %v5511_v50 = vpop.f32.mrb[32].mxu1 }
 0x202   : > { %v3790_v22 = vpop.f32.mrb[33].mxu1  ;;  %v4116_v21 = vmul.f32 %v5511_v50, %v5511_v50 }
 0x203   : > { %v4114_v53 = vmul.f32 %v3790_v22, %v3790_v22  ;;  %v5512_v23 = vpop.f32.mrb[34].mxu1 }
 0x204   : > { %v4719_v52 = vpack.c.bf16 %v5512_v23, %v5511_v50  ;;  %v3793_v43 = vpop.f32.mrb[35].mxu1  ;;  %v5463_v0 = vpop.f32.mrb[0].mxu0  ;;  %v4117_v11 = vmul.f32 %v5512_v23, %v5512_v23 }
 0x205   : > { %v4714_v31 = vpack.c.bf16 %v3793_v43, %v3790_v22  ;;  %v4077_v15 = vadd.f32 %v3793_v43, %v3790_v22  ;;  %v4115_v36 = vmul.f32 %v3793_v43, %v3793_v43  ;;  %v5541_v25 = vadd.f32 %v5463_v0, %v5223_v1  ;;  %v3264_v59 = vpop.f32.mrb[1].mxu0 }
 0x206   : > { %4806 = vst [vmem:[%s7020_s17 + $0x8] sm:$0xff] %v4719_v52   ;;  %v5542_v44 = vadd.f32 %v3264_v59, %v1893_v34  ;;  %v5464_v28 = vpop.f32.mrb[2].mxu0 }
 0x207   : > { %4715 = vst [vmem:[%s7020_s17] sm:$0xff] %v4714_v31   ;;  %v4078_v14 = vadd.f32 %v5511_v50, %v4077_v15  ;;  %v4146_v10 = vadd.f32 %v4115_v36, %v4114_v53  ;;  %v5543_v8 = vadd.f32 %v5464_v28, %v5224_v6  ;;  %v3267_v63 = vpop.f32.mrb[3].mxu0  ;;  %v3622_v50 = vmul.f32 %v5541_v25, %v5541_v25 }
 0x208   : > { %v5544_v40 = vadd.f32 %v3267_v63, %v1896_v2  ;;  %v3620_v39 = vmul.f32 %v5542_v44, %v5542_v44 }
 0x209   : > { %v4147_v47 = vadd.f32 %v4146_v10, %v4116_v21  ;;  %v5515_v30 = vpop.f32.mrb[36].mxu1  ;;  %v4079_v51 = vadd.f32 %v5512_v23, %v4078_v14  ;;  %v4639_v16 = vpack.c.bf16 %v5543_v8, %v5541_v25  ;;  %v3623_v36 = vmul.f32 %v5543_v8, %v5543_v8 }
 0x20a   : > { %v3806_v33 = vpop.f32.mrb[37].mxu1  ;;  %v4634_v5 = vpack.c.bf16 %v5544_v40, %v5542_v44  ;;  %v3583_v54 = vadd.f32 %v5544_v40, %v5542_v44  ;;  %v3621_v1 = vmul.f32 %v5544_v40, %v5544_v40 }
 0x20b   : > { %v4080_v42 = vadd.f32 %v4079_v51, %v3806_v33  ;;  %v4118_v55 = vmul.f32 %v3806_v33, %v3806_v33  ;;  %v5516_v19 = vpop.f32.mrb[38].mxu1  ;;  %v4148_v34 = vadd.f32 %v4147_v47, %v4117_v11  ;;  %4791 = vst [vmem:[%s7027_s20 + $0x8] sm:$0xff] %v4639_v16   ;;  %v4120_v47 = vmul.f32 %v5515_v30, %v5515_v30 }
 0x20c   : > { %v3809_v6 = vpop.f32.mrb[39].mxu1  ;;  %v4729_v22 = vpack.c.bf16 %v5516_v19, %v5515_v30  ;;  %4635 = vst [vmem:[%s7027_s20] sm:$0xff] %v4634_v5   ;;  %v3584_v2 = vadd.f32 %v5541_v25, %v3583_v54  ;;  %v3652_v52 = vadd.f32 %v3621_v1, %v3620_v39  ;;  %v5467_v43 = vpop.f32.mrb[4].mxu0  ;;  %v4121_v5 = vmul.f32 %v5516_v19, %v5516_v19 }
 0x20d   : > { %v4724_v53 = vpack.c.bf16 %v3809_v6, %v3806_v33  ;;  %v4081_v23 = vadd.f32 %v4080_v42, %v3809_v6  ;;  %v4149_v31 = vadd.f32 %v4148_v34, %v4118_v55  ;;  %v4119_v15 = vmul.f32 %v3809_v6, %v3809_v6  ;;  %v3280_v21 = vpop.f32.mrb[5].mxu0 }
 0x20e   : > { %v5545_v0 = vadd.f32 %v5467_v43, %v6960_v35  ;;  %4808 = vst [vmem:[%s7020_s17 + $0x18] sm:$0xff] %v4729_v22   ;;  %v3653_v14 = vadd.f32 %v3652_v52, %v3622_v50  ;;  %v5546_v10 = vadd.f32 %v3280_v21, %v6962_v18  ;;  %v3585_v44 = vadd.f32 %v5543_v8, %v3584_v2  ;;  %v5468_v28 = vpop.f32.mrb[6].mxu0 }
 0x20f   : > { %4807 = vst [vmem:[%s7020_s17 + $0x10] sm:$0xff] %v4724_v53   ;;  %v4082_v59 = vadd.f32 %v5515_v30, %v4081_v23  ;;  %v4150_v63 = vadd.f32 %v4149_v31, %v4119_v15  ;;  %v5547_v25 = vadd.f32 %v5468_v28, %v6964_v29  ;;  %v3283_v51 = vpop.f32.mrb[7].mxu0 }
 0x210   : > { %v3586_v33 = vadd.f32 %v5546_v10, %v3585_v44  ;;  %v3624_v39 = vmul.f32 %v5546_v10, %v5546_v10  ;;  %v3654_v35 = vadd.f32 %v3653_v14, %v3623_v36  ;;  %v5548_v16 = vadd.f32 %v3283_v51, %v6966_v38 }
 0x211   : > { %v5519_v11 = vpop.f32.mrb[40].mxu1  ;;  %v4083_v40 = vadd.f32 %v5516_v19, %v4082_v59  ;;  %v4649_v55 = vpack.c.bf16 %v5547_v25, %v5545_v0  ;;  %v4151_v18 = vadd.f32 %v4150_v63, %v4120_v47  ;;  %v3626_v23 = vmul.f32 %v5545_v0, %v5545_v0 }
 0x212   : > { %v3822_v42 = vpop.f32.mrb[41].mxu1  ;;  %v3655_v54 = vadd.f32 %v3654_v35, %v3624_v39  ;;  %v4644_v1 = vpack.c.bf16 %v5548_v16, %v5546_v10  ;;  %v3587_v30 = vadd.f32 %v5548_v16, %v3586_v33  ;;  %v3625_v34 = vmul.f32 %v5548_v16, %v5548_v16 }
 0x213   : > { %v5520_v8 = vpop.f32.mrb[42].mxu1  ;;  %4793 = vst [vmem:[%s7027_s20 + $0x18] sm:$0xff] %v4649_v55   ;;  %v4084_v6 = vadd.f32 %v4083_v40, %v3822_v42  ;;  %v4122_v50 = vmul.f32 %v3822_v42, %v3822_v42  ;;  %v4152_v22 = vadd.f32 %v4151_v18, %v4121_v5  ;;  %v3627_v59 = vmul.f32 %v5547_v25, %v5547_v25 }
 0x214   : > { %v3825_v29 = vpop.f32.mrb[43].mxu1  ;;  %v4739_v53 = vpack.c.bf16 %v5520_v8, %v5519_v11  ;;  %4792 = vst [vmem:[%s7027_s20 + $0x10] sm:$0xff] %v4644_v1   ;;  %v3588_v38 = vadd.f32 %v5545_v0, %v3587_v30  ;;  %v3656_v2 = vadd.f32 %v3655_v54, %v3625_v34  ;;  %v5471_v52 = vpop.f32.mrb[8].mxu0  ;;  %v4124_v63 = vmul.f32 %v5519_v11, %v5519_v11 }
 0x215   : > { %v4734_v19 = vpack.c.bf16 %v3825_v29, %v3822_v42  ;;  %v5549_v43 = vadd.f32 %v5471_v52, %v6968_v13  ;;  %v3296_v31 = vpop.f32.mrb[9].mxu0  ;;  %v4153_v15 = vadd.f32 %v4152_v22, %v4122_v50  ;;  %v4085_v36 = vadd.f32 %v4084_v6, %v3825_v29 }
 0x216   : > { %4810 = vst [vmem:[%s7020_s17 + $0x28] sm:$0xff] %v4739_v53   ;;  %v4123_v21 = vmul.f32 %v3825_v29, %v3825_v29  ;;  %v3657_v14 = vadd.f32 %v3656_v2, %v3626_v23  ;;  %v5550_v10 = vadd.f32 %v3296_v31, %v6970_v26  ;;  %v3589_v44 = vadd.f32 %v5547_v25, %v3588_v38  ;;  %v5472_v28 = vpop.f32.mrb[10].mxu0 }
 0x217   : > { %4809 = vst [vmem:[%s7020_s17 + $0x20] sm:$0xff] %v4734_v19   ;;  %v5551_v0 = vadd.f32 %v5472_v28, %v6972_v37  ;;  %v3299_v47 = vpop.f32.mrb[11].mxu0  ;;  %v4086_v51 = vadd.f32 %v5519_v11, %v4085_v36  ;;  %v4125_v26 = vmul.f32 %v5520_v8, %v5520_v8  ;;  %v3630_v50 = vmul.f32 %v5549_v43, %v5549_v43 }
 0x218   : > { %v4154_v40 = vadd.f32 %v4153_v15, %v4123_v21  ;;  %v3590_v33 = vadd.f32 %v5550_v10, %v3589_v44  ;;  %v3628_v39 = vmul.f32 %v5550_v10, %v5550_v10  ;;  %v3658_v35 = vadd.f32 %v3657_v14, %v3627_v59 }
 0x219   : > { %v5523_v13 = vpop.f32.mrb[44].mxu1  ;;  %v5552_v16 = vadd.f32 %v3299_v47, %v6974_v12  ;;  %v4659_v55 = vpack.c.bf16 %v5551_v0, %v5549_v43  ;;  %v4087_v11 = vadd.f32 %v5520_v8, %v4086_v51  ;;  %v3631_v15 = vmul.f32 %v5551_v0, %v5551_v0 }
 0x21a   : > { %v3838_v42 = vpop.f32.mrb[45].mxu1  ;;  %v4155_v25 = vadd.f32 %v4154_v40, %v4124_v63  ;;  %v3659_v18 = vadd.f32 %v3658_v35, %v3628_v39  ;;  %v4128_v14 = vmul.f32 %v5523_v13, %v5523_v13 }
 0x21b   : > { %v5524_v5 = vpop.f32.mrb[46].mxu1  ;;  %v4654_v54 = vpack.c.bf16 %v5552_v16, %v5550_v10  ;;  %v3591_v1 = vadd.f32 %v5552_v16, %v3590_v33  ;;  %v3629_v37 = vmul.f32 %v5552_v16, %v5552_v16  ;;  %4795 = vst [vmem:[%s7027_s20 + $0x28] sm:$0xff] %v4659_v55   ;;  %v4126_v34 = vmul.f32 %v3838_v42, %v3838_v42 }
 0x21c   : > { %v3841_v30 = vpop.f32.mrb[47].mxu1  ;;  %v4156_v29 = vadd.f32 %v4155_v25, %v4125_v26  ;;  %v4749_v6 = vpack.c.bf16 %v5524_v5, %v5523_v13  ;;  %v5475_v53 = vpop.f32.mrb[12].mxu0  ;;  %v4088_v52 = vadd.f32 %v4087_v11, %v3838_v42 }
 0x21d   : > { %4794 = vst [vmem:[%s7027_s20 + $0x20] sm:$0xff] %v4654_v54   ;;  %v3592_v12 = vadd.f32 %v5549_v43, %v3591_v1  ;;  %v3660_v22 = vadd.f32 %v3659_v18, %v3629_v37  ;;  %v4744_v23 = vpack.c.bf16 %v3841_v30, %v3838_v42  ;;  %v5553_v38 = vadd.f32 %v5475_v53, %v6976_v32  ;;  %v3312_v2 = vpop.f32.mrb[13].mxu0 }
 0x21e   : > { %v4157_v19 = vadd.f32 %v4156_v29, %v4126_v34  ;;  %4812 = vst [vmem:[%s7020_s17 + $0x38] sm:$0xff] %v4749_v6   ;;  %v4127_v31 = vmul.f32 %v3841_v30, %v3841_v30  ;;  %v5554_v8 = vadd.f32 %v3312_v2, %v6978_v20  ;;  %v5476_v59 = vpop.f32.mrb[14].mxu0  ;;  %v4089_v44 = vadd.f32 %v4088_v52, %v3841_v30 }
 0x21f   : > { %v3661_v36 = vadd.f32 %v3660_v22, %v3630_v50  ;;  %v3593_v21 = vadd.f32 %v5551_v0, %v3592_v12  ;;  %4811 = vst [vmem:[%s7020_s17 + $0x30] sm:$0xff] %v4744_v23   ;;  %v5555_v43 = vadd.f32 %v5476_v59, %v6980_v46  ;;  %v3315_v10 = vpop.f32.mrb[15].mxu0  ;;  %v4129_v20 = vmul.f32 %v5524_v5, %v5524_v5 }
 0x220   : > { %v4158_v28 = vadd.f32 %v4157_v19, %v4127_v31  ;;  %v3632_v47 = vmul.f32 %v5554_v8, %v5554_v8  ;;  %v5556_v40 = vadd.f32 %v3315_v10, %v6982_v49  ;;  %v4090_v0 = vadd.f32 %v5523_v13, %v4089_v44 }
 0x221   : > { %v5527_v63 = vpop.f32.mrb[48].mxu1  ;;  %v3594_v32 = vadd.f32 %v5554_v8, %v3593_v21  ;;  %v3662_v51 = vadd.f32 %v3661_v36, %v3631_v15  ;;  %v4669_v39 = vpack.c.bf16 %v5555_v43, %v5553_v38  ;;  %v3634_v18 = vmul.f32 %v5553_v38, %v5553_v38 }
 0x222   : > { %v3854_v33 = vpop.f32.mrb[49].mxu1  ;;  %v4159_v35 = vadd.f32 %v4158_v28, %v4128_v14  ;;  %v4664_v55 = vpack.c.bf16 %v5556_v40, %v5554_v8  ;;  %v3633_v26 = vmul.f32 %v5556_v40, %v5556_v40  ;;  %v4091_v54 = vadd.f32 %v5524_v5, %v4090_v0 }
 0x223   : > { %v5528_v16 = vpop.f32.mrb[50].mxu1  ;;  %v3663_v42 = vadd.f32 %v3662_v51, %v3632_v47  ;;  %v3595_v46 = vadd.f32 %v5556_v40, %v3594_v32  ;;  %4797 = vst [vmem:[%s7027_s20 + $0x38] sm:$0xff] %v4669_v39   ;;  %v4130_v1 = vmul.f32 %v3854_v33, %v3854_v33  ;;  %v3635_v30 = vmul.f32 %v5555_v43, %v5555_v43 }
 0x224   : > { %v3857_v25 = vpop.f32.mrb[51].mxu1  ;;  %v4160_v37 = vadd.f32 %v4159_v35, %v4129_v20  ;;  %4796 = vst [vmem:[%s7027_s20 + $0x30] sm:$0xff] %v4664_v55   ;;  %v5479_v34 = vpop.f32.mrb[16].mxu0  ;;  %v4759_v13 = vpack.c.bf16 %v5528_v16, %v5527_v63  ;;  %v4092_v50 = vadd.f32 %v4091_v54, %v3854_v33  ;;  %v4132_v19 = vmul.f32 %v5527_v63, %v5527_v63 }
 0x225   : > { %v3596_v49 = vadd.f32 %v5553_v38, %v3595_v46  ;;  %v3664_v11 = vadd.f32 %v3663_v42, %v3633_v26  ;;  %v5557_v29 = vadd.f32 %v5479_v34, %v6984_v7  ;;  %v3328_v6 = vpop.f32.mrb[17].mxu0  ;;  %v4754_v22 = vpack.c.bf16 %v3857_v25, %v3854_v33 }
 0x226   : > { %v4161_v12 = vadd.f32 %v4160_v37, %v4130_v1  ;;  %v5558_v23 = vadd.f32 %v3328_v6, %v6986_v4  ;;  %v5480_v2 = vpop.f32.mrb[18].mxu0  ;;  %4814 = vst [vmem:[%s7020_s17 + $0x48] sm:$0xff] %v4759_v13   ;;  %v4131_v52 = vmul.f32 %v3857_v25, %v3857_v25  ;;  %v4093_v15 = vadd.f32 %v4092_v50, %v3857_v25 }
 0x227   : > { %v3665_v53 = vadd.f32 %v3664_v11, %v3634_v18  ;;  %v3597_v5 = vadd.f32 %v5555_v43, %v3596_v49  ;;  %v5559_v38 = vadd.f32 %v5480_v2, %v6988_v61  ;;  %v3331_v31 = vpop.f32.mrb[19].mxu0  ;;  %4813 = vst [vmem:[%s7020_s17 + $0x40] sm:$0xff] %v4754_v22   ;;  %v4133_v4 = vmul.f32 %v5528_v16, %v5528_v16 }
 0x228   : > { %v3636_v7 = vmul.f32 %v5558_v23, %v5558_v23  ;;  %v5560_v59 = vadd.f32 %v3331_v31, %v6990_v58  ;;  %v4094_v43 = vadd.f32 %v5527_v63, %v4093_v15  ;;  %v4162_v44 = vadd.f32 %v4161_v12, %v4131_v52 }
 0x229   : > { %v5531_v36 = vpop.f32.mrb[52].mxu1  ;;  %v3598_v8 = vadd.f32 %v5558_v23, %v3597_v5  ;;  %v3666_v21 = vadd.f32 %v3665_v53, %v3635_v30  ;;  %v4679_v10 = vpack.c.bf16 %v5559_v38, %v5557_v29  ;;  %v3638_v33 = vmul.f32 %v5557_v29, %v5557_v29 }
 0x22a   : > { %v3870_v14 = vpop.f32.mrb[53].mxu1  ;;  %v4674_v47 = vpack.c.bf16 %v5560_v59, %v5558_v23  ;;  %v3637_v51 = vmul.f32 %v5560_v59, %v5560_v59  ;;  %v4163_v39 = vadd.f32 %v4162_v44, %v4132_v19  ;;  %v4095_v20 = vadd.f32 %v5528_v16, %v4094_v43 }
 0x22b   : > { %v5532_v28 = vpop.f32.mrb[54].mxu1  ;;  %v3667_v32 = vadd.f32 %v3666_v21, %v3636_v7  ;;  %v3599_v61 = vadd.f32 %v5560_v59, %v3598_v8  ;;  %4799 = vst [vmem:[%s7027_s20 + $0x48] sm:$0xff] %v4679_v10   ;;  %v4134_v0 = vmul.f32 %v3870_v14, %v3870_v14  ;;  %v3639_v35 = vmul.f32 %v5559_v38, %v5559_v38 }
 0x22c   : > { %v3873_v40 = vpop.f32.mrb[55].mxu1  ;;  %4798 = vst [vmem:[%s7027_s20 + $0x40] sm:$0xff] %v4674_v47   ;;  %v5483_v55 = vpop.f32.mrb[20].mxu0  ;;  %v4769_v46 = vpack.c.bf16 %v5532_v28, %v5531_v36  ;;  %v4096_v25 = vadd.f32 %v4095_v20, %v3870_v14  ;;  %v4164_v18 = vadd.f32 %v4163_v39, %v4133_v4  ;;  %v4136_v11 = vmul.f32 %v5531_v36, %v5531_v36 }
 0x22d   : > { %v3600_v58 = vadd.f32 %v5557_v29, %v3599_v61  ;;  %v3668_v42 = vadd.f32 %v3667_v32, %v3637_v51  ;;  %v5561_v63 = vadd.f32 %v5483_v55, %v6992_v45  ;;  %v3344_v26 = vpop.f32.mrb[21].mxu0  ;;  %v4764_v54 = vpack.c.bf16 %v3873_v40, %v3870_v14 }
 0x22e   : > { %v5562_v37 = vadd.f32 %v3344_v26, %v6994_v27  ;;  %v5484_v16 = vpop.f32.mrb[22].mxu0  ;;  %4816 = vst [vmem:[%s7020_s17 + $0x58] sm:$0xff] %v4769_v46   ;;  %v4135_v49 = vmul.f32 %v3873_v40, %v3873_v40  ;;  %v4165_v34 = vadd.f32 %v4164_v18, %v4134_v0  ;;  %v4097_v6 = vadd.f32 %v4096_v25, %v3873_v40 }
 0x22f   : > { %v3669_v1 = vadd.f32 %v3668_v42, %v3638_v33  ;;  %v3601_v30 = vadd.f32 %v5559_v38, %v3600_v58  ;;  %v5563_v13 = vadd.f32 %v5484_v16, %v6996_v3  ;;  %v3347_v29 = vpop.f32.mrb[23].mxu0  ;;  %4815 = vst [vmem:[%s7020_s17 + $0x50] sm:$0xff] %v4764_v54   ;;  %v4137_v5 = vmul.f32 %v5532_v28, %v5532_v28 }
 0x230   : > { %v3640_v12 = vmul.f32 %v5562_v37, %v5562_v37  ;;  %v5564_v53 = vadd.f32 %v3347_v29, %v6998_v56  ;;  %v4098_v2 = vadd.f32 %v5531_v36, %v4097_v6  ;;  %v4166_v52 = vadd.f32 %v4165_v34, %v4135_v49 }
 0x231   : > { %v5535_v50 = vpop.f32.mrb[56].mxu1  ;;  %v3602_v45 = vadd.f32 %v5562_v37, %v3601_v30  ;;  %v3670_v22 = vadd.f32 %v3669_v1, %v3639_v35  ;;  %v4689_v27 = vpack.c.bf16 %v5563_v13, %v5561_v63  ;;  %v3642_v7 = vmul.f32 %v5561_v63, %v5561_v63 }
 0x232   : > { %v3886_v23 = vpop.f32.mrb[57].mxu1  ;;  %v4684_v31 = vpack.c.bf16 %v5564_v53, %v5562_v37  ;;  %v3641_v15 = vmul.f32 %v5564_v53, %v5564_v53  ;;  %v4167_v21 = vadd.f32 %v4166_v52, %v4136_v11  ;;  %v4099_v59 = vadd.f32 %v5532_v28, %v4098_v2 }
 0x233   : > { %v5536_v19 = vpop.f32.mrb[58].mxu1  ;;  %v3671_v38 = vadd.f32 %v3670_v22, %v3640_v12  ;;  %v3603_v3 = vadd.f32 %v5564_v53, %v3602_v45  ;;  %4801 = vst [vmem:[%s7027_s20 + $0x58] sm:$0xff] %v4689_v27   ;;  %v4138_v14 = vmul.f32 %v3886_v23, %v3886_v23  ;;  %v3643_v10 = vmul.f32 %v5563_v13, %v5563_v13 }
 0x234   : > { %v3889_v8 = vpop.f32.mrb[59].mxu1  ;;  %4800 = vst [vmem:[%s7027_s20 + $0x50] sm:$0xff] %v4684_v31   ;;  %v5487_v43 = vpop.f32.mrb[24].mxu0  ;;  %v4779_v44 = vpack.c.bf16 %v5536_v19, %v5535_v50  ;;  %v4100_v47 = vadd.f32 %v4099_v59, %v3886_v23  ;;  %v4168_v61 = vadd.f32 %v4167_v21, %v4137_v5  ;;  %v4140_v0 = vmul.f32 %v5535_v50, %v5535_v50 }
 0x235   : > { %v3604_v56 = vadd.f32 %v5561_v63, %v3603_v3  ;;  %v3672_v4 = vadd.f32 %v3671_v38, %v3641_v15  ;;  %v5565_v36 = vadd.f32 %v5487_v43, %v7000_v9  ;;  %v3360_v32 = vpop.f32.mrb[25].mxu0  ;;  %v4774_v51 = vpack.c.bf16 %v3889_v8, %v3886_v23 }
 0x236   : > { %v5566_v33 = vadd.f32 %v3360_v32, %v7002_v62  ;;  %v5488_v28 = vpop.f32.mrb[26].mxu0  ;;  %4818 = vst [vmem:[%s7020_s17 + $0x68] sm:$0xff] %v4779_v44   ;;  %v4139_v20 = vmul.f32 %v3889_v8, %v3889_v8  ;;  %v4169_v35 = vadd.f32 %v4168_v61, %v4138_v14  ;;  %v4101_v55 = vadd.f32 %v4100_v47, %v3889_v8 }
 0x237   : > { %v3673_v40 = vadd.f32 %v3672_v4, %v3642_v7  ;;  %v3605_v39 = vadd.f32 %v5563_v13, %v3604_v56  ;;  %v5567_v58 = vadd.f32 %v5488_v28, %v7004_v24  ;;  %v3363_v42 = vpop.f32.mrb[27].mxu0  ;;  %4817 = vst [vmem:[%s7020_s17 + $0x60] sm:$0xff] %v4774_v51   ;;  %v4141_v54 = vmul.f32 %v5536_v19, %v5536_v19 }
 0x238   : > { %v3644_v63 = vmul.f32 %v5566_v33, %v5566_v33  ;;  %v5568_v25 = vadd.f32 %v3363_v42, %v7006_v41  ;;  %v4102_v1 = vadd.f32 %v5535_v50, %v4101_v55  ;;  %v4170_v37 = vadd.f32 %v4169_v35, %v4139_v20 }
 0x239   : > { %v5539_v46 = vpop.f32.mrb[60].mxu1  ;;  %v3606_v9 = vadd.f32 %v5566_v33, %v3605_v39  ;;  %v3674_v26 = vadd.f32 %v3673_v40, %v3643_v10  ;;  %v4699_v62 = vpack.c.bf16 %v5567_v58, %v5565_v36  ;;  %v3646_v13 = vmul.f32 %v5565_v36, %v5565_v36 }
 0x23a   : > { %v3902_v18 = vpop.f32.mrb[61].mxu1  ;;  %v4694_v49 = vpack.c.bf16 %v5568_v25, %v5566_v33  ;;  %v3645_v11 = vmul.f32 %v5568_v25, %v5568_v25  ;;  %v4171_v29 = vadd.f32 %v4170_v37, %v4140_v0  ;;  %v4103_v6 = vadd.f32 %v5536_v19, %v4102_v1 }
 0x23b   : > { %v5540_v30 = vpop.f32.mrb[62].mxu1  ;;  %v3675_v16 = vadd.f32 %v3674_v26, %v3644_v63  ;;  %v3607_v24 = vadd.f32 %v5568_v25, %v3606_v9  ;;  %4803 = vst [vmem:[%s7027_s20 + $0x68] sm:$0xff] %v4699_v62   ;;  %v4142_v45 = vmul.f32 %v3902_v18, %v3902_v18  ;;  %v3647_v12 = vmul.f32 %v5567_v58, %v5567_v58 }
 0x23c   : > { %v3905_v34 = vpop.f32.mrb[63].mxu1  ;;  %4802 = vst [vmem:[%s7027_s20 + $0x60] sm:$0xff] %v4694_v49   ;;  %v5491_v53 = vpop.f32.mrb[28].mxu0  ;;  %v4789_v50 = vpack.c.bf16 %v5540_v30, %v5539_v46  ;;  %v4104_v5 = vadd.f32 %v4103_v6, %v3902_v18  ;;  %v4172_v2 = vadd.f32 %v4171_v29, %v4141_v54  ;;  %v4144_v4 = vmul.f32 %v5539_v46, %v5539_v46 }
 0x23d   : > { %v3608_v41 = vadd.f32 %v5565_v36, %v3607_v24  ;;  %v3676_v22 = vadd.f32 %v3675_v16, %v3645_v11  ;;  %v5569_v23 = vadd.f32 %v5491_v53, %v7008_v17  ;;  %v3376_v27 = vpop.f32.mrb[29].mxu0  ;;  %v4784_v52 = vpack.c.bf16 %v3905_v34, %v3902_v18 }
 0x23e   : > { %v5570_v31 = vadd.f32 %v3376_v27, %v7010_v57  ;;  %v5492_v19 = vpop.f32.mrb[30].mxu0  ;;  %4820 = vst [vmem:[%s7020_s17 + $0x78] sm:$0xff] %v4789_v50   ;;  %v4143_v15 = vmul.f32 %v3905_v34, %v3905_v34  ;;  %v4173_v8 = vadd.f32 %v4172_v2, %v4142_v45  ;;  %v4105_v59 = vadd.f32 %v4104_v5, %v3905_v34 }
 0x23f   : > { %v3677_v38 = vadd.f32 %v3676_v22, %v3646_v13  ;;  %v3609_v3 = vadd.f32 %v5567_v58, %v3608_v41  ;;  %v5571_v7 = vadd.f32 %v5492_v19, %v7012_v48  ;;  %v3379_v21 = vpop.f32.mrb[31].mxu0  ;;  %4819 = vst [vmem:[%s7020_s17 + $0x70] sm:$0xff] %v4784_v52   ;;  %v4145_v48 = vmul.f32 %v5540_v30, %v5540_v30 }
 0x240   : > { %v3648_v17 = vmul.f32 %v5570_v31, %v5570_v31  ;;  %v5572_v56 = vadd.f32 %v3379_v21, %v7014_v60  ;;  %v4106_v57 = vadd.f32 %v5539_v46, %v4105_v59  ;;  %v4174_v44 = vadd.f32 %v4173_v8, %v4143_v15 }
 0x241   : > { %v3610_v14 = vadd.f32 %v5570_v31, %v3609_v3  ;;  %v3678_v10 = vadd.f32 %v3677_v38, %v3647_v12  ;;  %v4709_v43 = vpack.c.bf16 %v5571_v7, %v5569_v23  ;;  %v3650_v33 = vmul.f32 %v5569_v23, %v5569_v23 }
 0x242   : > { %v4704_v32 = vpack.c.bf16 %v5572_v56, %v5570_v31  ;;  %v3649_v61 = vmul.f32 %v5572_v56, %v5572_v56  ;;  %v4107_v51 = vadd.f32 %v5540_v30, %v4106_v57  ;;  %v4175_v40 = vadd.f32 %v4174_v44, %v4144_v4 }
 0x243   : > { %v3679_v36 = vadd.f32 %v3678_v10, %v3648_v17  ;;  %v3611_v47 = vadd.f32 %v5572_v56, %v3610_v14  ;;  %4805 = vst [vmem:[%s7027_s20 + $0x78] sm:$0xff] %v4709_v43   ;;  %v3651_v35 = vmul.f32 %v5571_v7, %v5571_v7 }
 0x244   : > { %4804 = vst [vmem:[%s7027_s20 + $0x70] sm:$0xff] %v4704_v32   ;;  %v4108_v20 = vrot.slane %v4107_v51, 4  ;;  %v4176_v0 = vadd.f32 %v4175_v40, %v4145_v48 }
 0x245   : > { %v3612_v39 = vadd.f32 %v5569_v23, %v3611_v47  ;;  %v3680_v28 = vadd.f32 %v3679_v36, %v3649_v61 }
 0x246   : > { %v4109_v42 = vadd.f32 %v4108_v20, %v4107_v51  ;;  %v4177_v55 = vrot.slane %v4176_v0, 4 }
 0x247   : > { %v3613_v60 = vadd.f32 %v5571_v7, %v3612_v39  ;;  %v3681_v58 = vadd.f32 %v3680_v28, %v3650_v33 }
 0x248   : > { %v4110_v63 = vrot.slane %v4109_v42, 2  ;;  %v4178_v26 = vadd.f32 %v4177_v55, %v4176_v0 }
 0x249   : > { %v3614_v46 = vrot.slane %v3613_v60, 4  ;;  %v3682_v9 = vadd.f32 %v3681_v58, %v3651_v35 }
 0x24a   : > { %v4111_v62 = vadd.f32 %v4110_v63, %v4109_v42  ;;  %v4179_v54 = vrot.slane %v4178_v26, 2 }
 0x24b   : > { %v3615_v25 = vadd.f32 %v3614_v46, %v3613_v60  ;;  %v3683_v18 = vrot.slane %v3682_v9, 4 }
 0x24c   : > { %v4112_v30 = vrot.slane %v4111_v62, 1  ;;  %v4180_v16 = vadd.f32 %v4179_v54, %v4178_v26 }
 0x24d   : > { %v3616_v1 = vrot.slane %v3615_v25, 2  ;;  %v3684_v37 = vadd.f32 %v3683_v18, %v3682_v9 }
 0x24e   : > { %v4181_v11 = vrot.slane %v4180_v16, 1  ;;  %v4113_v29 = vadd.f32 %v4112_v30, %v4111_v62 }
 0x24f   : > { %v3617_v49 = vadd.f32 %v3616_v1, %v3615_v25  ;;  %v3685_v24 = vrot.slane %v3684_v37, 2 }
 0x250   : > { %v4182_v6 = vadd.f32 %v4181_v11, %v4180_v16 }
 0x251   : > { %v3618_v34 = vrot.slane %v3617_v49, 1  ;;  %v3686_v13 = vadd.f32 %v3685_v24, %v3684_v37 }
 0x252   : > { %v4183_v12 = vsel %vm3689_vm6, %v4113_v29, %v4182_v6 }
 0x253   : > { %v3687_v45 = vrot.slane %v3686_v13, 1  ;;  %v3619_v41 = vadd.f32 %v3618_v34, %v3617_v49  ;;  %4184 = vst [vmem:[%s284_s27] sm:$0x3] %v4183_v12 }
 0x255   : > { %v3688_v22 = vadd.f32 %v3687_v45, %v3686_v13 }
 0x257   : > { %v3690_v53 = vsel %vm3689_vm6, %v3619_v41, %v3688_v22 }
 0x258   : > { %3691 = vst [vmem:[%s280_s30] sm:$0x3] %v3690_v53 }
 0x259 PF: > { %s17_s21 = sadd.s32 1, %s5913_s21  }
 0x25a   : > { %p14_p4 = scmp.ge.s32.totalorder %s17_s21, 4  }
 0x25c   :  { %16 = sbr.rel (!%p14_p4) target bundleno = 1 (0x1), region = 98 }

// kernel: resnet_block_2d_forward.4
= control target key start
LH: loop header
LB: loop body
LE: loop exit
PB: predicated region body
PF: predicated region fallthrough
CT: control target
= control target key end

     0   :  { %s6150_s21 = smov 0   ;;  %s7499_s0 = inlined_call_operand.vmem [shape: bf16[2,16,16,128], index: 0, kind: input, shape index: {}]   ;;  %s7500_s1 = inlined_call_operand.vmem [shape: f32[2,128], index: 1, kind: input, shape index: {}]   ;;  %s7501_s2 = inlined_call_operand.vmem [shape: f32[1,128], index: 2, kind: input, shape index: {}]   ;;  %s7502_s3 = inlined_call_operand.vmem [shape: f32[1,128], index: 3, kind: input, shape index: {}]   ;;  %s7503_s4 = inlined_call_operand.vmem [shape: bf16[1152,128], index: 4, kind: input, shape index: {}]   ;;  %s7504_s5 = inlined_call_operand.vmem [shape: bf16[2,16,16,128], index: 5, kind: output, shape index: {0}]   ;;  %s7505_s6 = inlined_call_operand.vmem [shape: f32[2,2,128], index: 6, kind: output, shape index: {1}]  }
   0x1 LB: > { %s4595_s22 = sadd.s32 4294967295, %s6112_s21   ;;  %p4599_p0 = scmp.ge.s32.totalorder %s6112_s21, 1  ;;  %s6112_s21 = sphi %s6150_s21, %s17_s21  }
   0x2   : > { %p215_p1 = scmp.lt.s32.totalorder %s6112_s21, 3 }
   0x4   : > { %p216_p2 = pnand %p4599_p0, %p215_p1 }
   0x6   : > { %219 = sbr.rel (%p216_p2) target bundleno = 689 (0x2b1), region = 40 }
   0xd   : > { %v5984_v0 = vld [vmem:[%s7503_s4 + $0x40] sm:$0xff]   ;;  %v6114_v2 = vmov 0   ;;  %v5986_v3 = vld [vmem:[%s7503_s4 + $0x48] sm:$0xff]   ;;  %v5988_v5 = vld [vmem:[%s7503_s4 + $0x50] sm:$0xff]   ;;  %vm457_vm0 = vcmask 1040384   ;;  %p6202_p3 = scmp.lt.s32.totalorder %s4595_s22, 1  ;;  %v343_v61 = vlaneseq }
   0xe   : > { %v5985_v1 = vld [vmem:[%s7503_s4 + $0x100] sm:$0xff]   ;;  %450 = vst [vmem:[#allocation2] sm:$0xf] %v6114_v2  ;;  %451 = vst [vmem:[#allocation2 + $0x4] sm:$0xf] %v6114_v2  ;;  %5271 = vmatprep.subr.bf16.mxu1 %v5984_v0  ;;  %v5987_v4 = vld [vmem:[%s7503_s4 + $0x108] sm:$0xff]  }
   0xf   : > { %452 = vst [vmem:[#allocation2 + $0x8] sm:$0x1] %v6114_v2  ;;  %454 = vst [vmem:[#allocation2 + $0xcc] sm:$0xf] %v6114_v2  ;;  %5463 = vmatprep.subr.bf16.mxu0 %v5985_v1  ;;  %5272 = vmatpush3.bf16.msra.mxu1 %v5984_v0  ;;  %v5989_v6 = vld [vmem:[%s7503_s4 + $0x110] sm:$0xff]   ;;  %v5990_v7 = vld [vmem:[%s7503_s4 + $0x58] sm:$0xff]  }
  0x10   : > { %455 = vst [vmem:[#allocation2 + $0xd0] sm:$0xf] %v6114_v2  ;;  %456 = vst [vmem:[#allocation2 + $0xd4] sm:$0x1] %v6114_v2  ;;  %5464 = vmatpush3.bf16.msra.mxu0 %v5985_v1  ;;  %5273 = vmatprep.subr.bf16.mxu1 %v5986_v3  ;;  %v5991_v8 = vld [vmem:[%s7503_s4 + $0x118] sm:$0xff]   ;;  %v5992_v9 = vld [vmem:[%s7503_s4 + $0x60] sm:$0xff]  }
  0x11   : > { %5465 = vmatprep.subr.bf16.mxu0 %v5987_v4  ;;  %v5993_v10 = vld [vmem:[%s7503_s4 + $0x120] sm:$0xff]   ;;  %v5994_v11 = vld [vmem:[%s7503_s4 + $0x68] sm:$0xff]   ;;  %vm458_vm1 = vsmask.f32 256  ;;  %vm514_vm2 = vsmask.f32 7938 }
  0x12   : > { %v5995_v12 = vld [vmem:[%s7503_s4 + $0x128] sm:$0xff]   ;;  %vm6196_vm3 = vmand %vm457_vm0, %vm458_vm1  ;;  %v264_v22 = vld [vmem:[%s7500_s1] sm:$0x1]  ;;  %s7567_s22 = smov (!%p6202_p3, %s4595_s22), 1  ;;  %vm1173_vm5 = vsmask.f32 3328 }
  0x13   : > { %5274 = vmatpush3.bf16.msra.mxu1 %v5986_v3  ;;  %vm6210_vm4 = vmand %vm457_vm0, %vm514_vm2  ;;  %v266_v23 = vld [vmem:[%s7500_s1 + $0x1] sm:$0x1]  ;;  %v5996_v24 = vld [vmem:[%s7503_s4 + $0x70] sm:$0xff]   ;;  %v6227_v27 = vmul.f32 0.001953125, %v264_v22  ;;  %vm1174_vm6 = vsmask.f32 7440 }
  0x14   : > { %5466 = vmatpush3.bf16.msra.mxu0 %v5987_v4  ;;  %5275 = vmatprep.subr.bf16.mxu1 %v5988_v5  ;;  %v267_v28 = vmul.f32 0.001953125, %v266_v23  ;;  %v5997_v29 = vld [vmem:[%s7503_s4 + $0x130] sm:$0xff]   ;;  %v463_v30 = vld [vmem:[#allocation2 + $0xc] sm:$0x1]  ;;  %v5998_v35 = vld [vmem:[%s7503_s4 + $0x78] sm:$0xff]   ;;  %s4815_s14 = sshll.u32 %s7567_s22, 7 }
  0x15   : > { %5467 = vmatprep.subr.bf16.mxu0 %v5989_v6  ;;  %v460_v13 = vld [vmem:[#allocation2] sm:$0x1]  ;;  %v1104_v16 = vld [vmem:[#allocation2 + $0x4] sm:$0xf]  ;;  %v519_v31 = vld [vmem:[#allocation2 + $0x14] sm:$0x1]  ;;  %v268_v32 = vmul.f32 %v6227_v27, %v6227_v27  ;;  %s6281_s23 = scalar_lea.vmem %s7499_s0, %s4815_s14  ;;  %s7469_s8 = scalar_lea.vmem %s7504_s5, %s4815_s14 }
  0x16   : > { %v516_v15 = vld [vmem:[#allocation2 + $0x8] sm:$0x1]  ;;  %v461_v17 = vsel %vm6196_vm3, 0, %v460_v13  ;;  %v1186_v19 = vshll.u32 %v1104_v16, 16  ;;  %v1190_v20 = vshrl.u32 %v1104_v16, 16  ;;  %v464_v33 = vsel %vm6196_vm3, 0, %v463_v30  ;;  %vm6268_vm7 = vmor %vm1173_vm5, %vm1174_vm6 }
  0x17   : > { %5276 = vmatpush3.bf16.msra.mxu1 %v5988_v5  ;;  %462 = vst [vmem:[#allocation2] sm:$0x1] %v461_v17  ;;  %v517_v21 = vsel %vm6210_vm4, 0, %v516_v15  ;;  %v520_v34 = vsel %vm6210_vm4, 0, %v519_v31  ;;  %v5999_v36 = vld [vmem:[%s7503_s4 + $0x138] sm:$0xff]   ;;  %v269_v38 = vsub.f32 %v267_v28, %v268_v32  ;;  %v6259_v51 = vld [vmem:[%s7503_s4] sm:$0xff]  }
  0x18   : > { %5468 = vmatpush3.bf16.msra.mxu0 %v5989_v6  ;;  %5277 = vmatprep.subr.bf16.mxu1 %v5990_v7  ;;  %518 = vst [vmem:[#allocation2 + $0x8] sm:$0x1] %v517_v21  ;;  %v6225_v25 = vrot.slane %v1186_v19, 5  ;;  %v1192_v26 = vrot.slane %v1190_v20, 4  ;;  %465 = vst [vmem:[#allocation2 + $0xc] sm:$0x1] %v464_v33 }
  0x19   : > { %5469 = vmatprep.subr.bf16.mxu0 %v5991_v8  ;;  %521 = vst [vmem:[#allocation2 + $0x14] sm:$0x1] %v520_v34  ;;  %v466_v39 = vld [vmem:[#allocation2 + $0x18] sm:$0x1]  ;;  %v522_v40 = vld [vmem:[#allocation2 + $0x20] sm:$0x1] }
  0x1a   : > { %v1193_v37 = vor.u32 %v1192_v26, %v6225_v25  ;;  %v270_v42 = vmax.f32 %v269_v38, 0.0  ;;  %v467_v43 = vsel %vm6196_vm3, 0, %v466_v39  ;;  %v523_v44 = vsel %vm6210_vm4, 0, %v522_v40  ;;  %v6264_v52 = vld [vmem:[%s7503_s4 + $0x140] sm:$0xff]   ;;  %v525_v56 = vld [vmem:[#allocation2 + $0x2c] sm:$0x1] }
  0x1b   : > { %5278 = vmatpush3.bf16.msra.mxu1 %v5990_v7  ;;  %468 = vst [vmem:[#allocation2 + $0x18] sm:$0x1] %v467_v43  ;;  %524 = vst [vmem:[#allocation2 + $0x20] sm:$0x1] %v523_v44  ;;  %v469_v55 = vld [vmem:[#allocation2 + $0x24] sm:$0x1] }
  0x1c   : > { %5470 = vmatpush3.bf16.msra.mxu0 %v5991_v8  ;;  %5279 = vmatprep.subr.bf16.mxu1 %v5992_v9  ;;  %v1194_v48 = vrot.slane %v1193_v37, 4  ;;  %v272_v50 = vadd.f32 1e-05, %v270_v42  ;;  %v470_v59 = vsel %vm6196_vm3, 0, %v469_v55  ;;  %v526_v62 = vsel %vm6210_vm4, 0, %v525_v56  ;;  %v4882_v6 = vld [vmem:[%s6281_s23] sm:$0xff]  }
  0x1d   : > { %5471 = vmatprep.subr.bf16.mxu0 %v5993_v10  ;;  %471 = vst [vmem:[#allocation2 + $0x24] sm:$0x1] %v470_v59  ;;  %527 = vst [vmem:[#allocation2 + $0x2c] sm:$0x1] %v526_v62  ;;  %v472_v1 = vld [vmem:[#allocation2 + $0x30] sm:$0x1]  ;;  %v4883_v17 = vunpack.c.l.bf16 %v4882_v6 }
  0x1e   : > { %v1103_v41 = vld [vmem:[#allocation2] sm:$0xf]  ;;  %6074 = vrsqrt.f32 %v272_v50  ;;  %v528_v2 = vld [vmem:[#allocation2 + $0x38] sm:$0x1]  ;;  %v473_v3 = vsel %vm6196_vm3, 0, %v472_v1  ;;  %v344_v7 = vshrl.u32 %v343_v61, 7 }
  0x1f   : > { %5280 = vmatpush3.bf16.msra.mxu1 %v5992_v9  ;;  %v1105_v45 = vld [vmem:[#allocation2 + $0x8] sm:$0x1]  ;;  %v1177_v46 = vshrl.u32 %v1103_v41, 16  ;;  %v1180_v47 = vshll.u32 %v1103_v41, 16  ;;  %v529_v4 = vsel %vm6210_vm4, 0, %v528_v2  ;;  %v5026_v16 = vld [vmem:[%s6281_s23 + $0x10] sm:$0xff]  }
  0x20   : > { %5472 = vmatpush3.bf16.msra.mxu0 %v5993_v10  ;;  %5281 = vmatprep.subr.bf16.mxu1 %v5994_v11  ;;  %v1196_v49 = vshll.u32 %v1105_v45, 16  ;;  %474 = vst [vmem:[#allocation2 + $0x30] sm:$0x1] %v473_v3  ;;  %530 = vst [vmem:[#allocation2 + $0x38] sm:$0x1] %v529_v4  ;;  %v345_v19 = vsub.s32 0, %v344_v7  ;;  %v4891_v32 = vunpack.c.l.bf16 %v5026_v16  ;;  %v4892_v33 = vunpack.c.h.bf16 %v5026_v16 }
  0x21   : > { %5473 = vmatprep.subr.bf16.mxu0 %v5995_v12  ;;  %v1179_v53 = vrot.slane %v1177_v46, 4  ;;  %v1182_v54 = vrot.slane %v1180_v47, 5  ;;  %v271_v9 = vld [vmem:[%s7501_s2] sm:$0x1]  ;;  %v475_v10 = vld [vmem:[#allocation2 + $0x3c] sm:$0x1] }
  0x22   : > { %v1198_v58 = vrot.slane %v1196_v49, 5  ;;  %v476_v13 = vsel %vm6196_vm3, 0, %v475_v10  ;;  %v5027_v20 = vld [vmem:[%s6281_s23 + $0x18] sm:$0xff]   ;;  %v5028_v21 = vld [vmem:[%s6281_s23 + $0x20] sm:$0xff]   ;;  %v478_v22 = vld [vmem:[#allocation2 + $0x48] sm:$0x1] }
  0x23   : > { %5282 = vmatpush3.bf16.msra.mxu1 %v5994_v11  ;;  %v1183_v60 = vor.u32 %v1182_v54, %v1179_v53  ;;  %v531_v11 = vld [vmem:[#allocation2 + $0x44] sm:$0x1]  ;;  %477 = vst [vmem:[#allocation2 + $0x3c] sm:$0x1] %v476_v13  ;;  %v5029_v28 = vld [vmem:[%s6281_s23 + $0x28] sm:$0xff]   ;;  %v4895_v38 = vunpack.c.l.bf16 %v5027_v20  ;;  %v4896_v39 = vunpack.c.h.bf16 %v5027_v20  ;;  %v4899_v40 = vunpack.c.l.bf16 %v5028_v21  ;;  %v6105_v57 = vld [vmem:[%s7503_s4 + $0x138] sm:$0xff]  }
  0x24   : > { %5474 = vmatpush3.bf16.msra.mxu0 %v5995_v12  ;;  %5283 = vmatprep.subr.bf16.mxu1 %v5996_v24  ;;  %v1199_v0 = vsel %vm6268_vm7, %v1194_v48, %v1198_v58  ;;  %v5025_v12 = vld [vmem:[%s6281_s23 + $0x8] sm:$0xff]   ;;  %v532_v15 = vsel %vm6210_vm4, 0, %v531_v11  ;;  %v534_v30 = vld [vmem:[#allocation2 + $0x50] sm:$0x1]  ;;  %v275_v37 = vld [vmem:[%s7502_s3] sm:$0x1]  ;;  %v4900_v44 = vunpack.c.h.bf16 %v5028_v21  ;;  %v4903_v45 = vunpack.c.l.bf16 %v5029_v28 }
  0x25   : > { %5475 = vmatprep.subr.bf16.mxu0 %v5997_v29  ;;  %v1184_v63 = vrot.slane %v1183_v60, 4  ;;  %533 = vst [vmem:[#allocation2 + $0x44] sm:$0x1] %v532_v15  ;;  %v4888_v26 = vunpack.c.h.bf16 %v5025_v12  ;;  %v535_v34 = vsel %vm6210_vm4, 0, %v534_v30  ;;  %v537_v46 = vld [vmem:[#allocation2 + $0x5c] sm:$0x1]  ;;  %v4904_v47 = vunpack.c.h.bf16 %v5029_v28 }
  0x26   : > { %536 = vst [vmem:[#allocation2 + $0x50] sm:$0x1] %v535_v34  ;;  %v538_v50 = vsel %vm6210_vm4, 0, %v537_v46  ;;  %vm989_vm8 = vcmask 1043456   ;;  %vm666_vm9 = vsmask.f32 4368 }
  0x27   : > { %5284 = vmatpush3.bf16.msra.mxu1 %v5996_v24  ;;  %v1189_v5 = vsel %vm6268_vm7, %v1184_v63, %v6225_v25  ;;  %v4884_v24 = vunpack.c.h.bf16 %v4882_v6  ;;  %v4887_v25 = vunpack.c.l.bf16 %v5025_v12  ;;  %539 = vst [vmem:[#allocation2 + $0x5c] sm:$0x1] %v538_v50  ;;  %vm6364_vm10 = vmand %vm989_vm8, %vm514_vm2  ;;  %v998_v46 = vld [vmem:[#allocation2 + $0x18] sm:$0xf]  ;;  %vm2170_vm12 = vcmask 1042432   ;;  %v6042_v18 = vld [vmem:[%s7503_s4 + $0xa8] sm:$0xff]  }
  0x28   : > { %5476 = vmatpush3.bf16.msra.mxu0 %v5997_v29  ;;  %5285 = vmatprep.subr.bf16.mxu1 %v5998_v35  ;;  %v4637_v8 = vcombine.low %v1189_v5, %v1199_v0  ;;  %v6075_v23 = vpop.eup %6074  ;;  %v479_v29 = vsel %vm6196_vm3, 0, %v478_v22  ;;  %vm6370_vm11 = vmor %vm458_vm1, %vm666_vm9  ;;  %vm2171_vm13 = vcmask 1046532   ;;  %s4604_s14 = sshll.u32 %s7567_s22, 1 }
  0x29   : > { %5477 = vmatprep.subr.bf16.mxu0 %v5999_v36  ;;  %v274_v31 = vmul.f32 %v6075_v23, %v271_v9  ;;  %480 = vst [vmem:[#allocation2 + $0x48] sm:$0x1] %v479_v29  ;;  %vm6664_vm14 = vmor %vm2170_vm12, %vm2171_vm13  ;;  %s262_s11 = scalar_lea.vmem %s7505_s6, %s4604_s14 }
  0x2a   : > { %5287 = vmatprep.mubr.bf16.mxu1 %v4637_v8 }
  0x2b   : > { %5286 = vmatpush3.bf16.msra.mxu1 %v5998_v35  ;;  %v5030_v35 = vld [vmem:[%s6281_s23 + $0x30] sm:$0xff]   ;;  %v276_v42 = vmul.f32 %v274_v31, %v6227_v27  ;;  %v6318_v43 = vrot.slane %v274_v31, %v345_v19 }
  0x2c   : > { %5478 = vmatpush3.bf16.msra.mxu0 %v5999_v36  ;;  %5319 = vmatprep.subr.bf16.mxu1 %v6259_v51  ;;  %v481_v36 = vld [vmem:[#allocation2 + $0x54] sm:$0x1]  ;;  %v4907_v48 = vunpack.c.l.bf16 %v5030_v35  ;;  %v4908_v49 = vunpack.c.h.bf16 %v5030_v35 }
  0x2d   : > { %5511 = vmatprep.subr.bf16.mxu0 %v6264_v52  ;;  %v482_v41 = vsel %vm6196_vm3, 0, %v481_v36  ;;  %v277_v53 = vsub.f32 %v275_v37, %v276_v42  ;;  %v348_v54 = vmul.f32 %v4883_v17, %v6318_v43  ;;  %v349_v55 = vmul.f32 %v4884_v24, %v6318_v43  ;;  %v991_v36 = vld [vmem:[#allocation2 + $0xc] sm:$0xf]  ;;  %v995_v37 = vld [vmem:[#allocation2 + $0x14] sm:$0x1] }
  0x2e   : > { %483 = vst [vmem:[#allocation2 + $0x54] sm:$0x1] %v482_v41  ;;  %v350_v56 = vmul.f32 %v4887_v25, %v6318_v43  ;;  %v351_v27 = vmul.f32 %v4888_v26, %v6318_v43  ;;  %v352_v58 = vmul.f32 %v4891_v32, %v6318_v43  ;;  %v353_v59 = vmul.f32 %v4892_v33, %v6318_v43 }
  0x2f   : > { %v354_v60 = vmul.f32 %v4895_v38, %v6318_v43  ;;  %v6329_v61 = vrot.slane %v277_v53, %v345_v19  ;;  %v355_v62 = vmul.f32 %v4896_v39, %v6318_v43  ;;  %v6333_v63 = vmul.f32 %v4899_v40, %v6318_v43 }
  0x30   : > { %v6336_v0 = vmul.f32 %v4900_v44, %v6318_v43  ;;  %v6339_v1 = vmul.f32 %v4903_v45, %v6318_v43  ;;  %v6342_v2 = vmul.f32 %v4904_v47, %v6318_v43  ;;  %v6345_v3 = vmul.f32 %v4907_v48, %v6318_v43 }
  0x31   : > { %v6348_v4 = vmul.f32 %v4908_v49, %v6318_v43  ;;  %v386_v5 = vadd.f32 %v6329_v61, %v348_v54  ;;  %v387_v6 = vadd.f32 %v6329_v61, %v349_v55  ;;  %v388_v7 = vadd.f32 %v6329_v61, %v350_v56  ;;  %v1002_v54 = vld [vmem:[#allocation2 + $0x20] sm:$0x1] }
  0x32   : > { %v389_v8 = vadd.f32 %v6329_v61, %v351_v27  ;;  %v390_v9 = vadd.f32 %v6329_v61, %v352_v58  ;;  %v391_v10 = vadd.f32 %v6329_v61, %v353_v59  ;;  %v392_v11 = vadd.f32 %v6329_v61, %v354_v60 }
  0x33   : > { %v393_v12 = vadd.f32 %v6329_v61, %v355_v62  ;;  %v418_v13 = vmax.f32 %v386_v5, 0.0  ;;  %v419_v15 = vmax.f32 %v387_v6, 0.0  ;;  %v420_v16 = vmax.f32 %v388_v7, 0.0 }
  0x34   : > { %v421_v17 = vmax.f32 %v389_v8, 0.0  ;;  %v422_v19 = vmax.f32 %v390_v9, 0.0  ;;  %v423_v20 = vmax.f32 %v391_v10, 0.0  ;;  %v424_v21 = vmax.f32 %v392_v11, 0.0 }
  0x35   : > { %v425_v22 = vmax.f32 %v393_v12, 0.0  ;;  %v4817_v23 = vpack.c.bf16 %v418_v13, %v418_v13  ;;  %v4818_v24 = vpack.c.bf16 %v419_v15, %v419_v15  ;;  %v4819_v25 = vpack.c.bf16 %v420_v16, %v420_v16  ;;  %v1005_v12 = vld [vmem:[#allocation2 + $0x24] sm:$0xf] }
  0x36   : > { %v4820_v26 = vpack.c.bf16 %v421_v17, %v421_v17  ;;  %v4821_v28 = vpack.c.bf16 %v422_v19, %v422_v19  ;;  %v4822_v29 = vpack.c.bf16 %v423_v20, %v423_v20  ;;  %v6358_v30 = vpack.c.bf16 %v424_v21, %v424_v21  ;;  %v1009_v19 = vld [vmem:[#allocation2 + $0x2c] sm:$0x1] }
  0x37   : > { %v6360_v31 = vpack.c.bf16 %v425_v22, %v425_v22  ;;  %v669_v32 = vshrl.u32 %v4817_v23, 16  ;;  %v672_v33 = vshll.u32 %v4817_v23, 16  ;;  %v677_v34 = vshrl.u32 %v4818_v24, 16 }
  0x38   : > { %v680_v35 = vshll.u32 %v4818_v24, 16  ;;  %v686_v38 = vshrl.u32 %v4819_v25, 16  ;;  %v689_v39 = vshll.u32 %v4819_v25, 16  ;;  %v694_v40 = vshrl.u32 %v4820_v26, 16 }
  0x39   : > { %v697_v41 = vshll.u32 %v4820_v26, 16  ;;  %v671_v42 = vrot.slane %v669_v32, 7  ;;  %v679_v44 = vrot.slane %v677_v34, 7  ;;  %v703_v47 = vshrl.u32 %v4821_v28, 16 }
  0x3a   : > { %v706_v48 = vshll.u32 %v4821_v28, 16  ;;  %v688_v50 = vrot.slane %v686_v38, 7  ;;  %v696_v53 = vrot.slane %v694_v40, 7  ;;  %v711_v55 = vshrl.u32 %v4822_v29, 16 }
  0x3b   : > { %v714_v56 = vshll.u32 %v4822_v29, 16  ;;  %v674_v27 = vor.u32 %v672_v33, %v671_v42  ;;  %v675_v58 = vrot.slane %v671_v42, 4  ;;  %v682_v59 = vor.u32 %v680_v35, %v679_v44 }
  0x3c   : > { %v684_v60 = vrot.slane %v679_v44, 4  ;;  %v691_v62 = vor.u32 %v689_v39, %v688_v50  ;;  %v692_v5 = vrot.slane %v688_v50, 4  ;;  %v699_v6 = vor.u32 %v697_v41, %v696_v53  ;;  %v1016_v39 = vld [vmem:[#allocation2 + $0x38] sm:$0x1] }
  0x3d   : > { %v701_v7 = vrot.slane %v696_v53, 4  ;;  %v683_v8 = vsel %vm6370_vm11, %v675_v58, %v682_v59  ;;  %v992_v9 = vsel %vm6364_vm10, %v674_v27, %v991_v36  ;;  %v705_v11 = vrot.slane %v703_v47, 7 }
  0x3e   : > { %v996_v10 = vsel %vm6196_vm3, %v684_v60, %v995_v37  ;;  %993 = vst [vmem:[#allocation2 + $0xc] sm:$0xf] %v992_v9  ;;  %994 = vst [vmem:[#allocation2 + $0x10] sm:$0xf] %v683_v8  ;;  %v700_v13 = vsel %vm6370_vm11, %v692_v5, %v699_v6  ;;  %v999_v15 = vsel %vm6364_vm10, %v691_v62, %v998_v46  ;;  %v713_v17 = vrot.slane %v711_v55, 7 }
  0x3f   : > { %997 = vst [vmem:[#allocation2 + $0x14] sm:$0x1] %v996_v10  ;;  %v1003_v16 = vsel %vm6196_vm3, %v701_v7, %v1002_v54  ;;  %1000 = vst [vmem:[#allocation2 + $0x18] sm:$0xf] %v999_v15  ;;  %v708_v20 = vor.u32 %v706_v48, %v705_v11  ;;  %v709_v21 = vrot.slane %v705_v11, 4  ;;  %v720_v22 = vshrl.u32 %v6358_v30, 16 }
  0x40   : > { %1001 = vst [vmem:[#allocation2 + $0x1c] sm:$0xf] %v700_v13  ;;  %1004 = vst [vmem:[#allocation2 + $0x20] sm:$0x1] %v1003_v16  ;;  %v723_v23 = vshll.u32 %v6358_v30, 16  ;;  %v716_v24 = vor.u32 %v714_v56, %v713_v17  ;;  %v718_v25 = vrot.slane %v713_v17, 4  ;;  %v394_v33 = vadd.f32 %v6329_v61, %v6333_v63 }
  0x41   : > { %v728_v26 = vshrl.u32 %v6360_v31, 16  ;;  %v731_v28 = vshll.u32 %v6360_v31, 16  ;;  %v1006_v29 = vsel %vm6364_vm10, %v708_v20, %v1005_v12  ;;  %v722_v32 = vrot.slane %v720_v22, 7  ;;  %v1012_v37 = vld [vmem:[#allocation2 + $0x30] sm:$0xf] }
  0x42   : > { %v395_v34 = vadd.f32 %v6329_v61, %v6336_v0  ;;  %v717_v35 = vsel %vm6370_vm11, %v709_v21, %v716_v24  ;;  %1007 = vst [vmem:[#allocation2 + $0x24] sm:$0xf] %v1006_v29  ;;  %v1010_v30 = vsel %vm6196_vm3, %v718_v25, %v1009_v19  ;;  %v6402_v31 = vadd.f32 %v6329_v61, %v6339_v1 }
  0x43   : > { %v730_v36 = vrot.slane %v728_v26, 7  ;;  %1008 = vst [vmem:[#allocation2 + $0x28] sm:$0xf] %v717_v35  ;;  %1011 = vst [vmem:[#allocation2 + $0x2c] sm:$0x1] %v1010_v30  ;;  %v725_v38 = vor.u32 %v723_v23, %v722_v32  ;;  %v726_v63 = vrot.slane %v722_v32, 4  ;;  %v6406_v44 = vadd.f32 %v6329_v61, %v6342_v2 }
  0x44   : > { %v426_v40 = vmax.f32 %v394_v33, 0.0  ;;  %v427_v0 = vmax.f32 %v395_v34, 0.0  ;;  %v428_v46 = vmax.f32 %v6402_v31, 0.0  ;;  %v6423_v55 = vadd.f32 %v6329_v61, %v6345_v3 }
  0x45   : > { %v733_v41 = vor.u32 %v731_v28, %v730_v36  ;;  %v735_v42 = vrot.slane %v730_v36, 4  ;;  %v6409_v47 = vld [vmem:[#allocation2 + $0xc] sm:$0xf]  ;;  %v6411_v48 = vld [vmem:[#allocation2 + $0x10] sm:$0xf]  ;;  %v1013_v50 = vsel %vm6364_vm10, %v725_v38, %v1012_v37 }
  0x46   : > { %v6413_v1 = vld [vmem:[#allocation2 + $0x14] sm:$0x1]  ;;  %v6417_v53 = vpack.c.bf16 %v426_v40, %v426_v40  ;;  %v6419_v54 = vpack.c.bf16 %v427_v0, %v427_v0  ;;  %v1201_v2 = vshrl.u32 %v6409_v47, 16  ;;  %v1204_v56 = vshll.u32 %v6409_v47, 16  ;;  %v6429_v59 = vld [vmem:[#allocation2 + $0x18] sm:$0xf] }
  0x47   : > { %v1210_v27 = vshll.u32 %v6411_v48, 16  ;;  %v1214_v58 = vshrl.u32 %v6411_v48, 16  ;;  %1014 = vst [vmem:[#allocation2 + $0x30] sm:$0xf] %v1013_v50  ;;  %v1220_v60 = vshll.u32 %v6413_v1, 16  ;;  %v1225_v3 = vshrl.u32 %v6429_v59, 16 }
  0x48   : > { %v6432_v62 = vld [vmem:[#allocation2 + $0x1c] sm:$0xf]  ;;  %v6434_v5 = vld [vmem:[#allocation2 + $0x20] sm:$0x1]  ;;  %v734_v6 = vsel %vm6370_vm11, %v726_v63, %v733_v41  ;;  %v1017_v7 = vsel %vm6196_vm3, %v735_v42, %v1016_v39  ;;  %v1203_v8 = vrot.slane %v1201_v2, 4  ;;  %v1206_v9 = vrot.slane %v1204_v56, 5 }
  0x49   : > { %v1212_v10 = vrot.slane %v1210_v27, 5  ;;  %v1216_v11 = vrot.slane %v1214_v58, 4  ;;  %1015 = vst [vmem:[#allocation2 + $0x34] sm:$0xf] %v734_v6  ;;  %1018 = vst [vmem:[#allocation2 + $0x38] sm:$0x1] %v1017_v7 }
  0x4a   : > { %v1222_v12 = vrot.slane %v1220_v60, 5  ;;  %v1227_v13 = vrot.slane %v1225_v3, 4  ;;  %v1228_v15 = vshll.u32 %v6429_v59, 16  ;;  %v1234_v16 = vshll.u32 %v6432_v62, 16  ;;  %v6443_v17 = vld [vmem:[#allocation2 + $0x24] sm:$0xf] }
  0x4b   : > { %v1207_v19 = vor.u32 %v1206_v9, %v1203_v8  ;;  %v1217_v20 = vor.u32 %v1216_v11, %v1212_v10  ;;  %v1238_v21 = vshrl.u32 %v6432_v62, 16  ;;  %v1244_v22 = vshll.u32 %v6434_v5, 16  ;;  %v6447_v23 = vld [vmem:[#allocation2 + $0x28] sm:$0xf]  ;;  %v6450_v28 = vld [vmem:[#allocation2 + $0x2c] sm:$0x1] }
  0x4c   : > { %v1230_v24 = vrot.slane %v1228_v15, 5  ;;  %v1236_v25 = vrot.slane %v1234_v16, 5  ;;  %v1249_v29 = vshrl.u32 %v6443_v17, 16  ;;  %v1252_v37 = vshll.u32 %v6443_v17, 16  ;;  %v6003_v27 = vld [vmem:[%s7503_s4 + $0x8] sm:$0xff]  }
  0x4d   : > { %v1208_v32 = vrot.slane %v1207_v19, 4  ;;  %v1218_v33 = vrot.slane %v1217_v20, 4  ;;  %v1240_v34 = vrot.slane %v1238_v21, 4  ;;  %v1246_v35 = vrot.slane %v1244_v22, 5 }
  0x4e   : > { %v1231_v30 = vor.u32 %v1230_v24, %v1227_v13  ;;  %v1251_v36 = vrot.slane %v1249_v29, 4  ;;  %v1258_v38 = vshll.u32 %v6447_v23, 16  ;;  %v6455_v63 = vld [vmem:[#allocation2 + $0x30] sm:$0xf]  ;;  %v1262_v41 = vshrl.u32 %v6447_v23, 16 }
  0x4f   : > { %v1213_v39 = vsel %vm6268_vm7, %v1208_v32, %v1212_v10  ;;  %v1223_v40 = vsel %vm6268_vm7, %v1218_v33, %v1222_v12  ;;  %v1241_v0 = vor.u32 %v1240_v34, %v1236_v25  ;;  %v1254_v2 = vrot.slane %v1252_v37, 5  ;;  %v6002_v10 = vld [vmem:[%s7503_s4 + $0x148] sm:$0xff]   ;;  %v6006_v29 = vld [vmem:[%s7503_s4 + $0x10] sm:$0xff]  }
  0x50   : > { %v4638_v42 = vcombine.low %v1213_v39, %v1223_v40  ;;  %v1232_v50 = vrot.slane %v1231_v30, 4  ;;  %v1260_v56 = vrot.slane %v1258_v38, 5  ;;  %v6465_v58 = vld [vmem:[#allocation2 + $0x34] sm:$0xf]  ;;  %v1264_v3 = vrot.slane %v1262_v41, 4 }
  0x51   : > { %v1242_v60 = vrot.slane %v1241_v0, 4  ;;  %v1268_v6 = vshll.u32 %v6450_v28, 16  ;;  %v6468_v7 = vld [vmem:[#allocation2 + $0x38] sm:$0x1]  ;;  %v1273_v8 = vshrl.u32 %v6455_v63, 16  ;;  %v1255_v11 = vor.u32 %v1254_v2, %v1251_v36  ;;  %v6004_v40 = vld [vmem:[%s7503_s4 + $0x150] sm:$0xff]  }
  0x52   : > { %5288 = vmatmul.mubr.bf16.vlgmr.msra.gmra.mrb[0].mxu1 %v4638_v42  ;;  %5479 = vmatprep.mubr.bf16.mxu0 %v4638_v42  ;;  %v1237_v9 = vsel %vm6268_vm7, %v1232_v50, %v1236_v25  ;;  %v1276_v12 = vshll.u32 %v6455_v63, 16  ;;  %v1282_v13 = vshll.u32 %v6465_v58, 16  ;;  %v1265_v16 = vor.u32 %v1264_v3, %v1260_v56  ;;  %v1019_v38 = vld [vmem:[#allocation2 + $0x3c] sm:$0xf]  ;;  %v1023_v50 = vld [vmem:[#allocation2 + $0x44] sm:$0x1] }
  0x53   : > { %5320 = vmatpush3.bf16.msra.mxu1 %v6259_v51  ;;  %v1247_v15 = vsel %vm6268_vm7, %v1242_v60, %v1246_v35  ;;  %v1270_v19 = vrot.slane %v1268_v6, 5  ;;  %v1275_v20 = vrot.slane %v1273_v8, 4  ;;  %v1256_v22 = vrot.slane %v1255_v11, 4 }
  0x54   : > { %v6481_v21 = vcombine.low %v1237_v9, %v1247_v15  ;;  %5321 = vmatprep.subr.bf16.mxu1 %v6003_v27  ;;  %v1278_v24 = vrot.slane %v1276_v12, 5  ;;  %v1284_v25 = vrot.slane %v1282_v13, 5  ;;  %v1266_v32 = vrot.slane %v1265_v16, 4  ;;  %v484_v15 = vld [vmem:[#allocation2 + $0x60] sm:$0x1] }
  0x55   : > { %v1286_v33 = vshrl.u32 %v6465_v58, 16  ;;  %v1292_v51 = vshll.u32 %v6468_v7, 16  ;;  %v737_v34 = vshrl.u32 %v6417_v53, 16  ;;  %v1261_v35 = vsel %vm6268_vm7, %v1256_v22, %v1260_v56  ;;  %v5031_v22 = vld [vmem:[%s6281_s23 + $0x38] sm:$0xff]  }
  0x56   : > { %7534 = vst [vmem:[#allocation3_spill] sm:$0xff] %v6481_v21  ;;  %5480 = vmatmul.mubr.bf16.vlgmr.msra.gmra.mrb[0].mxu0 %v6481_v21  ;;  %5291 = vmatprep.mubr.bf16.mxu1 %v6481_v21  ;;  %v1279_v30 = vor.u32 %v1278_v24, %v1275_v20  ;;  %v740_v36 = vshll.u32 %v6417_v53, 16  ;;  %v745_v37 = vshrl.u32 %v6419_v54, 16  ;;  %v1271_v39 = vsel %vm6268_vm7, %v1266_v32, %v1270_v19 }
  0x57   : > { %5512 = vmatpush3.bf16.msra.mxu0 %v6264_v52  ;;  %5322 = vmatpush3.bf16.msra.mxu1 %v6003_v27  ;;  %v1288_v0 = vrot.slane %v1286_v33, 4  ;;  %v1294_v41 = vrot.slane %v1292_v51, 5  ;;  %v739_v42 = vrot.slane %v737_v34, 7  ;;  %v6501_v2 = vcombine.low %v1261_v35, %v1271_v39  ;;  %v6009_v52 = vld [vmem:[%s7503_s4 + $0x18] sm:$0xff]   ;;  %v6012_v33 = vld [vmem:[%s7503_s4 + $0x20] sm:$0xff]  }
  0x58   : > { %5513 = vmatprep.subr.bf16.mxu0 %v6002_v10  ;;  %v1280_v53 = vrot.slane %v1279_v30, 4  ;;  %v747_v56 = vrot.slane %v745_v37, 7  ;;  %v748_v60 = vshll.u32 %v6419_v54, 16  ;;  %5323 = vmatprep.subr.bf16.mxu1 %v6006_v29  ;;  %v429_v27 = vmax.f32 %v6406_v44, 0.0  ;;  %v6005_v54 = vld [vmem:[%s7503_s4 + $0x158] sm:$0xff]   ;;  %v6538_v34 = vld [vmem:[%s7503_s4 + $0x160] sm:$0xff]  }
  0x59   : > { %7535 = vst [vmem:[#allocation4_spill] sm:$0xff] %v6501_v2  ;;  %v1289_v3 = vor.u32 %v1288_v0, %v1284_v25  ;;  %v742_v6 = vor.u32 %v740_v36, %v739_v42  ;;  %v743_v8 = vrot.slane %v739_v42, 4  ;;  %5483 = vmatprep.mubr.bf16.mxu0 %v6501_v2  ;;  %v4827_v13 = vpack.c.bf16 %v428_v46, %v428_v46  ;;  %v1030_v39 = vld [vmem:[#allocation2 + $0x50] sm:$0x1] }
  0x5a   : > { %5292 = vmatmul.mubr.bf16.gmra.mrb[4].mxu1 %v6501_v2  ;;  %v1285_v9 = vsel %vm6268_vm7, %v1280_v53, %v1284_v25  ;;  %v750_v11 = vor.u32 %v748_v60, %v747_v56  ;;  %v752_v12 = vrot.slane %v747_v56, 4  ;;  %v4828_v19 = vpack.c.bf16 %v429_v27, %v429_v27 }
  0x5b   : > { %5514 = vmatpush3.bf16.msra.mxu0 %v6002_v10  ;;  %v1290_v44 = vrot.slane %v1289_v3, 4  ;;  %v1020_v16 = vsel %vm6364_vm10, %v742_v6, %v1019_v38  ;;  %5324 = vmatpush3.bf16.msra.mxu1 %v6006_v29  ;;  %v399_v20 = vadd.f32 %v6329_v61, %v6348_v4  ;;  %v754_v46 = vshrl.u32 %v4827_v13, 16  ;;  %v1026_v38 = vld [vmem:[#allocation2 + $0x48] sm:$0xf] }
  0x5c   : > { %5515 = vmatprep.subr.bf16.mxu0 %v6004_v40  ;;  %v751_v24 = vsel %vm6370_vm11, %v743_v8, %v750_v11  ;;  %1021 = vst [vmem:[#allocation2 + $0x3c] sm:$0xf] %v1020_v16  ;;  %v1024_v31 = vsel %vm6196_vm3, %v752_v12, %v1023_v50  ;;  %v757_v10 = vshll.u32 %v4827_v13, 16  ;;  %5325 = vmatprep.subr.bf16.mxu1 %v6009_v52  ;;  %v762_v29 = vshrl.u32 %v4828_v19, 16  ;;  %v6549_v8 = vld [vmem:[%s6281_s23 + $0x40] sm:$0xff]  }
  0x5d   : > { %v1295_v25 = vsel %vm6268_vm7, %v1290_v44, %v1294_v41  ;;  %1022 = vst [vmem:[#allocation2 + $0x40] sm:$0xf] %v751_v24  ;;  %1025 = vst [vmem:[#allocation2 + $0x44] sm:$0x1] %v1024_v31  ;;  %v765_v32 = vshll.u32 %v4828_v19, 16  ;;  %v430_v4 = vmax.f32 %v6423_v55, 0.0  ;;  %v4911_v36 = vunpack.c.l.bf16 %v5031_v22 }
  0x5e   : > { %v6533_v51 = vcombine.low %v1285_v9, %v1295_v25  ;;  %v756_v35 = vrot.slane %v754_v46, 7  ;;  %v431_v30 = vmax.f32 %v399_v20, 0.0  ;;  %v764_v37 = vrot.slane %v762_v29, 7  ;;  %v6008_v9 = vld [vmem:[%s7503_s4 + $0x168] sm:$0xff]   ;;  %v1033_v13 = vld [vmem:[#allocation2 + $0x54] sm:$0xf] }
  0x5f   : > { %5516 = vmatpush3.bf16.msra.mxu0 %v6004_v40  ;;  %v4829_v0 = vpack.c.bf16 %v430_v4, %v430_v4  ;;  %5326 = vmatpush3.bf16.msra.mxu1 %v6009_v52  ;;  %v4912_v55 = vunpack.c.h.bf16 %v5031_v22  ;;  %v485_v41 = vsel %vm6196_vm3, 0, %v484_v15  ;;  %v362_v56 = vmul.f32 %v4911_v36, %v6318_v43  ;;  %v6014_v40 = vld [vmem:[%s7503_s4 + $0x28] sm:$0xff]   ;;  %v6016_v24 = vld [vmem:[%s7503_s4 + $0x30] sm:$0xff]  }
  0x60   : > { %7536 = vst [vmem:[#allocation5_spill] sm:$0xff] %v6533_v51  ;;  %5484 = vmatmul.mubr.bf16.gmra.mrb[4].mxu0 %v6533_v51  ;;  %5517 = vmatprep.subr.bf16.mxu0 %v6005_v54  ;;  %v759_v42 = vor.u32 %v757_v10, %v756_v35  ;;  %v760_v50 = vrot.slane %v756_v35, 4  ;;  %v4830_v53 = vpack.c.bf16 %v431_v30, %v431_v30  ;;  %486 = vst [vmem:[#allocation2 + $0x60] sm:$0x1] %v485_v41  ;;  %v540_v29 = vld [vmem:[#allocation2 + $0x68] sm:$0x1] }
  0x61   : > { %5295 = vmatprep.mubr.bf16.mxu1 %v6533_v51  ;;  %v767_v60 = vor.u32 %v765_v32, %v764_v37  ;;  %v769_v52 = vrot.slane %v764_v37, 4  ;;  %v771_v3 = vshrl.u32 %v4829_v0, 16  ;;  %v774_v6 = vshll.u32 %v4829_v0, 16  ;;  %5327 = vmatprep.subr.bf16.mxu1 %v6012_v33 }
  0x62   : > { %v1027_v27 = vsel %vm6364_vm10, %v759_v42, %v1026_v38  ;;  %v779_v11 = vshrl.u32 %v4830_v53, 16  ;;  %v782_v12 = vshll.u32 %v4830_v53, 16  ;;  %v363_v15 = vmul.f32 %v4912_v55, %v6318_v43 }
  0x63   : > { %5518 = vmatpush3.bf16.msra.mxu0 %v6005_v54  ;;  %v6557_v44 = vld [vmem:[#allocation2 + $0x3c] sm:$0xf]  ;;  %v768_v16 = vsel %vm6370_vm11, %v760_v50, %v767_v60  ;;  %1028 = vst [vmem:[#allocation2 + $0x48] sm:$0xf] %v1027_v27  ;;  %v1031_v19 = vsel %vm6196_vm3, %v769_v52, %v1030_v39  ;;  %v773_v20 = vrot.slane %v771_v3, 7  ;;  %v400_v22 = vadd.f32 %v6329_v61, %v362_v56  ;;  %v6010_v52 = vld [vmem:[%s7503_s4 + $0x170] sm:$0xff]  }
  0x64   : > { %5328 = vmatpush3.bf16.msra.mxu1 %v6012_v33  ;;  %v6567_v31 = vld [vmem:[#allocation2 + $0x40] sm:$0xf]  ;;  %v6569_v54 = vld [vmem:[#allocation2 + $0x44] sm:$0x1]  ;;  %v1297_v46 = vshrl.u32 %v6557_v44, 16  ;;  %v1300_v10 = vshll.u32 %v6557_v44, 16  ;;  %5519 = vmatprep.subr.bf16.mxu0 %v6538_v34  ;;  %v401_v25 = vadd.f32 %v6329_v61, %v363_v15  ;;  %v4915_v32 = vunpack.c.l.bf16 %v6549_v8 }
  0x65   : > { %1029 = vst [vmem:[#allocation2 + $0x4c] sm:$0xf] %v768_v16  ;;  %1032 = vst [vmem:[#allocation2 + $0x50] sm:$0x1] %v1031_v19  ;;  %5329 = vmatprep.subr.bf16.mxu1 %v6014_v40  ;;  %v1306_v4 = vshll.u32 %v6567_v31, 16  ;;  %v1310_v33 = vshrl.u32 %v6567_v31, 16  ;;  %v776_v30 = vor.u32 %v774_v6, %v773_v20 }
  0x66   : > { %v1316_v35 = vshll.u32 %v6569_v54, 16  ;;  %v1299_v36 = vrot.slane %v1297_v46, 4  ;;  %v1302_v37 = vrot.slane %v1300_v10, 5  ;;  %v777_v38 = vrot.slane %v773_v20, 4  ;;  %v1037_v50 = vld [vmem:[#allocation2 + $0x5c] sm:$0x1] }
  0x67   : > { %v781_v39 = vrot.slane %v779_v11, 7  ;;  %v1308_v0 = vrot.slane %v1306_v4, 5  ;;  %v1312_v55 = vrot.slane %v1310_v33, 4  ;;  %5520 = vmatpush3.bf16.msra.mxu0 %v6538_v34  ;;  %v1034_v42 = vsel %vm6364_vm10, %v776_v30, %v1033_v13  ;;  %v6018_v34 = vld [vmem:[%s7503_s4 + $0x38] sm:$0xff]  }
  0x68   : > { %v1318_v41 = vrot.slane %v1316_v35, 5  ;;  %5330 = vmatpush3.bf16.msra.mxu1 %v6014_v40  ;;  %v1303_v53 = vor.u32 %v1302_v37, %v1299_v36  ;;  %5521 = vmatprep.subr.bf16.mxu0 %v6008_v9  ;;  %1035 = vst [vmem:[#allocation2 + $0x54] sm:$0xf] %v1034_v42  ;;  %v432_v3 = vmax.f32 %v400_v22, 0.0  ;;  %v433_v27 = vmax.f32 %v401_v25, 0.0  ;;  %v6022_v37 = vld [vmem:[%s7503_s4 + $0x80] sm:$0xff]  }
  0x69   : > { %v784_v56 = vor.u32 %v782_v12, %v781_v39  ;;  %v786_v60 = vrot.slane %v781_v39, 4  ;;  %5331 = vmatprep.subr.bf16.mxu1 %v6016_v24  ;;  %v1313_v6 = vor.u32 %v1312_v55, %v1308_v0  ;;  %v541_v40 = vsel %vm6210_vm4, 0, %v540_v29  ;;  %v6087_v49 = vld [vmem:[#allocation2 + $0x3c] sm:$0xf] }
  0x6a   : > { %v4916_v11 = vunpack.c.h.bf16 %v6549_v8  ;;  %v1304_v12 = vrot.slane %v1303_v53, 4  ;;  %v6591_v13 = vld [vmem:[#allocation2 + $0x48] sm:$0xf]  ;;  %542 = vst [vmem:[#allocation2 + $0x68] sm:$0x1] %v541_v40  ;;  %v4831_v19 = vpack.c.bf16 %v432_v3, %v432_v3  ;;  %v4832_v8 = vpack.c.bf16 %v433_v27, %v433_v27  ;;  %v6628_v40 = vld [vmem:[%s7503_s4 + $0x180] sm:$0xff]  }
  0x6b   : > { %v785_v15 = vsel %vm6370_vm11, %v777_v38, %v784_v56  ;;  %v1038_v16 = vsel %vm6196_vm3, %v786_v60, %v1037_v50  ;;  %v1314_v20 = vrot.slane %v1313_v6, 4  ;;  %v1321_v10 = vshrl.u32 %v6591_v13, 16  ;;  %5522 = vmatpush3.bf16.msra.mxu0 %v6008_v9  ;;  %v6011_v9 = vld [vmem:[%s7503_s4 + $0x178] sm:$0xff]   ;;  %v6089_v45 = vld [vmem:[#allocation2 + $0x48] sm:$0xf] }
  0x6c   : > { %v6597_v22 = vld [vmem:[#allocation2 + $0x4c] sm:$0xf]  ;;  %v6599_v46 = vld [vmem:[#allocation2 + $0x50] sm:$0x1]  ;;  %1036 = vst [vmem:[#allocation2 + $0x58] sm:$0xf] %v785_v15  ;;  %v364_v25 = vmul.f32 %v4915_v32, %v6318_v43  ;;  %5332 = vmatpush3.bf16.msra.mxu1 %v6016_v24  ;;  %v1309_v29 = vsel %vm6268_vm7, %v1304_v12, %v1308_v0  ;;  %5523 = vmatprep.subr.bf16.mxu0 %v6010_v52 }
  0x6d   : > { %1039 = vst [vmem:[#allocation2 + $0x5c] sm:$0x1] %v1038_v16  ;;  %v1324_v4 = vshll.u32 %v6591_v13, 16  ;;  %v1330_v33 = vshll.u32 %v6597_v22, 16  ;;  %v1334_v35 = vshrl.u32 %v6597_v22, 16  ;;  %5333 = vmatprep.subr.bf16.mxu1 %v6018_v34  ;;  %v1319_v30 = vsel %vm6268_vm7, %v1314_v20, %v1318_v41 }
  0x6e   : > { %v1323_v32 = vrot.slane %v1321_v10, 4  ;;  %v1340_v24 = vshll.u32 %v6599_v46, 16  ;;  %v788_v36 = vshrl.u32 %v4831_v19, 16  ;;  %v6617_v38 = vcombine.low %v1309_v29, %v1319_v30 }
  0x6f   : > { %v1326_v39 = vrot.slane %v1324_v4, 5  ;;  %v1332_v0 = vrot.slane %v1330_v33, 5  ;;  %v1336_v55 = vrot.slane %v1334_v35, 4  ;;  %v6619_v50 = vld [vmem:[#allocation2 + $0x54] sm:$0xf]  ;;  %v791_v41 = vshll.u32 %v4831_v19, 16  ;;  %5524 = vmatpush3.bf16.msra.mxu0 %v6010_v52 }
  0x70   : > { %7537 = vst [vmem:[#allocation6_spill] sm:$0xff] %v6617_v38  ;;  %v1342_v42 = vrot.slane %v1340_v24, 5  ;;  %v790_v53 = vrot.slane %v788_v36, 7  ;;  %v796_v56 = vshrl.u32 %v4832_v8, 16  ;;  %5334 = vmatpush3.bf16.msra.mxu1 %v6018_v34  ;;  %5487 = vmatprep.mubr.bf16.mxu0 %v6617_v38  ;;  %v1345_v6 = vshrl.u32 %v6619_v50, 16 }
  0x71   : > { %5296 = vmatmul.mubr.bf16.gmra.mrb[8].mxu1 %v6617_v38  ;;  %v1327_v60 = vor.u32 %v1326_v39, %v1323_v32  ;;  %v1337_v3 = vor.u32 %v1336_v55, %v1332_v0  ;;  %v1348_v27 = vshll.u32 %v6619_v50, 16  ;;  %v799_v52 = vshll.u32 %v4832_v8, 16  ;;  %v1040_v34 = vld [vmem:[#allocation2 + $0x60] sm:$0xf]  ;;  %5525 = vmatprep.subr.bf16.mxu0 %v6011_v9  ;;  %v1044_v8 = vld [vmem:[#allocation2 + $0x68] sm:$0x1] }
  0x72   : > { %v793_v12 = vor.u32 %v791_v41, %v790_v53  ;;  %v794_v15 = vrot.slane %v790_v53, 4  ;;  %v798_v16 = vrot.slane %v796_v56, 7  ;;  %5367 = vmatprep.subr.bf16.mxu1 %v6022_v37  ;;  %v365_v4 = vmul.f32 %v4916_v11, %v6318_v43  ;;  %v487_v36 = vld [vmem:[#allocation2 + $0x6c] sm:$0x1]  ;;  %v543_v37 = vld [vmem:[#allocation2 + $0x74] sm:$0x1] }
  0x73   : > { %v1328_v19 = vrot.slane %v1327_v60, 4  ;;  %v1338_v20 = vrot.slane %v1337_v3, 4  ;;  %v6630_v10 = vld [vmem:[#allocation2 + $0x58] sm:$0xf]  ;;  %v402_v33 = vadd.f32 %v6329_v61, %v364_v25  ;;  %v1347_v35 = vrot.slane %v1345_v6, 4  ;;  %5526 = vmatpush3.bf16.msra.mxu0 %v6011_v9 }
  0x74   : > { %v6632_v29 = vld [vmem:[#allocation2 + $0x5c] sm:$0x1]  ;;  %v1350_v30 = vrot.slane %v1348_v27, 5  ;;  %v1354_v32 = vshll.u32 %v6630_v10, 16  ;;  %v1358_v24 = vshrl.u32 %v6630_v10, 16  ;;  %v801_v53 = vor.u32 %v799_v52, %v798_v16  ;;  %5559 = vmatprep.subr.bf16.mxu0 %v6628_v40 }
  0x75   : > { %v1333_v39 = vsel %vm6268_vm7, %v1328_v19, %v1332_v0  ;;  %v1343_v55 = vsel %vm6268_vm7, %v1338_v20, %v1342_v42  ;;  %v1364_v11 = vshll.u32 %v6632_v29, 16  ;;  %v803_v6 = vrot.slane %v798_v16, 4 }
  0x76   : > { %v6644_v25 = vcombine.low %v1333_v39, %v1343_v55  ;;  %v1351_v41 = vor.u32 %v1350_v30, %v1347_v35  ;;  %v1356_v56 = vrot.slane %v1354_v32, 5  ;;  %v1360_v60 = vrot.slane %v1358_v24, 4  ;;  %v6669_v32 = vld [vmem:[%s6281_s23 + $0x48] sm:$0xff]   ;;  %v490_v24 = vld [vmem:[#allocation2 + $0x78] sm:$0x1] }
  0x77   : > { %v1366_v3 = vrot.slane %v1364_v11, 5  ;;  %v802_v9 = vsel %vm6370_vm11, %v794_v15, %v801_v53  ;;  %v1041_v0 = vsel %vm6364_vm10, %v793_v12, %v1040_v34  ;;  %v403_v52 = vadd.f32 %v6329_v61, %v365_v4 }
  0x78   : > { %7538 = vst [vmem:[#allocation7_spill] sm:$0xff] %v6644_v25  ;;  %5488 = vmatmul.mubr.bf16.gmra.mrb[8].mxu0 %v6644_v25  ;;  %5299 = vmatprep.mubr.bf16.mxu1 %v6644_v25  ;;  %v1352_v42 = vrot.slane %v1351_v41, 4  ;;  %v1361_v27 = vor.u32 %v1360_v60, %v1356_v56  ;;  %1042 = vst [vmem:[#allocation2 + $0x60] sm:$0xf] %v1041_v0  ;;  %v434_v19 = vmax.f32 %v402_v33, 0.0  ;;  %v488_v15 = vsel %vm6196_vm3, 0, %v487_v36 }
  0x79   : > { %1043 = vst [vmem:[#allocation2 + $0x64] sm:$0xf] %v802_v9  ;;  %v1045_v20 = vsel %vm6196_vm3, %v803_v6, %v1044_v8  ;;  %v544_v12 = vsel %vm6210_vm4, 0, %v543_v37  ;;  %v4686_v16 = vrot.slane %v6409_v47, 9  ;;  %v435_v30 = vmax.f32 %v403_v52, 0.0 }
  0x7a   : > { %v1357_v34 = vsel %vm6268_vm7, %v1352_v42, %v1356_v56  ;;  %v1362_v35 = vrot.slane %v1361_v27, 4  ;;  %1046 = vst [vmem:[#allocation2 + $0x68] sm:$0x1] %v1045_v20  ;;  %489 = vst [vmem:[#allocation2 + $0x6c] sm:$0x1] %v488_v15  ;;  %v4833_v4 = vpack.c.bf16 %v434_v19, %v434_v19  ;;  %v2182_v47 = vrot.slane %v6411_v48, 5 }
  0x7b   : > { %545 = vst [vmem:[#allocation2 + $0x74] sm:$0x1] %v544_v12  ;;  %v2185_v8 = vrot.slane %v6413_v1, 5  ;;  %v4687_v36 = vrot.slane %v6429_v59, 9  ;;  %v2189_v37 = vrot.slane %v6432_v62, 5  ;;  %v4834_v55 = vpack.c.bf16 %v435_v30, %v435_v30 }
  0x7c   : > { %v1367_v39 = vsel %vm6268_vm7, %v1362_v35, %v1366_v3  ;;  %v805_v11 = vshrl.u32 %v4833_v4, 16  ;;  %v808_v53 = vshll.u32 %v4833_v4, 16  ;;  %v2183_v56 = vsel %vm6664_vm14, %v4686_v16, %v2182_v47 }
  0x7d   : > { %v6677_v41 = vcombine.low %v1357_v34, %v1367_v39  ;;  %v2184_v60 = vrot.slane %v2182_v47, 4  ;;  %v2190_v48 = vsel %vm6664_vm14, %v4687_v36, %v2189_v37  ;;  %v813_v9 = vshrl.u32 %v4834_v55, 16  ;;  %v546_v39 = vld [vmem:[#allocation2 + $0x80] sm:$0x1] }
  0x7e   : > { %v807_v1 = vrot.slane %v805_v11, 7  ;;  %v816_v59 = vshll.u32 %v4834_v55, 16  ;;  %v2191_v6 = vrot.slane %v2189_v37, 4  ;;  %v4919_v42 = vunpack.c.l.bf16 %v6669_v32  ;;  %v5034_v55 = vld [vmem:[%s6281_s23 + $0x50] sm:$0xff]   ;;  %v493_v11 = vld [vmem:[#allocation2 + $0x84] sm:$0x1] }
  0x7f   : > { %7541 = vst [vmem:[#allocation8_spill] sm:$0xff] %v6677_v41  ;;  %5300 = vmatmul.mubr.bf16.gmra.mrb[12].mxu1 %v6677_v41  ;;  %5491 = vmatprep.mubr.bf16.mxu0 %v6677_v41  ;;  %v6685_v62 = vld [vmem:[#allocation2 + $0x60] sm:$0xf]  ;;  %v2186_v0 = vsel %vm6664_vm14, %v2184_v60, %v2185_v8  ;;  %v4920_v27 = vunpack.c.h.bf16 %v6669_v32  ;;  %v491_v52 = vsel %vm6196_vm3, 0, %v490_v24  ;;  %v815_v30 = vrot.slane %v813_v9, 7 }
  0x80   : > { %v6687_v3 = vld [vmem:[#allocation2 + $0x64] sm:$0xf]  ;;  %v1369_v19 = vshrl.u32 %v6685_v62, 16  ;;  %v1372_v20 = vshll.u32 %v6685_v62, 16  ;;  %492 = vst [vmem:[#allocation2 + $0x78] sm:$0x1] %v491_v52  ;;  %v810_v34 = vor.u32 %v808_v53, %v807_v1  ;;  %v6701_v32 = vcombine.low %v2183_v56, %v2186_v0 }
  0x81   : > { %v1378_v15 = vshll.u32 %v6687_v3, 16  ;;  %v1382_v12 = vshrl.u32 %v6687_v3, 16  ;;  %v6699_v16 = vld [vmem:[#allocation2 + $0x68] sm:$0x1]  ;;  %v811_v35 = vrot.slane %v807_v1, 4  ;;  %v818_v26 = vor.u32 %v816_v59, %v815_v30 }
  0x82   : > { %v1047_v4 = vld [vmem:[#allocation2 + $0x6c] sm:$0xf]  ;;  %v1371_v47 = vrot.slane %v1369_v19, 4  ;;  %v1374_v24 = vrot.slane %v1372_v20, 5  ;;  %v1051_v37 = vld [vmem:[#allocation2 + $0x74] sm:$0x1]  ;;  %v366_v19 = vmul.f32 %v4919_v42, %v6318_v43 }
  0x83   : > { %v1380_v8 = vrot.slane %v1378_v15, 5  ;;  %v1384_v36 = vrot.slane %v1382_v12, 4  ;;  %v1388_v60 = vshll.u32 %v6699_v16, 16  ;;  %v820_v52 = vrot.slane %v815_v30, 4  ;;  %v549_v20 = vld [vmem:[#allocation2 + $0x8c] sm:$0x1] }
  0x84   : > { %v1048_v53 = vsel %vm6364_vm10, %v810_v34, %v1047_v4  ;;  %v1375_v1 = vor.u32 %v1374_v24, %v1371_v47  ;;  %v7542_v56 = vrot.slane %v6434_v5, 5  ;;  %v819_v12 = vsel %vm6370_vm11, %v811_v35, %v818_v26 }
  0x85   : > { %v1385_v9 = vor.u32 %v1384_v36, %v1380_v8  ;;  %1049 = vst [vmem:[#allocation2 + $0x6c] sm:$0xf] %v1048_v53  ;;  %v1390_v15 = vrot.slane %v1388_v60, 5  ;;  %v1052_v59 = vsel %vm6196_vm3, %v820_v52, %v1051_v37  ;;  %1050 = vst [vmem:[#allocation2 + $0x70] sm:$0xf] %v819_v12  ;;  %v367_v5 = vmul.f32 %v4920_v27, %v6318_v43 }
  0x86   : > { %v2193_v0 = vsel %vm6664_vm14, %v2191_v6, %v7542_v56  ;;  %v1376_v34 = vrot.slane %v1375_v1, 4  ;;  %1053 = vst [vmem:[#allocation2 + $0x74] sm:$0x1] %v1052_v59  ;;  %v404_v6 = vadd.f32 %v6329_v61, %v366_v19  ;;  %v547_v42 = vsel %vm6210_vm4, 0, %v546_v39  ;;  %v6738_v1 = vld [vmem:[%s6281_s23 + $0x58] sm:$0xff]  }
  0x87   : > { %v6716_v30 = vcombine.low %v2190_v48, %v2193_v0  ;;  %v1386_v4 = vrot.slane %v1385_v9, 4  ;;  %v4923_v47 = vunpack.c.l.bf16 %v5034_v55  ;;  %v4924_v24 = vunpack.c.h.bf16 %v5034_v55  ;;  %548 = vst [vmem:[#allocation2 + $0x80] sm:$0x1] %v547_v42 }
  0x88   : > { %v494_v26 = vsel %vm6196_vm3, 0, %v493_v11  ;;  %v1381_v48 = vsel %vm6268_vm7, %v1376_v34, %v1380_v8  ;;  %v405_v36 = vadd.f32 %v6329_v61, %v367_v5  ;;  %v436_v27 = vmax.f32 %v404_v6, 0.0 }
  0x89   : > { %v1391_v35 = vsel %vm6268_vm7, %v1386_v4, %v1390_v15  ;;  %495 = vst [vmem:[#allocation2 + $0x84] sm:$0x1] %v494_v26  ;;  %v368_v39 = vmul.f32 %v4923_v47, %v6318_v43  ;;  %v369_v55 = vmul.f32 %v4924_v24, %v6318_v43  ;;  %v550_v11 = vsel %vm6210_vm4, 0, %v549_v20 }
  0x8a   : > { %v6729_v37 = vcombine.low %v1381_v48, %v1391_v35  ;;  %v437_v60 = vmax.f32 %v405_v36, 0.0  ;;  %v4835_v52 = vpack.c.bf16 %v436_v27, %v436_v27  ;;  %551 = vst [vmem:[#allocation2 + $0x8c] sm:$0x1] %v550_v11  ;;  %v4688_v8 = vrot.slane %v6443_v17, 9 }
  0x8b   : > { %v2196_v53 = vrot.slane %v6447_v23, 5  ;;  %v406_v56 = vadd.f32 %v6329_v61, %v368_v39  ;;  %v407_v0 = vadd.f32 %v6329_v61, %v369_v55  ;;  %v2199_v19 = vrot.slane %v6450_v28, 5 }
  0x8c   : > { %7543 = vst [vmem:[#allocation9_spill] sm:$0xff] %v6729_v37  ;;  %5492 = vmatmul.mubr.bf16.gmra.mrb[12].mxu0 %v6729_v37  ;;  %5303 = vmatprep.mubr.bf16.mxu1 %v6729_v37  ;;  %v6742_v9 = vld [vmem:[#allocation2 + $0x6c] sm:$0xf]  ;;  %v4836_v15 = vpack.c.bf16 %v437_v60, %v437_v60  ;;  %v822_v12 = vshrl.u32 %v4835_v52, 16  ;;  %v6751_v59 = vld [vmem:[#allocation2 + $0x70] sm:$0xf] }
  0x8d   : > { %v1393_v17 = vshrl.u32 %v6742_v9, 16  ;;  %v1396_v23 = vshll.u32 %v6742_v9, 16  ;;  %5527 = vmatprep.mubr.bf16.mxu0 %v6701_v32  ;;  %v6753_v34 = vld [vmem:[#allocation2 + $0x74] sm:$0x1]  ;;  %v825_v4 = vshll.u32 %v4835_v52, 16  ;;  %v438_v5 = vmax.f32 %v406_v56, 0.0 }
  0x8e   : > { %v2197_v6 = vsel %vm6664_vm14, %v4688_v8, %v2196_v53  ;;  %v1402_v24 = vshll.u32 %v6751_v59, 16  ;;  %v1406_v26 = vshrl.u32 %v6751_v59, 16  ;;  %v1412_v48 = vshll.u32 %v6753_v34, 16  ;;  %v1054_v60 = vld [vmem:[#allocation2 + $0x78] sm:$0xf] }
  0x8f   : > { %v1395_v42 = vrot.slane %v1393_v17, 4  ;;  %v1398_v47 = vrot.slane %v1396_v23, 5  ;;  %v824_v35 = vrot.slane %v822_v12, 7  ;;  %v830_v36 = vshrl.u32 %v4836_v15, 16  ;;  %v6015_v17 = vld [vmem:[%s7503_s4 + $0x188] sm:$0xff]  }
  0x90   : > { %v833_v27 = vshll.u32 %v4836_v15, 16  ;;  %v1404_v55 = vrot.slane %v1402_v24, 5  ;;  %v1408_v11 = vrot.slane %v1406_v26, 4  ;;  %v439_v52 = vmax.f32 %v407_v0, 0.0  ;;  %v1058_v41 = vld [vmem:[#allocation2 + $0x80] sm:$0x1] }
  0x91   : > { %v1399_v39 = vor.u32 %v1398_v47, %v1395_v42  ;;  %v1414_v56 = vrot.slane %v1412_v48, 5  ;;  %v827_v8 = vor.u32 %v825_v4, %v824_v35  ;;  %v828_v20 = vrot.slane %v824_v35, 4 }
  0x92   : > { %v832_v28 = vrot.slane %v830_v36, 7  ;;  %v1409_v37 = vor.u32 %v1408_v11, %v1404_v55  ;;  %v4837_v25 = vpack.c.bf16 %v438_v5, %v438_v5  ;;  %v4838_v12 = vpack.c.bf16 %v439_v52, %v439_v52  ;;  %v552_v52 = vld [vmem:[#allocation2 + $0x98] sm:$0x1] }
  0x93   : > { %v1400_v23 = vrot.slane %v1399_v39, 4  ;;  %v1055_v0 = vsel %vm6364_vm10, %v827_v8, %v1054_v60  ;;  %v2198_v47 = vrot.slane %v2196_v53, 4  ;;  %v2206_v60 = vrot.slane %v6468_v7, 5 }
  0x94   : > { %5528 = vmatmul.mubr.bf16.vlgmr.msra.gmra.mrb[0].mxu0 %v6716_v30  ;;  %v835_v15 = vor.u32 %v833_v27, %v832_v28  ;;  %v837_v42 = vrot.slane %v832_v28, 4  ;;  %v1410_v24 = vrot.slane %v1409_v37, 4  ;;  %1056 = vst [vmem:[#allocation2 + $0x78] sm:$0xf] %v1055_v0  ;;  %v839_v26 = vshrl.u32 %v4837_v25, 16 }
  0x95   : > { %v1405_v4 = vsel %vm6268_vm7, %v1400_v23, %v1404_v55  ;;  %5560 = vmatpush3.bf16.msra.mxu0 %v6628_v40  ;;  %v842_v48 = vshll.u32 %v4837_v25, 16  ;;  %v847_v28 = vshrl.u32 %v4838_v12, 16  ;;  %v850_v36 = vshll.u32 %v4838_v12, 16  ;;  %v496_v27 = vld [vmem:[#allocation2 + $0x90] sm:$0x1] }
  0x96   : > { %v836_v5 = vsel %vm6370_vm11, %v828_v20, %v835_v15  ;;  %v1059_v35 = vsel %vm6196_vm3, %v837_v42, %v1058_v41  ;;  %5561 = vmatprep.subr.bf16.mxu0 %v6015_v17  ;;  %v1415_v53 = vsel %vm6268_vm7, %v1410_v24, %v1414_v56  ;;  %v841_v37 = vrot.slane %v839_v26, 7  ;;  %v6017_v20 = vld [vmem:[%s7503_s4 + $0x190] sm:$0xff]   ;;  %v1061_v55 = vld [vmem:[#allocation2 + $0x84] sm:$0xf] }
  0x97   : > { %1057 = vst [vmem:[#allocation2 + $0x7c] sm:$0xf] %v836_v5  ;;  %1060 = vst [vmem:[#allocation2 + $0x80] sm:$0x1] %v1059_v35  ;;  %v2200_v40 = vsel %vm6664_vm14, %v2198_v47, %v2199_v19  ;;  %v2203_v25 = vrot.slane %v6465_v58, 5  ;;  %v6782_v41 = vcombine.low %v1405_v4, %v1415_v53  ;;  %v849_v39 = vrot.slane %v847_v28, 7 }
  0x98   : > { %v6784_v11 = vcombine.low %v2197_v6, %v2200_v40  ;;  %v844_v56 = vor.u32 %v842_v48, %v841_v37  ;;  %v845_v8 = vrot.slane %v841_v37, 4  ;;  %v1065_v19 = vld [vmem:[#allocation2 + $0x8c] sm:$0x1]  ;;  %v7545_v58 = vrot.slane %v6455_v63, 9  ;;  %v5036_v47 = vld [vmem:[%s6281_s23 + $0x60] sm:$0xff]   ;;  %v6019_v63 = vld [vmem:[%s7503_s4 + $0x198] sm:$0xff]  }
  0x99   : > { %7544 = vst [vmem:[#allocation10_spill] sm:$0xff] %v6782_v41  ;;  %v2205_v12 = vrot.slane %v2203_v25, 4  ;;  %5562 = vmatpush3.bf16.msra.mxu0 %v6015_v17  ;;  %5304 = vmatmul.mubr.bf16.gmra.mrb[16].mxu1 %v6782_v41  ;;  %v852_v15 = vor.u32 %v850_v36, %v849_v39  ;;  %v854_v42 = vrot.slane %v849_v39, 4  ;;  %v4928_v6 = vunpack.c.h.bf16 %v6738_v1  ;;  %v499_v48 = vld [vmem:[#allocation2 + $0x9c] sm:$0x1]  ;;  %v6023_v39 = vld [vmem:[%s7503_s4 + $0x1a0] sm:$0xff]  }
  0x9a   : > { %v2204_v23 = vsel %vm6664_vm14, %v7545_v58, %v2203_v25  ;;  %5531 = vmatprep.mubr.bf16.mxu0 %v6784_v11  ;;  %v7546_v7 = vunpack.c.l.bf16 %v6738_v1  ;;  %v1062_v17 = vsel %vm6364_vm10, %v844_v56, %v1061_v55  ;;  %v497_v24 = vsel %vm6196_vm3, 0, %v496_v27  ;;  %v555_v1 = vld [vmem:[#allocation2 + $0xa4] sm:$0x1]  ;;  %5563 = vmatprep.subr.bf16.mxu0 %v6017_v20 }
  0x9b   : > { %v2207_v4 = vsel %vm6664_vm14, %v2205_v12, %v2206_v60  ;;  %v553_v26 = vsel %vm6210_vm4, 0, %v552_v52  ;;  %v6809_v5 = vld [vmem:[#allocation2 + $0x78] sm:$0xf]  ;;  %v853_v35 = vsel %vm6370_vm11, %v845_v8, %v852_v15  ;;  %1063 = vst [vmem:[#allocation2 + $0x84] sm:$0xf] %v1062_v17  ;;  %v1066_v28 = vsel %vm6196_vm3, %v854_v42, %v1065_v19 }
  0x9c   : > { %v370_v0 = vmul.f32 %v7546_v7, %v6318_v43  ;;  %v6815_v36 = vcombine.low %v2204_v23, %v2207_v4  ;;  %v371_v53 = vmul.f32 %v4928_v6, %v6318_v43  ;;  %498 = vst [vmem:[#allocation2 + $0x90] sm:$0x1] %v497_v24  ;;  %554 = vst [vmem:[#allocation2 + $0x98] sm:$0x1] %v553_v26  ;;  %v1417_v37 = vshrl.u32 %v6809_v5, 16  ;;  %v6840_v24 = vld [vmem:[%s6281_s23 + $0x68] sm:$0xff]  }
  0x9d   : > { %v1420_v40 = vshll.u32 %v6809_v5, 16  ;;  %1064 = vst [vmem:[#allocation2 + $0x88] sm:$0xf] %v853_v35  ;;  %1067 = vst [vmem:[#allocation2 + $0x8c] sm:$0x1] %v1066_v28  ;;  %v4931_v27 = vunpack.c.l.bf16 %v5036_v47  ;;  %5564 = vmatpush3.bf16.msra.mxu0 %v6017_v20  ;;  %v4932_v56 = vunpack.c.h.bf16 %v5036_v47  ;;  %v500_v8 = vsel %vm6196_vm3, 0, %v499_v48 }
  0x9e   : > { %7547 = vst [vmem:[#allocation11_spill] sm:$0xff] %v6815_v36  ;;  %v408_v25 = vadd.f32 %v6329_v61, %v370_v0  ;;  %v6824_v55 = vld [vmem:[#allocation2 + $0x7c] sm:$0xf]  ;;  %v6826_v60 = vld [vmem:[#allocation2 + $0x80] sm:$0x1]  ;;  %5532 = vmatmul.mubr.bf16.gmra.mrb[4].mxu0 %v6815_v36  ;;  %v409_v52 = vadd.f32 %v6329_v61, %v371_v53  ;;  %v556_v19 = vsel %vm6210_vm4, 0, %v555_v1  ;;  %5565 = vmatprep.subr.bf16.mxu0 %v6019_v63 }
  0x9f   : > { %v1419_v20 = vrot.slane %v1417_v37, 4  ;;  %v1422_v58 = vrot.slane %v1420_v40, 5  ;;  %v1426_v23 = vshll.u32 %v6824_v55, 16  ;;  %v1430_v12 = vshrl.u32 %v6824_v55, 16  ;;  %501 = vst [vmem:[#allocation2 + $0x9c] sm:$0x1] %v500_v8 }
  0xa0   : > { %557 = vst [vmem:[#allocation2 + $0xa4] sm:$0x1] %v556_v19  ;;  %v1436_v15 = vshll.u32 %v6826_v60, 16  ;;  %v440_v42 = vmax.f32 %v408_v25, 0.0  ;;  %v441_v6 = vmax.f32 %v409_v52, 0.0  ;;  %v372_v7 = vmul.f32 %v4931_v27, %v6318_v43  ;;  %v6027_v28 = vld [vmem:[%s7503_s4 + $0x1a8] sm:$0xff]  }
  0xa1   : > { %v1423_v0 = vor.u32 %v1422_v58, %v1419_v20  ;;  %v1428_v47 = vrot.slane %v1426_v23, 5  ;;  %v1432_v17 = vrot.slane %v1430_v12, 4  ;;  %v373_v4 = vmul.f32 %v4932_v56, %v6318_v43  ;;  %5566 = vmatpush3.bf16.msra.mxu0 %v6019_v63 }
  0xa2   : > { %v1438_v26 = vrot.slane %v1436_v15, 5  ;;  %v4839_v48 = vpack.c.bf16 %v440_v42, %v440_v42  ;;  %v4840_v1 = vpack.c.bf16 %v441_v6, %v441_v6  ;;  %v410_v35 = vadd.f32 %v6329_v61, %v372_v7  ;;  %5567 = vmatprep.subr.bf16.mxu0 %v6023_v39  ;;  %v6846_v40 = vld [vmem:[#allocation2 + $0x84] sm:$0xf] }
  0xa3   : > { %v1424_v53 = vrot.slane %v1423_v0, 4  ;;  %v1433_v37 = vor.u32 %v1432_v17, %v1428_v47  ;;  %v411_v25 = vadd.f32 %v6329_v61, %v373_v4  ;;  %v1441_v56 = vshrl.u32 %v6846_v40, 16  ;;  %v6031_v17 = vld [vmem:[%s7503_s4 + $0x1b0] sm:$0xff]  }
  0xa4   : > { %v6850_v52 = vld [vmem:[#allocation2 + $0x88] sm:$0xf]  ;;  %v6852_v63 = vld [vmem:[#allocation2 + $0x8c] sm:$0x1]  ;;  %v1444_v8 = vshll.u32 %v6846_v40, 16  ;;  %v856_v0 = vshrl.u32 %v4839_v48, 16 }
  0xa5   : > { %v1429_v58 = vsel %vm6268_vm7, %v1424_v53, %v1428_v47  ;;  %v1434_v23 = vrot.slane %v1433_v37, 4  ;;  %v1450_v12 = vshll.u32 %v6850_v52, 16  ;;  %v1454_v15 = vshrl.u32 %v6850_v52, 16  ;;  %5568 = vmatpush3.bf16.msra.mxu0 %v6023_v39  ;;  %v1068_v38 = vld [vmem:[#allocation2 + $0x90] sm:$0xf] }
  0xa6   : > { %v1443_v42 = vrot.slane %v1441_v56, 4  ;;  %v1446_v6 = vrot.slane %v1444_v8, 5  ;;  %v1460_v7 = vshll.u32 %v6852_v63, 16  ;;  %5569 = vmatprep.subr.bf16.mxu0 %v6027_v28  ;;  %v859_v37 = vshll.u32 %v4839_v48, 16  ;;  %v6035_v48 = vld [vmem:[%s7503_s4 + $0x1b8] sm:$0xff]  }
  0xa7   : > { %v1439_v4 = vsel %vm6268_vm7, %v1434_v23, %v1438_v26  ;;  %v1452_v47 = vrot.slane %v1450_v12, 5  ;;  %v1456_v53 = vrot.slane %v1454_v15, 4  ;;  %v858_v56 = vrot.slane %v856_v0, 7 }
  0xa8   : > { %v6868_v20 = vcombine.low %v1429_v58, %v1439_v4  ;;  %v1447_v19 = vor.u32 %v1446_v6, %v1443_v42  ;;  %v1462_v39 = vrot.slane %v1460_v7, 5  ;;  %v864_v27 = vshrl.u32 %v4840_v1, 16 }
  0xa9   : > { %v1457_v8 = vor.u32 %v1456_v53, %v1452_v47  ;;  %v867_v41 = vshll.u32 %v4840_v1, 16  ;;  %v442_v51 = vmax.f32 %v410_v35, 0.0  ;;  %5570 = vmatpush3.bf16.msra.mxu0 %v6027_v28  ;;  %v861_v21 = vor.u32 %v859_v37, %v858_v56  ;;  %v1072_v28 = vld [vmem:[#allocation2 + $0x98] sm:$0x1]  ;;  %v1075_v53 = vld [vmem:[#allocation2 + $0x9c] sm:$0xf] }
  0xaa   : > { %7548 = vst [vmem:[#allocation12_spill] sm:$0xff] %v6868_v20  ;;  %5307 = vmatprep.mubr.bf16.mxu1 %v6868_v20  ;;  %v1448_v2 = vrot.slane %v1447_v19, 4  ;;  %v862_v36 = vrot.slane %v858_v56, 4  ;;  %v443_v26 = vmax.f32 %v411_v25, 0.0  ;;  %5571 = vmatprep.subr.bf16.mxu0 %v6031_v17  ;;  %v866_v23 = vrot.slane %v864_v27, 7 }
  0xab   : > { %v1458_v58 = vrot.slane %v1457_v8, 4  ;;  %v4841_v12 = vpack.c.bf16 %v442_v51, %v442_v51  ;;  %v2210_v15 = vrot.slane %v6567_v31, 5  ;;  %v1069_v35 = vsel %vm6364_vm10, %v861_v21, %v1068_v38  ;;  %v6887_v21 = vld [vmem:[%s7503_s4 + $0x1c0] sm:$0xff]  }
  0xac   : > { %v1453_v1 = vsel %vm6268_vm7, %v1448_v2, %v1452_v47  ;;  %v4842_v19 = vpack.c.bf16 %v443_v26, %v443_v26  ;;  %v2213_v25 = vrot.slane %v6569_v54, 5  ;;  %v869_v6 = vor.u32 %v867_v41, %v866_v23  ;;  %1070 = vst [vmem:[#allocation2 + $0x90] sm:$0xf] %v1069_v35  ;;  %v1079_v26 = vld [vmem:[#allocation2 + $0xa4] sm:$0x1] }
  0xad   : > { %v1463_v42 = vsel %vm6268_vm7, %v1458_v58, %v1462_v39  ;;  %v871_v7 = vrot.slane %v866_v23, 4  ;;  %v873_v27 = vshrl.u32 %v4841_v12, 16  ;;  %5572 = vmatpush3.bf16.msra.mxu0 %v6031_v17  ;;  %v876_v31 = vshll.u32 %v4841_v12, 16  ;;  %v502_v12 = vld [vmem:[#allocation2 + $0xa8] sm:$0x1] }
  0xae   : > { %v6882_v51 = vcombine.low %v1453_v1, %v1463_v42  ;;  %v881_v0 = vshrl.u32 %v4842_v19, 16  ;;  %v884_v2 = vshll.u32 %v4842_v19, 16  ;;  %5573 = vmatprep.subr.bf16.mxu0 %v6035_v48  ;;  %v870_v54 = vsel %vm6370_vm11, %v862_v36, %v869_v6  ;;  %v558_v42 = vld [vmem:[#allocation2 + $0xb0] sm:$0x1] }
  0xaf   : > { %v1073_v38 = vsel %vm6196_vm3, %v871_v7, %v1072_v28  ;;  %v875_v41 = vrot.slane %v873_v27, 7  ;;  %v7550_v17 = vrot.slane %v6557_v44, 9  ;;  %1071 = vst [vmem:[#allocation2 + $0x94] sm:$0xf] %v870_v54  ;;  %v2212_v37 = vrot.slane %v2210_v15, 4  ;;  %v5038_v6 = vld [vmem:[%s6281_s23 + $0x70] sm:$0xff]  }
  0xb0   : > { %7549 = vst [vmem:[#allocation13_spill] sm:$0xff] %v6882_v51  ;;  %5308 = vmatmul.mubr.bf16.gmra.mrb[20].mxu1 %v6882_v51  ;;  %1074 = vst [vmem:[#allocation2 + $0x98] sm:$0x1] %v1073_v38  ;;  %v883_v47 = vrot.slane %v881_v0, 7  ;;  %v4691_v39 = vrot.slane %v6591_v13, 9  ;;  %v2217_v36 = vrot.slane %v6597_v22, 5  ;;  %v7551_v58 = vunpack.c.l.bf16 %v6840_v24 }
  0xb1   : > { %v2211_v4 = vsel %vm6664_vm14, %v7550_v17, %v2210_v15  ;;  %v878_v56 = vor.u32 %v876_v31, %v875_v41  ;;  %v879_v8 = vrot.slane %v875_v41, 4  ;;  %v2220_v44 = vrot.slane %v6599_v46, 5  ;;  %5574 = vmatpush3.bf16.msra.mxu0 %v6035_v48 }
  0xb2   : > { %v374_v23 = vmul.f32 %v7551_v58, %v6318_v43  ;;  %v886_v1 = vor.u32 %v884_v2, %v883_v47  ;;  %v888_v35 = vrot.slane %v883_v47, 4  ;;  %v2214_v15 = vsel %vm6664_vm14, %v2212_v37, %v2213_v25  ;;  %5607 = vmatprep.subr.bf16.mxu0 %v6887_v21 }
  0xb3   : > { %v2218_v13 = vsel %vm6664_vm14, %v4691_v39, %v2217_v36  ;;  %v1076_v22 = vsel %vm6364_vm10, %v878_v56, %v1075_v53  ;;  %v6911_v46 = vcombine.low %v2211_v4, %v2214_v15  ;;  %v2219_v28 = vrot.slane %v2217_v36, 4  ;;  %v6917_v7 = vld [vmem:[#allocation2 + $0x90] sm:$0xf] }
  0xb4   : > { %v7552_v19 = vunpack.c.h.bf16 %v6840_v24  ;;  %v887_v25 = vsel %vm6370_vm11, %v879_v8, %v886_v1  ;;  %1077 = vst [vmem:[#allocation2 + $0x9c] sm:$0xf] %v1076_v22  ;;  %v1080_v27 = vsel %vm6196_vm3, %v888_v35, %v1079_v26  ;;  %v412_v31 = vadd.f32 %v6329_v61, %v374_v23 }
  0xb5   : > { %v503_v0 = vsel %vm6196_vm3, 0, %v502_v12  ;;  %v1465_v2 = vshrl.u32 %v6917_v7, 16  ;;  %v1468_v24 = vshll.u32 %v6917_v7, 16  ;;  %1078 = vst [vmem:[#allocation2 + $0xa0] sm:$0xf] %v887_v25  ;;  %5535 = vmatprep.mubr.bf16.mxu0 %v6911_v46  ;;  %v2221_v54 = vsel %vm6664_vm14, %v2219_v28, %v2220_v44 }
  0xb6   : > { %v375_v48 = vmul.f32 %v7552_v19, %v6318_v43  ;;  %1081 = vst [vmem:[#allocation2 + $0xa4] sm:$0x1] %v1080_v27  ;;  %504 = vst [vmem:[#allocation2 + $0xa8] sm:$0x1] %v503_v0  ;;  %v6932_v41 = vcombine.low %v2218_v13, %v2221_v54  ;;  %v444_v17 = vmax.f32 %v412_v31, 0.0  ;;  %v559_v4 = vsel %vm6210_vm4, 0, %v558_v42 }
  0xb7   : > { %v4939_v47 = vunpack.c.l.bf16 %v5038_v6  ;;  %v6936_v53 = vld [vmem:[#allocation2 + $0x94] sm:$0xf]  ;;  %v6938_v37 = vld [vmem:[#allocation2 + $0x98] sm:$0x1]  ;;  %v1467_v39 = vrot.slane %v1465_v2, 4  ;;  %v1470_v36 = vrot.slane %v1468_v24, 5  ;;  %v4940_v56 = vunpack.c.h.bf16 %v5038_v6 }
  0xb8   : > { %v413_v38 = vadd.f32 %v6329_v61, %v375_v48  ;;  %7553 = vst [vmem:[#allocation14_spill] sm:$0xff] %v6932_v41  ;;  %560 = vst [vmem:[#allocation2 + $0xb0] sm:$0x1] %v559_v4  ;;  %v1474_v8 = vshll.u32 %v6936_v53, 16  ;;  %v1478_v26 = vshrl.u32 %v6936_v53, 16  ;;  %v1484_v44 = vshll.u32 %v6938_v37, 16  ;;  %5536 = vmatmul.mubr.bf16.gmra.mrb[8].mxu0 %v6932_v41 }
  0xb9   : > { %v1471_v23 = vor.u32 %v1470_v36, %v1467_v39  ;;  %v4843_v12 = vpack.c.bf16 %v444_v17, %v444_v17  ;;  %v376_v1 = vmul.f32 %v4939_v47, %v6318_v43  ;;  %v377_v35 = vmul.f32 %v4940_v56, %v6318_v43 }
  0xba   : > { %v445_v58 = vmax.f32 %v413_v38, 0.0  ;;  %v1476_v15 = vrot.slane %v1474_v8, 5  ;;  %v1480_v13 = vrot.slane %v1478_v26, 4  ;;  %v1486_v22 = vrot.slane %v1484_v44, 5 }
  0xbb   : > { %v1472_v19 = vrot.slane %v1471_v23, 4  ;;  %v6946_v48 = vld [vmem:[#allocation2 + $0x9c] sm:$0xf]  ;;  %v890_v42 = vshrl.u32 %v4843_v12, 16  ;;  %v893_v6 = vshll.u32 %v4843_v12, 16  ;;  %v414_v25 = vadd.f32 %v6329_v61, %v376_v1 }
  0xbc   : > { %v4844_v28 = vpack.c.bf16 %v445_v58, %v445_v58  ;;  %v1481_v27 = vor.u32 %v1480_v13, %v1476_v15  ;;  %v6949_v31 = vld [vmem:[#allocation2 + $0xa0] sm:$0xf]  ;;  %v1489_v2 = vshrl.u32 %v6946_v48, 16  ;;  %v1492_v24 = vshll.u32 %v6946_v48, 16 }
  0xbd   : > { %v6951_v0 = vld [vmem:[#allocation2 + $0xa4] sm:$0x1]  ;;  %v415_v54 = vadd.f32 %v6329_v61, %v377_v35  ;;  %v1477_v38 = vsel %vm6268_vm7, %v1472_v19, %v1476_v15  ;;  %v1498_v17 = vshll.u32 %v6949_v31, 16  ;;  %v1502_v4 = vshrl.u32 %v6949_v31, 16  ;;  %v1082_v12 = vld [vmem:[#allocation2 + $0xa8] sm:$0xf] }
  0xbe   : > { %v1508_v47 = vshll.u32 %v6951_v0, 16  ;;  %v1482_v39 = vrot.slane %v1481_v27, 4  ;;  %v1491_v36 = vrot.slane %v1489_v2, 4  ;;  %v1494_v56 = vrot.slane %v1492_v24, 5  ;;  %v505_v19 = vld [vmem:[#allocation2 + $0xb4] sm:$0x1] }
  0xbf   : > { %v892_v8 = vrot.slane %v890_v42, 7  ;;  %v1500_v26 = vrot.slane %v1498_v17, 5  ;;  %v1504_v44 = vrot.slane %v1502_v4, 4  ;;  %v898_v23 = vshrl.u32 %v4844_v28, 16  ;;  %v561_v2 = vld [vmem:[#allocation2 + $0xbc] sm:$0x1] }
  0xc0   : > { %v1510_v58 = vrot.slane %v1508_v47, 5  ;;  %v1487_v1 = vsel %vm6268_vm7, %v1482_v39, %v1486_v22  ;;  %v1495_v35 = vor.u32 %v1494_v56, %v1491_v36  ;;  %v901_v27 = vshll.u32 %v4844_v28, 16  ;;  %v1086_v17 = vld [vmem:[#allocation2 + $0xb0] sm:$0x1] }
  0xc1   : > { %v895_v15 = vor.u32 %v893_v6, %v892_v8  ;;  %v896_v13 = vrot.slane %v892_v8, 4  ;;  %v6963_v51 = vcombine.low %v1477_v38, %v1487_v1  ;;  %v1505_v20 = vor.u32 %v1504_v44, %v1500_v26 }
  0xc2   : > { %v900_v41 = vrot.slane %v898_v23, 7  ;;  %v1496_v24 = vrot.slane %v1495_v35, 4  ;;  %v446_v4 = vmax.f32 %v414_v25, 0.0  ;;  %v447_v47 = vmax.f32 %v415_v54, 0.0 }
  0xc3   : > { %v1083_v42 = vsel %vm6364_vm10, %v895_v15, %v1082_v12  ;;  %5311 = vmatprep.mubr.bf16.mxu1 %v6963_v51  ;;  %v1506_v22 = vrot.slane %v1505_v20, 4  ;;  %v506_v38 = vsel %vm6196_vm3, 0, %v505_v19  ;;  %v562_v36 = vsel %vm6210_vm4, 0, %v561_v2 }
  0xc4   : > { %v903_v39 = vor.u32 %v901_v27, %v900_v41  ;;  %v905_v6 = vrot.slane %v900_v41, 4  ;;  %1084 = vst [vmem:[#allocation2 + $0xa8] sm:$0xf] %v1083_v42  ;;  %v1501_v28 = vsel %vm6268_vm7, %v1496_v24, %v1500_v26  ;;  %507 = vst [vmem:[#allocation2 + $0xb4] sm:$0x1] %v506_v38  ;;  %v4845_v56 = vpack.c.bf16 %v446_v4, %v446_v4 }
  0xc5   : > { %v4846_v8 = vpack.c.bf16 %v447_v47, %v447_v47  ;;  %v1511_v25 = vsel %vm6268_vm7, %v1506_v22, %v1510_v58  ;;  %563 = vst [vmem:[#allocation2 + $0xbc] sm:$0x1] %v562_v36  ;;  %v4692_v54 = vrot.slane %v6619_v50, 9  ;;  %v2224_v35 = vrot.slane %v6630_v10, 5 }
  0xc6   : > { %v904_v20 = vsel %vm6370_vm11, %v896_v13, %v903_v39  ;;  %v1087_v41 = vsel %vm6196_vm3, %v905_v6, %v1086_v17  ;;  %v6981_v44 = vcombine.low %v1501_v28, %v1511_v25  ;;  %v907_v26 = vshrl.u32 %v4845_v56, 16 }
  0xc7   : > { %1085 = vst [vmem:[#allocation2 + $0xac] sm:$0xf] %v904_v20  ;;  %1088 = vst [vmem:[#allocation2 + $0xb0] sm:$0x1] %v1087_v41  ;;  %v910_v23 = vshll.u32 %v4845_v56, 16  ;;  %v915_v12 = vshrl.u32 %v4846_v8, 16  ;;  %v2225_v27 = vsel %vm6664_vm14, %v4692_v54, %v2224_v35 }
  0xc8   : > { %v918_v1 = vshll.u32 %v4846_v8, 16  ;;  %v2227_v58 = vrot.slane %v6632_v29, 5  ;;  %v4693_v15 = vrot.slane %v6685_v62, 9  ;;  %5312 = vmatmul.mubr.bf16.gmra.mrb[24].mxu1 %v6981_v44  ;;  %v909_v13 = vrot.slane %v907_v26, 7 }
  0xc9   : > { %v917_v19 = vrot.slane %v915_v12, 7  ;;  %v2231_v50 = vrot.slane %v6687_v3, 5  ;;  %v2226_v2 = vrot.slane %v2224_v35, 4  ;;  %v2234_v24 = vrot.slane %v6699_v16, 5 }
  0xca   : > { %v4694_v42 = vrot.slane %v6742_v9, 9  ;;  %v912_v10 = vor.u32 %v910_v23, %v909_v13  ;;  %v913_v29 = vrot.slane %v909_v13, 4 }
  0xcb   : > { %v6992_v17 = vld [vmem:[#allocation2 + $0xa8] sm:$0xf]  ;;  %v920_v4 = vor.u32 %v918_v1, %v917_v19  ;;  %v922_v62 = vrot.slane %v917_v19, 4  ;;  %v1089_v39 = vld [vmem:[#allocation2 + $0xb4] sm:$0xf]  ;;  %v2228_v3 = vsel %vm6664_vm14, %v2226_v2, %v2227_v58  ;;  %v2232_v6 = vsel %vm6664_vm14, %v4693_v15, %v2231_v50 }
  0xcc   : > { %v1513_v47 = vshrl.u32 %v6992_v17, 16  ;;  %v1516_v22 = vshll.u32 %v6992_v17, 16  ;;  %v1090_v9 = vsel %vm6364_vm10, %v912_v10, %v1089_v39  ;;  %v1093_v38 = vld [vmem:[#allocation2 + $0xbc] sm:$0x1]  ;;  %v7004_v28 = vcombine.low %v2225_v27, %v2228_v3 }
  0xcd   : > { %v921_v16 = vsel %vm6370_vm11, %v913_v29, %v920_v4  ;;  %v2233_v36 = vrot.slane %v2231_v50, 4  ;;  %1091 = vst [vmem:[#allocation2 + $0xb4] sm:$0xf] %v1090_v9  ;;  %v1094_v41 = vsel %vm6196_vm3, %v922_v62, %v1093_v38  ;;  %v2238_v58 = vrot.slane %v6751_v59, 5 }
  0xce   : > { %v7006_v56 = vld [vmem:[#allocation2 + $0xac] sm:$0xf]  ;;  %v7008_v8 = vld [vmem:[#allocation2 + $0xb0] sm:$0x1]  ;;  %v1515_v25 = vrot.slane %v1513_v47, 4  ;;  %v1518_v20 = vrot.slane %v1516_v22, 5  ;;  %5539 = vmatprep.mubr.bf16.mxu0 %v7004_v28 }
  0xcf   : > { %1092 = vst [vmem:[#allocation2 + $0xb8] sm:$0xf] %v921_v16  ;;  %v1522_v54 = vshll.u32 %v7006_v56, 16  ;;  %v1526_v26 = vshrl.u32 %v7006_v56, 16  ;;  %v1532_v23 = vshll.u32 %v7008_v8, 16  ;;  %v2235_v12 = vsel %vm6664_vm14, %v2233_v36, %v2234_v24 }
  0xd0   : > { %1095 = vst [vmem:[#allocation2 + $0xbc] sm:$0x1] %v1094_v41  ;;  %v1519_v1 = vor.u32 %v1518_v20, %v1515_v25  ;;  %v7018_v35 = vcombine.low %v2232_v6, %v2235_v12  ;;  %v2241_v15 = vrot.slane %v6753_v34, 5  ;;  %v4695_v50 = vrot.slane %v6809_v5, 9 }
  0xd1   : > { %v1524_v13 = vrot.slane %v1522_v54, 5  ;;  %v1528_v19 = vrot.slane %v1526_v26, 4  ;;  %v2239_v2 = vsel %vm6664_vm14, %v4694_v42, %v2238_v58  ;;  %v2240_v10 = vrot.slane %v2238_v58, 4 }
  0xd2   : > { %v1520_v27 = vrot.slane %v1519_v1, 4  ;;  %5540 = vmatmul.mubr.bf16.gmra.mrb[12].mxu0 %v7018_v35  ;;  %v2245_v24 = vrot.slane %v6824_v55, 5  ;;  %v1534_v4 = vrot.slane %v1532_v23, 5  ;;  %v2248_v62 = vrot.slane %v6826_v60, 5 }
  0xd3   : > { %v1529_v29 = vor.u32 %v1528_v19, %v1524_v13  ;;  %v2242_v34 = vsel %vm6664_vm14, %v2240_v10, %v2241_v15  ;;  %v4696_v22 = vrot.slane %v6846_v40, 9  ;;  %v2252_v60 = vrot.slane %v6850_v52, 5 }
  0xd4   : > { %v1525_v59 = vsel %vm6268_vm7, %v1520_v27, %v1524_v13  ;;  %v2247_v47 = vrot.slane %v2245_v24, 4  ;;  %v7033_v3 = vld [vmem:[#allocation2 + $0xb4] sm:$0xf]  ;;  %v7037_v6 = vcombine.low %v2239_v2, %v2242_v34  ;;  %v2246_v16 = vsel %vm6664_vm14, %v4695_v50, %v2245_v24 }
  0xd5   : > { %v1530_v39 = vrot.slane %v1529_v29, 4  ;;  %v1537_v38 = vshrl.u32 %v7033_v3, 16  ;;  %v1540_v36 = vshll.u32 %v7033_v3, 16  ;;  %v2253_v19 = vsel %vm6664_vm14, %v4696_v22, %v2252_v60 }
  0xd6   : > { %v7035_v42 = vld [vmem:[#allocation2 + $0xb8] sm:$0xf]  ;;  %5543 = vmatprep.mubr.bf16.mxu0 %v7037_v6  ;;  %v2249_v26 = vsel %vm6664_vm14, %v2247_v47, %v2248_v62  ;;  %v2254_v50 = vrot.slane %v2252_v60, 4  ;;  %v2255_v2 = vrot.slane %v6852_v63, 5  ;;  %v4697_v10 = vrot.slane %v6917_v7, 9 }
  0xd7   : > { %v7042_v9 = vld [vmem:[#allocation2 + $0xbc] sm:$0x1]  ;;  %v1546_v25 = vshll.u32 %v7035_v42, 16  ;;  %v1550_v20 = vshrl.u32 %v7035_v42, 16  ;;  %v1535_v41 = vsel %vm6268_vm7, %v1530_v39, %v1534_v4  ;;  %v1539_v12 = vrot.slane %v1537_v38, 4 }
  0xd8   : > { %v1556_v54 = vshll.u32 %v7042_v9, 16  ;;  %v7054_v23 = vcombine.low %v1525_v59, %v1535_v41  ;;  %v1542_v1 = vrot.slane %v1540_v36, 5  ;;  %v7056_v13 = vcombine.low %v2246_v16, %v2249_v26  ;;  %v7077_v36 = vld [vmem:[#allocation2 + $0x4] sm:$0xf] }
  0xd9   : > { %v1548_v58 = vrot.slane %v1546_v25, 5  ;;  %v1552_v15 = vrot.slane %v1550_v20, 4  ;;  %v2259_v24 = vrot.slane %v6936_v53, 5  ;;  %v2262_v62 = vrot.slane %v6938_v37, 5  ;;  %v7079_v25 = vld [vmem:[#allocation2] sm:$0xf] }
  0xda   : > { %5315 = vmatprep.mubr.bf16.mxu1 %v7054_v23  ;;  %v1543_v27 = vor.u32 %v1542_v1, %v1539_v12  ;;  %v1558_v4 = vrot.slane %v1556_v54, 5  ;;  %5544 = vmatmul.mubr.bf16.gmra.mrb[16].mxu0 %v7056_v13  ;;  %v4698_v59 = vrot.slane %v6946_v48, 9  ;;  %v2256_v47 = vsel %vm6664_vm14, %v2254_v50, %v2255_v2 }
  0xdb   : > { %v1553_v29 = vor.u32 %v1552_v15, %v1548_v58  ;;  %v2260_v22 = vsel %vm6664_vm14, %v4697_v10, %v2259_v24  ;;  %v2261_v63 = vrot.slane %v2259_v24, 4  ;;  %v7071_v16 = vcombine.low %v2253_v19, %v2256_v47  ;;  %v5039_v15 = vld [vmem:[%s6281_s23 + $0x78] sm:$0xff]   ;;  %v508_v19 = vld [vmem:[#allocation2 + $0xc0] sm:$0x1]  ;;  %v564_v24 = vld [vmem:[#allocation2 + $0xc8] sm:$0x1] }
  0xdc   : > { %v1544_v34 = vrot.slane %v1543_v27, 4  ;;  %v2266_v60 = vrot.slane %v6949_v31, 5  ;;  %v2269_v38 = vrot.slane %v6951_v0, 5  ;;  %v4661_v20 = vcombine.low %v7079_v25, %v7077_v36 }
  0xdd   : > { %v1554_v39 = vrot.slane %v1553_v29, 4  ;;  %v2263_v41 = vsel %vm6664_vm14, %v2261_v63, %v2262_v62  ;;  %v2273_v54 = vrot.slane %v7006_v56, 5  ;;  %5547 = vmatprep.mubr.bf16.mxu0 %v7071_v16  ;;  %v4699_v27 = vrot.slane %v6992_v17, 9  ;;  %v6079_v63 = vld [vmem:[#allocation2 + $0x10] sm:$0xf] }
  0xde   : > { %v1549_v37 = vsel %vm6268_vm7, %v1544_v34, %v1548_v58  ;;  %v7089_v0 = vcombine.low %v2260_v22, %v2263_v41  ;;  %v2267_v12 = vsel %vm6664_vm14, %v4698_v59, %v2266_v60  ;;  %v2268_v1 = vrot.slane %v2266_v60, 4 }
  0xdf   : > { %v1559_v26 = vsel %vm6268_vm7, %v1554_v39, %v1558_v4  ;;  %v2275_v2 = vrot.slane %v2273_v54, 4  ;;  %v2276_v10 = vrot.slane %v7008_v8, 5  ;;  %v4700_v4 = vrot.slane %v7033_v3, 9  ;;  %v6078_v8 = vld [vmem:[#allocation2 + $0xc] sm:$0xf] }
  0xe0   : > { %v7093_v58 = vcombine.low %v1549_v37, %v1559_v26  ;;  %v2270_v50 = vsel %vm6664_vm14, %v2268_v1, %v2269_v38  ;;  %v2280_v62 = vrot.slane %v7035_v42, 5  ;;  %v2283_v59 = vrot.slane %v7042_v9, 5  ;;  %v511_v26 = vld [vmem:[#allocation2 + $0xcc] sm:$0x1] }
  0xe1   : > { %v7101_v29 = vcombine.low %v2267_v12, %v2270_v50  ;;  %v4943_v34 = vunpack.c.l.bf16 %v5039_v15  ;;  %v4944_v47 = vunpack.c.h.bf16 %v5039_v15  ;;  %v509_v22 = vsel %vm6196_vm3, 0, %v508_v19  ;;  %v6080_v19 = vld [vmem:[#allocation2 + $0x18] sm:$0xf]  ;;  %v6081_v50 = vld [vmem:[#allocation2 + $0x1c] sm:$0xf] }
  0xe2   : > { %5316 = vmatmul.mubr.bf16.gmra.mrb[28].mxu1 %v7093_v58  ;;  %5548 = vmatmul.mubr.bf16.gmra.mrb[20].mxu0 %v7089_v0  ;;  %v7109_v39 = vcombine.low %v6078_v8, %v6079_v63  ;;  %v2282_v60 = vrot.slane %v2280_v62, 4  ;;  %510 = vst [vmem:[#allocation2 + $0xc0] sm:$0x1] %v509_v22  ;;  %v565_v38 = vsel %vm6210_vm4, 0, %v564_v24  ;;  %v2274_v9 = vsel %vm6664_vm14, %v4699_v27, %v2273_v54  ;;  %v6083_v22 = vld [vmem:[#allocation2 + $0x24] sm:$0xf] }
  0xe3   : > { %5335 = vmatprep.mubr.bf16.mxu1 %v4661_v20  ;;  %5551 = vmatprep.mubr.bf16.mxu0 %v7101_v29  ;;  %v2277_v37 = vsel %vm6664_vm14, %v2275_v2, %v2276_v10  ;;  %v378_v20 = vmul.f32 %v4943_v34, %v6318_v43  ;;  %v379_v41 = vmul.f32 %v4944_v47, %v6318_v43  ;;  %v6084_v8 = vld [vmem:[#allocation2 + $0x28] sm:$0xf] }
  0xe4   : > { %566 = vst [vmem:[#allocation2 + $0xc8] sm:$0x1] %v565_v38  ;;  %v2281_v12 = vsel %vm6664_vm14, %v4700_v4, %v2280_v62  ;;  %v2284_v1 = vsel %vm6664_vm14, %v2282_v60, %v2283_v59  ;;  %v7126_v15 = vcombine.low %v6917_v7, %v6936_v53  ;;  %v7130_v54 = vcombine.low %v6946_v48, %v6949_v31  ;;  %v6026_v7 = vld [vmem:[%s7503_s4 + $0x88] sm:$0xff]   ;;  %v6085_v60 = vld [vmem:[#allocation2 + $0x30] sm:$0xf] }
  0xe5   : > { %v7132_v27 = vcombine.low %v6080_v19, %v6081_v50  ;;  %v416_v43 = vadd.f32 %v6329_v61, %v378_v20  ;;  %v417_v2 = vadd.f32 %v6329_v61, %v379_v41  ;;  %v7138_v10 = vcombine.low %v6992_v17, %v7006_v56  ;;  %v6082_v17 = vld [vmem:[%s7503_s4 + $0x80] sm:$0xff]   ;;  %v6086_v38 = vld [vmem:[#allocation2 + $0x34] sm:$0xf]  ;;  %v6034_v41 = vld [vmem:[%s7503_s4 + $0x98] sm:$0xff]  }
  0xe6   : > { %v7143_v53 = vcombine.low %v2274_v9, %v2277_v37  ;;  %v7147_v48 = vcombine.low %v7033_v3, %v7035_v42  ;;  %v512_v31 = vsel %vm6196_vm3, 0, %v511_v26  ;;  %v7151_v24 = vcombine.low %v2281_v12, %v2284_v1  ;;  %v6030_v42 = vld [vmem:[%s7503_s4 + $0x90] sm:$0xff]  }
  0xe7   : > { %v448_v61 = vmax.f32 %v416_v43, 0.0  ;;  %v449_v4 = vmax.f32 %v417_v2, 0.0  ;;  %513 = vst [vmem:[#allocation2 + $0xcc] sm:$0x1] %v512_v31  ;;  %v7163_v63 = vcombine.low %v6083_v22, %v6084_v8  ;;  %v7165_v9 = vcombine.low %v6085_v60, %v6086_v38  ;;  %v567_v2 = vld [vmem:[#allocation2 + $0xd4] sm:$0x1] }
  0xe8   : > { %v6092_v22 = vld [vmem:[#allocation2 + $0x58] sm:$0xf] }
  0xe9   : > { %v4847_v56 = vpack.c.bf16 %v448_v61, %v448_v61  ;;  %v4848_v3 = vpack.c.bf16 %v449_v4, %v449_v4  ;;  %v1096_v26 = vld [vmem:[#allocation2 + $0xc0] sm:$0xf]  ;;  %v568_v4 = vsel %vm6210_vm4, 0, %v567_v2  ;;  %v6094_v2 = vld [vmem:[#allocation2 + $0x64] sm:$0xf] }
  0xea   : > { %5336 = vmatmul.mubr.bf16.vlgmr.msra.gmra.mrb[0].mxu1 %v7109_v39  ;;  %5552 = vmatmul.mubr.bf16.gmra.mrb[24].mxu0 %v7143_v53  ;;  %569 = vst [vmem:[#allocation2 + $0xd4] sm:$0x1] %v568_v4 }
  0xeb   : > { %5368 = vmatpush3.bf16.msra.mxu1 %v6082_v17  ;;  %5339 = vmatprep.mubr.bf16.mxu1 %v7132_v27  ;;  %v924_v62 = vshrl.u32 %v4847_v56, 16  ;;  %v927_v59 = vshll.u32 %v4847_v56, 16  ;;  %v932_v34 = vshrl.u32 %v4848_v3, 16  ;;  %v935_v47 = vshll.u32 %v4848_v3, 16  ;;  %v1100_v12 = vld [vmem:[#allocation2 + $0xc8] sm:$0x1] }
  0xec   : > { %5369 = vmatprep.subr.bf16.mxu1 %v6026_v7  ;;  %5555 = vmatprep.mubr.bf16.mxu0 %v7151_v24  ;;  %v6038_v17 = vld [vmem:[%s7503_s4 + $0xa0] sm:$0xff]  }
  0xed   : > { %v926_v37 = vrot.slane %v924_v62, 7  ;;  %v934_v20 = vrot.slane %v932_v34, 7  ;;  %v6088_v56 = vld [vmem:[#allocation2 + $0x40] sm:$0xf] }
  0xee   : > { %v7183_v3 = vcombine.low %v6087_v49, %v6088_v56 }
  0xef   : > { %5370 = vmatpush3.bf16.msra.mxu1 %v6026_v7  ;;  %v929_v1 = vor.u32 %v927_v59, %v926_v37  ;;  %v930_v19 = vrot.slane %v926_v37, 4  ;;  %v937_v50 = vor.u32 %v935_v47, %v934_v20  ;;  %v939_v43 = vrot.slane %v934_v20, 4  ;;  %v6091_v47 = vld [vmem:[#allocation2 + $0x54] sm:$0xf] }
  0xf0   : > { %5371 = vmatprep.subr.bf16.mxu1 %v6030_v42  ;;  %v7196_v8 = vcombine.low %v6091_v47, %v6092_v22  ;;  %v6046_v20 = vld [vmem:[%s7503_s4 + $0xb0] sm:$0xff]  }
  0xf1   : > { %v938_v7 = vsel %vm6370_vm11, %v930_v19, %v937_v50  ;;  %v1097_v31 = vsel %vm6364_vm10, %v929_v1, %v1096_v26  ;;  %v1101_v61 = vsel %vm6196_vm3, %v939_v43, %v1100_v12  ;;  %v6093_v43 = vld [vmem:[#allocation2 + $0x60] sm:$0xf] }
  0xf2   : > { %5340 = vmatmul.mubr.bf16.gmra.mrb[4].mxu1 %v7163_v63  ;;  %1098 = vst [vmem:[#allocation2 + $0xc0] sm:$0xf] %v1097_v31  ;;  %1099 = vst [vmem:[#allocation2 + $0xc4] sm:$0xf] %v938_v7  ;;  %v7209_v7 = vcombine.low %v6093_v43, %v6094_v2  ;;  %v6051_v43 = vld [vmem:[%s7503_s4 + $0x1d8] sm:$0xff]  }
  0xf3   : > { %5343 = vmatprep.mubr.bf16.mxu1 %v7165_v9  ;;  %5372 = vmatpush3.bf16.msra.mxu1 %v6030_v42  ;;  %1102 = vst [vmem:[#allocation2 + $0xc8] sm:$0x1] %v1101_v61  ;;  %v6090_v42 = vld [vmem:[#allocation2 + $0x4c] sm:$0xf] }
  0xf4   : > { %5373 = vmatprep.subr.bf16.mxu1 %v6034_v41  ;;  %v7185_v14 = vcombine.low %v6089_v45, %v6090_v42  ;;  %v6050_v42 = vld [vmem:[%s7503_s4 + $0xb8] sm:$0xff]  }
  0xf7   : > { %5374 = vmatpush3.bf16.msra.mxu1 %v6034_v41 }
  0xf8   : > { %5375 = vmatprep.subr.bf16.mxu1 %v6038_v17 }
  0xf9   : > { %v7192_v62 = vld [vmem:[#allocation2 + $0xc0] sm:$0xf]  ;;  %v7194_v59 = vld [vmem:[#allocation2 + $0xc4] sm:$0xf] }
  0xfa   : > { %5344 = vmatmul.mubr.bf16.gmra.mrb[8].mxu1 %v7183_v3  ;;  %v1153_v34 = vld [vmem:[#allocation2 + $0xc8] sm:$0x1]  ;;  %v4743_v60 = vrot.slane %v7192_v62, 9  ;;  %v3157_v38 = vrot.slane %v7194_v59, 5  ;;  %v2870_v41 = vshrl.u32 %v7192_v62, 16  ;;  %v2873_v26 = vshll.u32 %v7192_v62, 16 }
  0xfb   : > { %5347 = vmatprep.mubr.bf16.mxu1 %v7185_v14  ;;  %5376 = vmatpush3.bf16.msra.mxu1 %v6038_v17  ;;  %v3160_v37 = vrot.slane %v1153_v34, 5  ;;  %v2879_v12 = vshll.u32 %v7194_v59, 16  ;;  %v2883_v1 = vshrl.u32 %v7194_v59, 16  ;;  %v2889_v31 = vshll.u32 %v1153_v34, 16 }
  0xfc   : > { %5377 = vmatprep.subr.bf16.mxu1 %v6042_v18  ;;  %v3158_v19 = vsel %vm6664_vm14, %v4743_v60, %v3157_v38  ;;  %v3159_v50 = vrot.slane %v3157_v38, 4  ;;  %v2872_v61 = vrot.slane %v2870_v41, 4  ;;  %v2875_v4 = vrot.slane %v2873_v26, 5  ;;  %v6052_v38 = vld [vmem:[%s7503_s4 + $0xc0] sm:$0xff]   ;;  %v6095_v26 = vld [vmem:[#allocation2 + $0x6c] sm:$0xf] }
  0xfd   : > { %v2881_v17 = vrot.slane %v2879_v12, 5  ;;  %v2885_v49 = vrot.slane %v2883_v1, 4  ;;  %v2891_v60 = vrot.slane %v2889_v31, 5  ;;  %v6096_v12 = vld [vmem:[#allocation2 + $0x70] sm:$0xf]  ;;  %v4685_v31 = vrot.slane %v7079_v25, 9 }
  0xfe   : > { %v3161_v56 = vsel %vm6664_vm14, %v3159_v50, %v3160_v37  ;;  %v2876_v47 = vor.u32 %v2875_v4, %v2872_v61  ;;  %v7229_v1 = vcombine.low %v6095_v26, %v6096_v12  ;;  %v6043_v50 = vld [vmem:[%s7503_s4 + $0x1c8] sm:$0xff]   ;;  %v7320_v26 = vld [vmem:[#allocation2 + $0xd0] sm:$0xf]  ;;  %v6068_v12 = vld [vmem:[%s7503_s4 + $0xf8] sm:$0xff]  }
  0xff   : > { %5378 = vmatpush3.bf16.msra.mxu1 %v6042_v18  ;;  %v7213_v45 = vcombine.low %v3158_v19, %v3161_v56  ;;  %v2886_v22 = vor.u32 %v2885_v49, %v2881_v17  ;;  %v6055_v4 = vld [vmem:[%s7503_s4 + $0x1e8] sm:$0xff]   ;;  %v6060_v56 = vld [vmem:[%s7503_s4 + $0x1f8] sm:$0xff]  }
 0x100   : > { %5379 = vmatprep.subr.bf16.mxu1 %v6046_v20  ;;  %v2877_v18 = vrot.slane %v2876_v47, 4  ;;  %v6054_v47 = vld [vmem:[%s7503_s4 + $0xc8] sm:$0xff]  }
 0x101   : > { %5556 = vmatmul.mubr.bf16.gmra.mrb[28].mxu0 %v7213_v45  ;;  %v2887_v34 = vrot.slane %v2886_v22, 4  ;;  %v6056_v22 = vld [vmem:[%s7503_s4 + $0xd0] sm:$0xff]  }
 0x102   : > { %5348 = vmatmul.mubr.bf16.gmra.mrb[12].mxu1 %v7196_v8  ;;  %5575 = vmatprep.mubr.bf16.mxu0 %v7132_v27  ;;  %v2882_v37 = vsel %vm6268_vm7, %v2877_v18, %v2881_v17  ;;  %v6057_v17 = vld [vmem:[%s7503_s4 + $0x1f0] sm:$0xff]   ;;  %v6062_v18 = vld [vmem:[%s7503_s4 + $0xe0] sm:$0xff]  }
 0x103   : > { %5351 = vmatprep.mubr.bf16.mxu1 %v7209_v7  ;;  %5380 = vmatpush3.bf16.msra.mxu1 %v6046_v20  ;;  %v2892_v41 = vsel %vm6268_vm7, %v2887_v34, %v2891_v60  ;;  %v7235_v20 = vcombine.low %v6809_v5, %v6824_v55  ;;  %v6047_v5 = vld [vmem:[%s7503_s4 + $0x1d0] sm:$0xff]   ;;  %v7250_v55 = vcombine.low %v6846_v40, %v6850_v52  ;;  %v6053_v40 = vld [vmem:[%s7503_s4 + $0x1e0] sm:$0xff]   ;;  %v6097_v52 = vld [vmem:[#allocation2 + $0x8] sm:$0x1] }
 0x104   : > { %5381 = vmatprep.subr.bf16.mxu1 %v6050_v42  ;;  %v7231_v19 = vcombine.low %v2882_v37, %v2892_v41  ;;  %v2178_v2 = vrot.slane %v6097_v52, 5  ;;  %v6058_v60 = vld [vmem:[%s7503_s4 + $0xd8] sm:$0xff]   ;;  %v7309_v34 = vcombine.low %v7192_v62, %v7194_v59  ;;  %v7555_v37 = vld [vmem:[#allocation14_spill] sm:$0xff]  ;;  %v7318_v41 = vld [vmem:[#allocation2 + $0xcc] sm:$0xf] }
 0x105   : > { %v6066_v62 = vld [vmem:[%s7503_s4 + $0xf0] sm:$0xff]   ;;  %v4753_v59 = vcombine.low %v7318_v41, %v7320_v26 }
 0x106   : > { %v6067_v52 = vld [vmem:[%s7503_s4 + $0x210] sm:$0xff]  }
 0x107   : > { %5382 = vmatpush3.bf16.msra.mxu1 %v6050_v42  ;;  %v6063_v42 = vld [vmem:[%s7503_s4 + $0x200] sm:$0xff]  }
 0x108   : > { %5415 = vmatprep.subr.bf16.mxu1 %v6052_v38 }
 0x109   : > { %5576 = vmatmul.mubr.bf16.vlgmr.msra.gmra.mrb[0].mxu0 %v7163_v63 }
 0x10a   : > { %5352 = vmatmul.mubr.bf16.gmra.mrb[16].mxu1 %v7229_v1  ;;  %5608 = vmatpush3.bf16.msra.mxu0 %v6887_v21  ;;  %v2175_v21 = vrot.slane %v7077_v36, 5 }
 0x10b   : > { %5355 = vmatprep.mubr.bf16.mxu1 %v7235_v20  ;;  %5579 = vmatprep.mubr.bf16.mxu0 %v7165_v9 }
 0x10c   : > { %5609 = vmatprep.subr.bf16.mxu0 %v6043_v50  ;;  %v2177_v61 = vrot.slane %v2175_v21, 4  ;;  %v2176_v36 = vsel %vm6664_vm14, %v4685_v31, %v2175_v21  ;;  %v7557_v21 = vld [vmem:[#allocation4_spill] sm:$0xff]  ;;  %v7559_v31 = vld [vmem:[#allocation6_spill] sm:$0xff] }
 0x10e   : > { %5610 = vmatpush3.bf16.msra.mxu0 %v6043_v50  ;;  %v2179_v25 = vsel %vm6664_vm14, %v2177_v61, %v2178_v2  ;;  %v7556_v50 = vld [vmem:[#allocation3_spill] sm:$0xff] }
 0x10f   : > { %5611 = vmatprep.subr.bf16.mxu0 %v6047_v5  ;;  %v4701_v49 = vcombine.low %v2176_v36, %v2179_v25  ;;  %v6069_v2 = vld [vmem:[%s7503_s4 + $0x218] sm:$0xff]   ;;  %v6071_v36 = vld [vmem:[%s7503_s4 + $0x228] sm:$0xff]   ;;  %v7561_v25 = vld [vmem:[#allocation8_spill] sm:$0xff] }
 0x110   : > { %v7560_v61 = vld [vmem:[#allocation7_spill] sm:$0xff] }
 0x111   : > { %5580 = vmatmul.mubr.bf16.gmra.mrb[4].mxu0 %v7183_v3 }
 0x112   : > { %5356 = vmatmul.mubr.bf16.gmra.mrb[20].mxu1 %v7250_v55  ;;  %5583 = vmatprep.mubr.bf16.mxu0 %v7185_v14 }
 0x113   : > { %5359 = vmatprep.mubr.bf16.mxu1 %v7126_v15  ;;  %5612 = vmatpush3.bf16.msra.mxu0 %v6047_v5  ;;  %v6065_v5 = vld [vmem:[%s7503_s4 + $0x208] sm:$0xff]  }
 0x114   : > { %5613 = vmatprep.subr.bf16.mxu0 %v6051_v43 }
 0x117   : > { %5614 = vmatpush3.bf16.msra.mxu0 %v6051_v43  ;;  %v6098_v43 = vld [vmem:[%s7503_s4 + $0x100] sm:$0xff]  }
 0x118   : > { %5615 = vmatprep.subr.bf16.mxu0 %v6053_v40 }
 0x119   : > { %5584 = vmatmul.mubr.bf16.gmra.mrb[8].mxu0 %v7196_v8 }
 0x11a   : > { %5360 = vmatmul.mubr.bf16.gmra.mrb[24].mxu1 %v7130_v54  ;;  %5587 = vmatprep.mubr.bf16.mxu0 %v7209_v7 }
 0x11b   : > { %5363 = vmatprep.mubr.bf16.mxu1 %v7138_v10  ;;  %5616 = vmatpush3.bf16.msra.mxu0 %v6053_v40  ;;  %v7558_v40 = vld [vmem:[#allocation5_spill] sm:$0xff] }
 0x11c   : > { %5617 = vmatprep.subr.bf16.mxu0 %v6055_v4 }
 0x11f   : > { %5618 = vmatpush3.bf16.msra.mxu0 %v6055_v4  ;;  %v6070_v4 = vld [vmem:[%s7503_s4 + $0x220] sm:$0xff]  }
 0x120   : > { %5619 = vmatprep.subr.bf16.mxu0 %v6057_v17 }
 0x121   : > { %5588 = vmatmul.mubr.bf16.gmra.mrb[12].mxu0 %v7229_v1 }
 0x122   : > { %5364 = vmatmul.mubr.bf16.gmra.mrb[28].mxu1 %v7147_v48  ;;  %5591 = vmatprep.mubr.bf16.mxu0 %v7235_v20 }
 0x123   : > { %5383 = vmatprep.mubr.bf16.mxu1 %v4701_v49  ;;  %5620 = vmatpush3.bf16.msra.mxu0 %v6057_v17  ;;  %v7562_v17 = vld [vmem:[#allocation9_spill] sm:$0xff]  ;;  %v6072_v49 = vld [vmem:[%s7503_s4 + $0x230] sm:$0xff]  }
 0x124   : > { %5621 = vmatprep.subr.bf16.mxu0 %v6060_v56 }
 0x127   : > { %5622 = vmatpush3.bf16.msra.mxu0 %v6060_v56  ;;  %v6073_v56 = vld [vmem:[%s7503_s4 + $0x238] sm:$0xff]  }
 0x128   : > { %5655 = vmatprep.subr.bf16.mxu0 %v6063_v42 }
 0x129   : > { %5592 = vmatmul.mubr.bf16.gmra.mrb[16].mxu0 %v7250_v55 }
 0x12a   : > { %5384 = vmatmul.mubr.bf16.vlgmr.msra.gmra.mrb[0].mxu1 %v6701_v32  ;;  %5595 = vmatprep.mubr.bf16.mxu0 %v7126_v15  ;;  %v7554_v32 = vld [vmem:[#allocation11_spill] sm:$0xff] }
 0x12b   : > { %5416 = vmatpush3.bf16.msra.mxu1 %v6052_v38  ;;  %5387 = vmatprep.mubr.bf16.mxu1 %v6716_v30  ;;  %v6064_v38 = vld [vmem:[%s7503_s4 + $0xe8] sm:$0xff]  }
 0x12c   : > { %5417 = vmatprep.subr.bf16.mxu1 %v6054_v47 }
 0x12f   : > { %5418 = vmatpush3.bf16.msra.mxu1 %v6054_v47  ;;  %v7564_v47 = vld [vmem:[#allocation12_spill] sm:$0xff] }
 0x130   : > { %5419 = vmatprep.subr.bf16.mxu1 %v6056_v22 }
 0x131   : > { %5596 = vmatmul.mubr.bf16.gmra.mrb[20].mxu0 %v7130_v54 }
 0x132   : > { %5388 = vmatmul.mubr.bf16.gmra.mrb[4].mxu1 %v6784_v11  ;;  %5599 = vmatprep.mubr.bf16.mxu0 %v7138_v10 }
 0x133   : > { %5391 = vmatprep.mubr.bf16.mxu1 %v7554_v32  ;;  %5420 = vmatpush3.bf16.msra.mxu1 %v6056_v22  ;;  %v7565_v22 = vld [vmem:[#allocation13_spill] sm:$0xff] }
 0x134   : > { %5421 = vmatprep.subr.bf16.mxu1 %v6058_v60 }
 0x137   : > { %5422 = vmatpush3.bf16.msra.mxu1 %v6058_v60  ;;  %v3687_v60 = vshrl.u32 %v7318_v41, 16 }
 0x138   : > { %5423 = vmatprep.subr.bf16.mxu1 %v6062_v18 }
 0x139   : > { %5600 = vmatmul.mubr.bf16.gmra.mrb[24].mxu0 %v7147_v48 }
 0x13a   : > { %5392 = vmatmul.mubr.bf16.gmra.mrb[8].mxu1 %v6911_v46  ;;  %5603 = vmatprep.mubr.bf16.mxu0 %v7309_v34 }
 0x13b   : > { %5395 = vmatprep.mubr.bf16.mxu1 %v7555_v37  ;;  %5424 = vmatpush3.bf16.msra.mxu1 %v6062_v18  ;;  %v3690_v18 = vshll.u32 %v7318_v41, 16 }
 0x13c   : > { %5425 = vmatprep.subr.bf16.mxu1 %v6064_v38 }
 0x13f   : > { %5426 = vmatpush3.bf16.msra.mxu1 %v6064_v38  ;;  %v3700_v38 = vshrl.u32 %v7320_v26, 16 }
 0x140   : > { %5427 = vmatprep.subr.bf16.mxu1 %v6066_v62 }
 0x141   : > { %5604 = vmatmul.mubr.bf16.gmra.mrb[28].mxu0 %v4753_v59  ;;  %v3689_v59 = vrot.slane %v3687_v60, 4 }
 0x142   : > { %5396 = vmatmul.mubr.bf16.gmra.mrb[12].mxu1 %v7004_v28  ;;  %5623 = vmatprep.mubr.bf16.mxu0 %v7556_v50 }
 0x143   : > { %5399 = vmatprep.mubr.bf16.mxu1 %v7018_v35  ;;  %5428 = vmatpush3.bf16.msra.mxu1 %v6066_v62  ;;  %v3696_v62 = vshll.u32 %v7320_v26, 16 }
 0x144   : > { %5429 = vmatprep.subr.bf16.mxu1 %v6068_v12 }
 0x145   : > { %v3698_v50 = vrot.slane %v3696_v62, 5 }
 0x147   : > { %5430 = vmatpush3.bf16.msra.mxu1 %v6068_v12  ;;  %v3692_v12 = vrot.slane %v3690_v18, 5 }
 0x148   : > { %5703 = vmatprep.subr.bf16.mxu1 %v6098_v43 }
 0x149   : > { %5624 = vmatmul.mubr.bf16.vlgmr.msra.gmra.mrb[0].mxu0 %v7557_v21 }
 0x14a   : > { %5400 = vmatmul.mubr.bf16.gmra.mrb[16].mxu1 %v7037_v6  ;;  %5656 = vmatpush3.bf16.msra.mxu0 %v6063_v42  ;;  %v7563_v42 = vld [vmem:[#allocation10_spill] sm:$0xff] }
 0x14b   : > { %5403 = vmatprep.mubr.bf16.mxu1 %v7056_v13  ;;  %5627 = vmatprep.mubr.bf16.mxu0 %v7558_v40 }
 0x14c   : > { %5657 = vmatprep.subr.bf16.mxu0 %v6065_v5 }
 0x14e   : > { %5658 = vmatpush3.bf16.msra.mxu0 %v6065_v5  ;;  %v3702_v5 = vrot.slane %v3700_v38, 4 }
 0x14f   : > { %5659 = vmatprep.subr.bf16.mxu0 %v6067_v52 }
 0x150   : > { %v3703_v21 = vor.u32 %v3702_v5, %v3698_v50 }
 0x151   : > { %5628 = vmatmul.mubr.bf16.gmra.mrb[4].mxu0 %v7559_v31 }
 0x152   : > { %5404 = vmatmul.mubr.bf16.gmra.mrb[20].mxu1 %v7071_v16  ;;  %5631 = vmatprep.mubr.bf16.mxu0 %v7560_v61  ;;  %v3704_v31 = vrot.slane %v3703_v21, 4 }
 0x153   : > { %5407 = vmatprep.mubr.bf16.mxu1 %v7089_v0  ;;  %5660 = vmatpush3.bf16.msra.mxu0 %v6067_v52  ;;  %v6101_v52 = vld [vmem:[%s7503_s4 + $0x118] sm:$0xff]  }
 0x154   : > { %5661 = vmatprep.subr.bf16.mxu0 %v6069_v2 }
 0x157   : > { %5662 = vmatpush3.bf16.msra.mxu0 %v6069_v2 }
 0x158   : > { %5663 = vmatprep.subr.bf16.mxu0 %v6070_v4 }
 0x159   : > { %5632 = vmatmul.mubr.bf16.gmra.mrb[8].mxu0 %v7561_v25 }
 0x15a   : > { %5408 = vmatmul.mubr.bf16.gmra.mrb[24].mxu1 %v7101_v29  ;;  %5635 = vmatprep.mubr.bf16.mxu0 %v7562_v17 }
 0x15b   : > { %5411 = vmatprep.mubr.bf16.mxu1 %v7143_v53  ;;  %5664 = vmatpush3.bf16.msra.mxu0 %v6070_v4 }
 0x15c   : > { %5665 = vmatprep.subr.bf16.mxu0 %v6071_v36 }
 0x15f   : > { %5666 = vmatpush3.bf16.msra.mxu0 %v6071_v36  ;;  %v6103_v36 = vld [vmem:[%s7503_s4 + $0x128] sm:$0xff]  }
 0x160   : > { %5667 = vmatprep.subr.bf16.mxu0 %v6072_v49 }
 0x161   : > { %5636 = vmatmul.mubr.bf16.gmra.mrb[12].mxu0 %v7563_v42 }
 0x162   : > { %5412 = vmatmul.mubr.bf16.gmra.mrb[28].mxu1 %v7151_v24  ;;  %5639 = vmatprep.mubr.bf16.mxu0 %v7564_v47 }
 0x163   : > { %5431 = vmatprep.mubr.bf16.mxu1 %v7109_v39  ;;  %5668 = vmatpush3.bf16.msra.mxu0 %v6072_v49  ;;  %v6099_v39 = vld [vmem:[%s7503_s4 + $0x108] sm:$0xff]  }
 0x164   : > { %5669 = vmatprep.subr.bf16.mxu0 %v6073_v56 }
 0x167   : > { %5670 = vmatpush3.bf16.msra.mxu0 %v6073_v56 }
 0x169   : > { %5640 = vmatmul.mubr.bf16.gmra.mrb[16].mxu0 %v7565_v22 }
 0x16a   : > { %5432 = vmatmul.mubr.bf16.vlgmr.msra.gmra.mrb[0].mxu1 %v7132_v27  ;;  %5643 = vmatprep.mubr.bf16.mxu0 %v6963_v51  ;;  %v6100_v27 = vld [vmem:[%s7503_s4 + $0x110] sm:$0xff]  }
 0x16b   : > { %5711 = vmatpush3.bf16.msra.mxu1 %v6098_v43  ;;  %5435 = vmatprep.mubr.bf16.mxu1 %v7163_v63  ;;  %v7387_v63 = vld [vmem:[#allocation2 + $0xd4] sm:$0x1]  ;;  %v3693_v43 = vor.u32 %v3692_v12, %v3689_v59 }
 0x16c   : > { %5704 = vmatprep.subr.bf16.mxu1 %v6099_v39  ;;  %v3706_v40 = vshll.u32 %v7387_v63, 16 }
 0x16d   : > { %v3694_v2 = vrot.slane %v3693_v43, 4 }
 0x16f   : > { %5712 = vmatpush3.bf16.msra.mxu1 %v6099_v39  ;;  %v3699_v61 = vsel %vm6268_vm7, %v3694_v2, %v3698_v50 }
 0x170   : > { %5705 = vmatprep.subr.bf16.mxu1 %v6100_v27 }
 0x171   : > { %5644 = vmatmul.mubr.bf16.gmra.mrb[20].mxu0 %v6981_v44 }
 0x172   : > { %5436 = vmatmul.mubr.bf16.gmra.mrb[4].mxu1 %v7165_v9  ;;  %5647 = vmatprep.mubr.bf16.mxu0 %v7054_v23  ;;  %v3708_v9 = vrot.slane %v3706_v40, 5 }
 0x173   : > { %5439 = vmatprep.mubr.bf16.mxu1 %v7183_v3  ;;  %5713 = vmatpush3.bf16.msra.mxu1 %v6100_v27  ;;  %v6102_v3 = vld [vmem:[%s7503_s4 + $0x120] sm:$0xff]  }
 0x174   : > { %5706 = vmatprep.subr.bf16.mxu1 %v6101_v52  ;;  %v3709_v4 = vsel %vm6268_vm7, %v3704_v31, %v3708_v9 }
 0x175   : > { %v4762_v25 = vcombine.low %v3699_v61, %v3709_v4 }
 0x177   : > { %5714 = vmatpush3.bf16.msra.mxu1 %v6101_v52 }
 0x178   : > { %5707 = vmatprep.subr.bf16.mxu1 %v6102_v3 }
 0x179   : > { %5648 = vmatmul.mubr.bf16.gmra.mrb[24].mxu0 %v7093_v58 }
 0x17a   : > { %5440 = vmatmul.mubr.bf16.gmra.mrb[8].mxu1 %v7185_v14  ;;  %5651 = vmatprep.mubr.bf16.mxu0 %v7231_v19  ;;  %v6104_v14 = vld [vmem:[%s7503_s4 + $0x130] sm:$0xff]  }
 0x17b   : > { %5443 = vmatprep.mubr.bf16.mxu1 %v7196_v8  ;;  %5715 = vmatpush3.bf16.msra.mxu1 %v6102_v3 }
 0x17c   : > { %5708 = vmatprep.subr.bf16.mxu1 %v6103_v36 }
 0x17f   : > { %5716 = vmatpush3.bf16.msra.mxu1 %v6103_v36 }
 0x180   : > { %5709 = vmatprep.subr.bf16.mxu1 %v6104_v14 }
 0x181   : > { %5652 = vmatmul.mubr.bf16.gmra.mrb[28].mxu0 %v4762_v25 }
 0x182   : > { %5444 = vmatmul.mubr.bf16.gmra.mrb[12].mxu1 %v7209_v7  ;;  %5671 = vmatprep.mubr.bf16.mxu0 %v6716_v30  ;;  %v3974_v30 = vrot.slane %v7320_v26, 5 }
 0x183   : > { %5447 = vmatprep.mubr.bf16.mxu1 %v7229_v1  ;;  %5717 = vmatpush3.bf16.msra.mxu1 %v6104_v14 }
 0x184   : > { %5710 = vmatprep.subr.bf16.mxu1 %v6105_v57 }
 0x187   : > { %5718 = vmatpush3.bf16.msra.mxu1 %v6105_v57 }
 0x189   : > { %5672 = vmatmul.mubr.bf16.vlgmr.msra.gmra.mrb[0].mxu0 %v6784_v11  ;;  %v4771_v11 = vrot.slane %v7318_v41, 9 }
 0x18a   : > { %5448 = vmatmul.mubr.bf16.gmra.mrb[16].mxu1 %v7235_v20  ;;  %5675 = vmatprep.mubr.bf16.mxu0 %v7554_v32 }
 0x18b   : > { %5451 = vmatprep.mubr.bf16.mxu1 %v7250_v55 }
 0x191   : > { %5676 = vmatmul.mubr.bf16.gmra.mrb[4].mxu0 %v6911_v46  ;;  %v3976_v46 = vrot.slane %v3974_v30, 4 }
 0x192   : > { %5452 = vmatmul.mubr.bf16.gmra.mrb[20].mxu1 %v7126_v15  ;;  %5679 = vmatprep.mubr.bf16.mxu0 %v7555_v37 }
 0x193   : > { %5455 = vmatprep.mubr.bf16.mxu1 %v7130_v54 }
 0x199   : > { %5680 = vmatmul.mubr.bf16.gmra.mrb[8].mxu0 %v7004_v28  ;;  %v3977_v28 = vrot.slane %v7387_v63, 5 }
 0x19a   : > { %5456 = vmatmul.mubr.bf16.gmra.mrb[24].mxu1 %v7138_v10  ;;  %5683 = vmatprep.mubr.bf16.mxu0 %v7018_v35 }
 0x19b   : > { %5459 = vmatprep.mubr.bf16.mxu1 %v7147_v48 }
 0x1a1   : > { %5684 = vmatmul.mubr.bf16.gmra.mrb[12].mxu0 %v7037_v6 }
 0x1a2   : > { %5460 = vmatmul.mubr.bf16.gmra.mrb[28].mxu1 %v7309_v34  ;;  %5687 = vmatprep.mubr.bf16.mxu0 %v7056_v13 }
 0x1a3   : > { %5495 = vmatprep.mubr.bf16.mxu1 %v7563_v42 }
 0x1a9   : > { %5688 = vmatmul.mubr.bf16.gmra.mrb[16].mxu0 %v7071_v16 }
 0x1aa   : > { %5496 = vmatmul.mubr.bf16.vlgmr.msra.gmra.mrb[16].mxu1 %v7564_v47  ;;  %5691 = vmatprep.mubr.bf16.mxu0 %v7089_v0 }
 0x1ab   : > { %5499 = vmatprep.mubr.bf16.mxu1 %v7565_v22 }
 0x1b1   : > { %5692 = vmatmul.mubr.bf16.gmra.mrb[20].mxu0 %v7101_v29 }
 0x1b2   : > { %5500 = vmatmul.mubr.bf16.gmra.mrb[20].mxu1 %v6963_v51  ;;  %5695 = vmatprep.mubr.bf16.mxu0 %v7143_v53  ;;  %v3975_v51 = vsel %vm6664_vm14, %v4771_v11, %v3974_v30 }
 0x1b3   : > { %5503 = vmatprep.mubr.bf16.mxu1 %v6981_v44  ;;  %v3978_v44 = vsel %vm6664_vm14, %v3976_v46, %v3977_v28 }
 0x1b4   : > { %v4772_v35 = vcombine.low %v3975_v51, %v3978_v44 }
 0x1b9   : > { %5696 = vmatmul.mubr.bf16.gmra.mrb[24].mxu0 %v7151_v24 }
 0x1ba   : > { %5504 = vmatmul.mubr.bf16.gmra.mrb[24].mxu1 %v7054_v23  ;;  %5699 = vmatprep.mubr.bf16.mxu0 %v7213_v45 }
 0x1bb   : > { %5507 = vmatprep.mubr.bf16.mxu1 %v7093_v58 }
 0x1c1   : > { %5700 = vmatmul.mubr.bf16.gmra.mrb[28].mxu0 %v4772_v35 }
 0x1c2   : > { %5508 = vmatmul.mubr.bf16.gmra.mrb[28].mxu1 %v7231_v19 }
 0x23d   : > { %v5433_v6 = vpop.f32.mrb[0].mxu1 }
 0x23e   : > { %v2710_v13 = vpop.f32.mrb[1].mxu1 }
 0x23f   : > { %v5434_v16 = vpop.f32.mrb[2].mxu1 }
 0x240   : > { %v2713_v23 = vpop.f32.mrb[3].mxu1 }
 0x245   : > { %v5437_v0 = vpop.f32.mrb[4].mxu1 }
 0x246   : > { %v2726_v29 = vpop.f32.mrb[5].mxu1 }
 0x247   : > { %v5438_v15 = vpop.f32.mrb[6].mxu1 }
 0x248   : > { %v2729_v58 = vpop.f32.mrb[7].mxu1 }
 0x24d   : > { %v5441_v54 = vpop.f32.mrb[8].mxu1 }
 0x24e   : > { %v2742_v10 = vpop.f32.mrb[9].mxu1 }
 0x24f   : > { %v5442_v53 = vpop.f32.mrb[10].mxu1 }
 0x250   : > { %v2745_v48 = vpop.f32.mrb[11].mxu1 }
 0x255   : > { %v7456_v24 = vpop.f32.mrb[12].mxu1 }
 0x256   : > { %v7458_v33 = vpop.f32.mrb[13].mxu1 }
 0x257   : > { %v7460_v8 = vpop.f32.mrb[14].mxu1 }
 0x258   : > { %v7462_v7 = vpop.f32.mrb[15].mxu1 }
 0x25c   : > { %v5673_v45 = vpop.f32.mrb[0].mxu0 }
 0x25d   : > { %v5719_v1 = vadd.f32 %v5673_v45, %v5433_v6  ;;  %v4081_v19 = vpop.f32.mrb[1].mxu0 }
 0x25e   : > { %v5720_v20 = vadd.f32 %v4081_v19, %v2710_v13  ;;  %v5674_v55 = vpop.f32.mrb[2].mxu0 }
 0x25f   : > { %v5721_v32 = vadd.f32 %v5674_v55, %v5434_v16  ;;  %v4084_v34 = vpop.f32.mrb[3].mxu0  ;;  %v4439_v42 = vmul.f32 %v5719_v1, %v5719_v1 }
 0x260   : > { %v5722_v37 = vadd.f32 %v4084_v34, %v2713_v23  ;;  %v4437_v26 = vmul.f32 %v5720_v20, %v5720_v20 }
 0x261   : > { %v4953_v41 = vpack.c.bf16 %v5721_v32, %v5719_v1  ;;  %v4440_v39 = vmul.f32 %v5721_v32, %v5721_v32 }
 0x262   : > { %v4948_v17 = vpack.c.bf16 %v5722_v37, %v5720_v20  ;;  %v4400_v49 = vadd.f32 %v5722_v37, %v5720_v20  ;;  %v4438_v56 = vmul.f32 %v5722_v37, %v5722_v37 }
 0x263   : > { %5040 = vst [vmem:[%s7469_s8 + $0x8] sm:$0xff] %v4953_v41  }
 0x264   : > { %4949 = vst [vmem:[%s7469_s8] sm:$0xff] %v4948_v17   ;;  %v4401_v47 = vadd.f32 %v5719_v1, %v4400_v49  ;;  %v4469_v22 = vadd.f32 %v4438_v56, %v4437_v26  ;;  %v5677_v60 = vpop.f32.mrb[4].mxu0 }
 0x265   : > { %v5723_v18 = vadd.f32 %v5677_v60, %v5437_v0  ;;  %v4097_v38 = vpop.f32.mrb[5].mxu0 }
 0x266   : > { %v4470_v62 = vadd.f32 %v4469_v22, %v4439_v42  ;;  %v5724_v27 = vadd.f32 %v4097_v38, %v2726_v29  ;;  %v4402_v59 = vadd.f32 %v5721_v32, %v4401_v47  ;;  %v5678_v12 = vpop.f32.mrb[6].mxu0 }
 0x267   : > { %v5725_v50 = vadd.f32 %v5678_v12, %v5438_v15  ;;  %v4100_v5 = vpop.f32.mrb[7].mxu0  ;;  %v4443_v61 = vmul.f32 %v5723_v18, %v5723_v18 }
 0x268   : > { %v4403_v63 = vadd.f32 %v5724_v27, %v4402_v59  ;;  %v4441_v43 = vmul.f32 %v5724_v27, %v5724_v27  ;;  %v4471_v21 = vadd.f32 %v4470_v62, %v4440_v39  ;;  %v5726_v40 = vadd.f32 %v4100_v5, %v2729_v58 }
 0x269   : > { %v4963_v52 = vpack.c.bf16 %v5725_v50, %v5723_v18  ;;  %v4444_v30 = vmul.f32 %v5725_v50, %v5725_v50 }
 0x26a   : > { %v4472_v2 = vadd.f32 %v4471_v21, %v4441_v43  ;;  %v4958_v31 = vpack.c.bf16 %v5726_v40, %v5724_v27  ;;  %v4404_v9 = vadd.f32 %v5726_v40, %v4403_v63  ;;  %v4442_v3 = vmul.f32 %v5726_v40, %v5726_v40 }
 0x26b   : > { %5042 = vst [vmem:[%s7469_s8 + $0x18] sm:$0xff] %v4963_v52  }
 0x26c   : > { %5041 = vst [vmem:[%s7469_s8 + $0x10] sm:$0xff] %v4958_v31   ;;  %v4405_v4 = vadd.f32 %v5723_v18, %v4404_v9  ;;  %v4473_v36 = vadd.f32 %v4472_v2, %v4442_v3  ;;  %v5681_v25 = vpop.f32.mrb[8].mxu0 }
 0x26d   : > { %v5727_v14 = vadd.f32 %v5681_v25, %v5441_v54  ;;  %v4113_v57 = vpop.f32.mrb[9].mxu0 }
 0x26e   : > { %v4474_v11 = vadd.f32 %v4473_v36, %v4443_v61  ;;  %v5728_v46 = vadd.f32 %v4113_v57, %v2742_v10  ;;  %v4406_v28 = vadd.f32 %v5725_v50, %v4405_v4  ;;  %v5682_v51 = vpop.f32.mrb[10].mxu0 }
 0x26f   : > { %v5729_v44 = vadd.f32 %v5682_v51, %v5442_v53  ;;  %v4116_v35 = vpop.f32.mrb[11].mxu0  ;;  %v4447_v54 = vmul.f32 %v5727_v14, %v5727_v14 }
 0x270   : > { %v4407_v6 = vadd.f32 %v5728_v46, %v4406_v28  ;;  %v4445_v13 = vmul.f32 %v5728_v46, %v5728_v46  ;;  %v4475_v16 = vadd.f32 %v4474_v11, %v4444_v30  ;;  %v5730_v23 = vadd.f32 %v4116_v35, %v2745_v48 }
 0x271   : > { %v4973_v0 = vpack.c.bf16 %v5729_v44, %v5727_v14  ;;  %v4448_v53 = vmul.f32 %v5729_v44, %v5729_v44 }
 0x272   : > { %v4476_v29 = vadd.f32 %v4475_v16, %v4445_v13  ;;  %v4968_v15 = vpack.c.bf16 %v5730_v23, %v5728_v46  ;;  %v4408_v58 = vadd.f32 %v5730_v23, %v4407_v6  ;;  %v4446_v45 = vmul.f32 %v5730_v23, %v5730_v23 }
 0x273   : > { %5044 = vst [vmem:[%s7469_s8 + $0x28] sm:$0xff] %v4973_v0  }
 0x274   : > { %5043 = vst [vmem:[%s7469_s8 + $0x20] sm:$0xff] %v4968_v15   ;;  %v4409_v1 = vadd.f32 %v5727_v14, %v4408_v58  ;;  %v4477_v19 = vadd.f32 %v4476_v29, %v4446_v45  ;;  %v5685_v10 = vpop.f32.mrb[12].mxu0 }
 0x275   : > { %v5731_v20 = vadd.f32 %v5685_v10, %v7456_v24  ;;  %v4129_v55 = vpop.f32.mrb[13].mxu0 }
 0x276   : > { %v4478_v32 = vadd.f32 %v4477_v19, %v4447_v54  ;;  %v5732_v34 = vadd.f32 %v4129_v55, %v7458_v33  ;;  %v4410_v48 = vadd.f32 %v5729_v44, %v4409_v1  ;;  %v5686_v37 = vpop.f32.mrb[14].mxu0 }
 0x277   : > { %v5733_v41 = vadd.f32 %v5686_v37, %v7460_v8  ;;  %v4132_v26 = vpop.f32.mrb[15].mxu0  ;;  %v4451_v39 = vmul.f32 %v5731_v20, %v5731_v20 }
 0x278   : > { %v4411_v17 = vadd.f32 %v5732_v34, %v4410_v48  ;;  %v4449_v49 = vmul.f32 %v5732_v34, %v5732_v34  ;;  %v4479_v56 = vadd.f32 %v4478_v32, %v4448_v53  ;;  %v5734_v42 = vadd.f32 %v4132_v26, %v7462_v7 }
 0x279   : > { %v4983_v47 = vpack.c.bf16 %v5733_v41, %v5731_v20  ;;  %v4452_v5 = vmul.f32 %v5733_v41, %v5733_v41 }
 0x27a   : > { %v4480_v22 = vadd.f32 %v4479_v56, %v4449_v49  ;;  %v4978_v24 = vpack.c.bf16 %v5734_v42, %v5732_v34  ;;  %v4412_v60 = vadd.f32 %v5734_v42, %v4411_v17  ;;  %v4450_v18 = vmul.f32 %v5734_v42, %v5734_v42 }
 0x27b   : > { %5046 = vst [vmem:[%s7469_s8 + $0x38] sm:$0xff] %v4983_v47  }
 0x27c   : > { %5045 = vst [vmem:[%s7469_s8 + $0x30] sm:$0xff] %v4978_v24   ;;  %v4413_v33 = vadd.f32 %v5731_v20, %v4412_v60  ;;  %v4481_v62 = vadd.f32 %v4480_v22, %v4450_v18  ;;  %v5689_v59 = vpop.f32.mrb[16].mxu0 }
 0x27d   : > { %v5497_v38 = vpop.f32.mrb[16].mxu1  ;;  %v4145_v50 = vpop.f32.mrb[17].mxu0 }
 0x27e   : > { %v3059_v27 = vpop.f32.mrb[17].mxu1  ;;  %v5735_v8 = vadd.f32 %v5689_v59, %v5497_v38  ;;  %v4482_v63 = vadd.f32 %v4481_v62, %v4451_v39  ;;  %v4414_v43 = vadd.f32 %v5733_v41, %v4413_v33  ;;  %v5690_v40 = vpop.f32.mrb[18].mxu0 }
 0x27f   : > { %v5498_v12 = vpop.f32.mrb[18].mxu1  ;;  %v5736_v7 = vadd.f32 %v4145_v50, %v3059_v27  ;;  %v4148_v2 = vpop.f32.mrb[19].mxu0 }
 0x280   : > { %v3062_v21 = vpop.f32.mrb[19].mxu1  ;;  %v5737_v52 = vadd.f32 %v5690_v40, %v5498_v12  ;;  %v4483_v3 = vadd.f32 %v4482_v63, %v4452_v5  ;;  %v4455_v11 = vmul.f32 %v5735_v8, %v5735_v8 }
 0x281   : > { %v4415_v31 = vadd.f32 %v5736_v7, %v4414_v43  ;;  %v4453_v9 = vmul.f32 %v5736_v7, %v5736_v7  ;;  %v5738_v61 = vadd.f32 %v4148_v2, %v3062_v21 }
 0x282   : > { %v4993_v4 = vpack.c.bf16 %v5737_v52, %v5735_v8  ;;  %v4456_v16 = vmul.f32 %v5737_v52, %v5737_v52 }
 0x283   : > { %v4484_v36 = vadd.f32 %v4483_v3, %v4453_v9  ;;  %v4988_v25 = vpack.c.bf16 %v5738_v61, %v5736_v7  ;;  %v4416_v14 = vadd.f32 %v5738_v61, %v4415_v31  ;;  %v4454_v57 = vmul.f32 %v5738_v61, %v5738_v61 }
 0x284   : > { %5048 = vst [vmem:[%s7469_s8 + $0x48] sm:$0xff] %v4993_v4   ;;  %v5693_v44 = vpop.f32.mrb[20].mxu0 }
 0x285   : > { %v5501_v30 = vpop.f32.mrb[20].mxu1  ;;  %5047 = vst [vmem:[%s7469_s8 + $0x40] sm:$0xff] %v4988_v25   ;;  %v4417_v46 = vadd.f32 %v5735_v8, %v4416_v14  ;;  %v4485_v28 = vadd.f32 %v4484_v36, %v4454_v57  ;;  %v4161_v13 = vpop.f32.mrb[21].mxu0 }
 0x286   : > { %v3075_v51 = vpop.f32.mrb[21].mxu1  ;;  %v5739_v35 = vadd.f32 %v5693_v44, %v5501_v30  ;;  %v5694_v58 = vpop.f32.mrb[22].mxu0 }
 0x287   : > { %v5502_v6 = vpop.f32.mrb[22].mxu1  ;;  %v4486_v23 = vadd.f32 %v4485_v28, %v4455_v11  ;;  %v5740_v0 = vadd.f32 %v4161_v13, %v3075_v51  ;;  %v4418_v29 = vadd.f32 %v5737_v52, %v4417_v46  ;;  %v4164_v54 = vpop.f32.mrb[23].mxu0 }
 0x288   : > { %v3078_v15 = vpop.f32.mrb[23].mxu1  ;;  %v5741_v45 = vadd.f32 %v5694_v58, %v5502_v6  ;;  %v4459_v41 = vmul.f32 %v5739_v35, %v5739_v35 }
 0x289   : > { %v4419_v1 = vadd.f32 %v5740_v0, %v4418_v29  ;;  %v4457_v19 = vmul.f32 %v5740_v0, %v5740_v0  ;;  %v4487_v10 = vadd.f32 %v4486_v23, %v4456_v16  ;;  %v5742_v20 = vadd.f32 %v4164_v54, %v3078_v15 }
 0x28a   : > { %v5003_v55 = vpack.c.bf16 %v5741_v45, %v5739_v35  ;;  %v4460_v24 = vmul.f32 %v5741_v45, %v5741_v45 }
 0x28b   : > { %v4488_v53 = vadd.f32 %v4487_v10, %v4457_v19  ;;  %v4998_v32 = vpack.c.bf16 %v5742_v20, %v5740_v0  ;;  %v4420_v34 = vadd.f32 %v5742_v20, %v4419_v1  ;;  %v4458_v48 = vmul.f32 %v5742_v20, %v5742_v20 }
 0x28c   : > { %5050 = vst [vmem:[%s7469_s8 + $0x58] sm:$0xff] %v5003_v55   ;;  %v5697_v56 = vpop.f32.mrb[24].mxu0 }
 0x28d   : > { %v5505_v37 = vpop.f32.mrb[24].mxu1  ;;  %5049 = vst [vmem:[%s7469_s8 + $0x50] sm:$0xff] %v4998_v32   ;;  %v4421_v26 = vadd.f32 %v5739_v35, %v4420_v34  ;;  %v4489_v17 = vadd.f32 %v4488_v53, %v4458_v48  ;;  %v4177_v22 = vpop.f32.mrb[25].mxu0 }
 0x28e   : > { %v3091_v49 = vpop.f32.mrb[25].mxu1  ;;  %v5743_v42 = vadd.f32 %v5697_v56, %v5505_v37  ;;  %v5698_v33 = vpop.f32.mrb[26].mxu0 }
 0x28f   : > { %v5506_v47 = vpop.f32.mrb[26].mxu1  ;;  %v4490_v60 = vadd.f32 %v4489_v17, %v4459_v41  ;;  %v5744_v18 = vadd.f32 %v4177_v22, %v3091_v49  ;;  %v4422_v38 = vadd.f32 %v5741_v45, %v4421_v26  ;;  %v4180_v27 = vpop.f32.mrb[27].mxu0 }
 0x290   : > { %v3094_v39 = vpop.f32.mrb[27].mxu1  ;;  %v5745_v62 = vadd.f32 %v5698_v33, %v5506_v47  ;;  %v4463_v52 = vmul.f32 %v5743_v42, %v5743_v42 }
 0x291   : > { %v4423_v59 = vadd.f32 %v5744_v18, %v4422_v38  ;;  %v4461_v8 = vmul.f32 %v5744_v18, %v5744_v18  ;;  %v4491_v12 = vadd.f32 %v4490_v60, %v4460_v24  ;;  %v5746_v50 = vadd.f32 %v4180_v27, %v3094_v39 }
 0x292   : > { %v5013_v5 = vpack.c.bf16 %v5745_v62, %v5743_v42  ;;  %v4464_v25 = vmul.f32 %v5745_v62, %v5745_v62 }
 0x293   : > { %v4492_v63 = vadd.f32 %v4491_v12, %v4461_v8  ;;  %v5008_v7 = vpack.c.bf16 %v5746_v50, %v5744_v18  ;;  %v4424_v43 = vadd.f32 %v5746_v50, %v4423_v59  ;;  %v4462_v21 = vmul.f32 %v5746_v50, %v5746_v50 }
 0x294   : > { %5052 = vst [vmem:[%s7469_s8 + $0x68] sm:$0xff] %v5013_v5   ;;  %v5701_v3 = vpop.f32.mrb[28].mxu0 }
 0x295   : > { %v5509_v40 = vpop.f32.mrb[28].mxu1  ;;  %5051 = vst [vmem:[%s7469_s8 + $0x60] sm:$0xff] %v5008_v7   ;;  %v4425_v2 = vadd.f32 %v5743_v42, %v4424_v43  ;;  %v4493_v31 = vadd.f32 %v4492_v63, %v4462_v21  ;;  %v4193_v36 = vpop.f32.mrb[29].mxu0 }
 0x296   : > { %v3107_v9 = vpop.f32.mrb[29].mxu1  ;;  %v5747_v61 = vadd.f32 %v5701_v3, %v5509_v40  ;;  %v5702_v46 = vpop.f32.mrb[30].mxu0 }
 0x297   : > { %v5510_v4 = vpop.f32.mrb[30].mxu1  ;;  %v4494_v14 = vadd.f32 %v4493_v31, %v4463_v52  ;;  %v5748_v57 = vadd.f32 %v4193_v36, %v3107_v9  ;;  %v4426_v30 = vadd.f32 %v5745_v62, %v4425_v2  ;;  %v4196_v51 = vpop.f32.mrb[31].mxu0 }
 0x298   : > { %v3110_v11 = vpop.f32.mrb[31].mxu1  ;;  %v5749_v28 = vadd.f32 %v5702_v46, %v5510_v4  ;;  %v4467_v58 = vmul.f32 %v5747_v61, %v5747_v61 }
 0x299   : > { %v4427_v44 = vadd.f32 %v5748_v57, %v4426_v30  ;;  %v4465_v35 = vmul.f32 %v5748_v57, %v5748_v57  ;;  %v4495_v6 = vadd.f32 %v4494_v14, %v4464_v25  ;;  %v5750_v13 = vadd.f32 %v4196_v51, %v3110_v11 }
 0x29a   : > { %v5023_v16 = vpack.c.bf16 %v5749_v28, %v5747_v61  ;;  %v4468_v1 = vmul.f32 %v5749_v28, %v5749_v28 }
 0x29b   : > { %v4496_v23 = vadd.f32 %v4495_v6, %v4465_v35  ;;  %v5018_v0 = vpack.c.bf16 %v5750_v13, %v5748_v57  ;;  %v4428_v29 = vadd.f32 %v5750_v13, %v4427_v44  ;;  %v4466_v15 = vmul.f32 %v5750_v13, %v5750_v13 }
 0x29c   : > { %5054 = vst [vmem:[%s7469_s8 + $0x78] sm:$0xff] %v5023_v16  }
 0x29d   : > { %5053 = vst [vmem:[%s7469_s8 + $0x70] sm:$0xff] %v5018_v0   ;;  %v4429_v45 = vadd.f32 %v5747_v61, %v4428_v29  ;;  %v4497_v54 = vadd.f32 %v4496_v23, %v4466_v15 }
 0x29f   : > { %v4430_v19 = vadd.f32 %v5749_v28, %v4429_v45  ;;  %v4498_v10 = vadd.f32 %v4497_v54, %v4467_v58 }
 0x2a1   : > { %v4431_v20 = vrot.slane %v4430_v19, 4  ;;  %v4499_v55 = vadd.f32 %v4498_v10, %v4468_v1 }
 0x2a3   : > { %v4432_v53 = vadd.f32 %v4431_v20, %v4430_v19  ;;  %v4500_v32 = vrot.slane %v4499_v55, 4 }
 0x2a5   : > { %v4433_v34 = vrot.slane %v4432_v53, 2  ;;  %v4501_v48 = vadd.f32 %v4500_v32, %v4499_v55 }
 0x2a7   : > { %v4434_v37 = vadd.f32 %v4433_v34, %v4432_v53  ;;  %v4502_v41 = vrot.slane %v4501_v48, 2 }
 0x2a9   : > { %v4435_v26 = vrot.slane %v4434_v37, 1  ;;  %v4503_v17 = vadd.f32 %v4502_v41, %v4501_v48 }
 0x2ab   : > { %v4504_v49 = vrot.slane %v4503_v17, 1  ;;  %v4436_v56 = vadd.f32 %v4435_v26, %v4434_v37 }
 0x2ad   : > { %v4505_v42 = vadd.f32 %v4504_v49, %v4503_v17 }
 0x2af   : > { %v4507_v47 = vsel %vm457_vm0, %v4436_v56, %v4505_v42 }
 0x2b0   : > { %4508 = vst [vmem:[%s262_s11] sm:$0x3] %v4507_v47 }
 0x2b1 PF: > { %s17_s21 = sadd.s32 1, %s6112_s21  }
 0x2b2   : > { %p14_p4 = scmp.ge.s32.totalorder %s17_s21, 4  }
 0x2b4   :  { %16 = sbr.rel (!%p14_p4) target bundleno = 1 (0x1), region = 84 }

</bundles_post_ra>
